<compile_context>
chip_gen: v5e
topology: v5e:2x2
jax: 0.10.0
libtpu: 0.0.40
codegen_flags: <defaults>
</compile_context>

<pallas_src>
import functools
from typing import NamedTuple

import jax
import jax.numpy as jnp
from jax import lax
from jax.experimental import pallas as pl
from jax.experimental.pallas import tpu as pltpu


def _round_up(v, m):
    return ((v + m - 1) // m) * m


def _cdiv(a, b):
    return -(-a // b)


class _LayerMeta(NamedTuple):
    Hin: int
    Win: int
    Cin: int
    Hout: int
    Wout: int
    Cout: int
    K: int
    P: int


# ----------------------------------------------------------------------------
# Fused kernel: whole conv stack for ONE batch element.
#
# Flat activation layout per layer (shared flat width WF, WF % 8 == 0,
# WF >= Win + 2P for every layer):
#   buffer row 0            : zero front-guard row
#   buffer rows [1, 1+P)    : zero top halo
#   buffer rows [1+P, 1+P+Hin): data, spatial columns [0, Win), tail cols zero
#   buffer rows [1+P+Hin, ..): zero bottom halo + back-guard row
# Tap (kh, kw) for an output row block starting at h0 is the contiguous flat
# slice starting at (h0+kh+1)*WF + (kw - P); negative column shifts wrap into
# the previous row's zeroed tail, so no left halo is stored.
# ----------------------------------------------------------------------------
def _fused_head_kernel(*refs, meta, WF, CB):
    L = len(meta)
    x_ref = refs[0]
    w_refs = refs[1:1 + 2 * L:2]          # (K, K, Cin, Cout), natural channels
    b_refs = refs[2:2 + 2 * L:2]          # (1, Cout) f32
    o_ref = refs[1 + 2 * L]               # (1, HL, WL, CL) NHWC block
    bufs = (refs[2 + 2 * L], refs[3 + 2 * L])
    act_dtype = bufs[0].dtype

    # ---- stage layer-0 input: on-chip NCHW -> channel-minor flat layout -----
    m0 = meta[0]
    P0, H0, W0, C0 = m0.P, m0.Hin, m0.Win, m0.Cin
    buf0 = bufs[0]
    top_rows = (1 + P0) * WF                       # front guard + top halo
    buf0[0:top_rows, :] = jnp.zeros((top_rows, CB), act_dtype)
    bot_start = (1 + P0 + H0) * WF                 # bottom halo + back guard
    buf0[bot_start:bot_start + top_rows, :] = jnp.zeros((top_rows, CB), act_dtype)
    for r in range(H0):                            # static loop over rows
        row0 = (1 + P0 + r) * WF
        xr = x_ref[0, :, r * W0:(r + 1) * W0]      # (C0, W0) lane slice
        buf0[row0:row0 + W0, 0:C0] = jnp.transpose(xr, (1, 0))   # XLU 2-D xpose
        if WF > W0:                                # zero the tail columns
            buf0[row0 + W0:row0 + WF, :] = jnp.zeros((WF - W0, CB), act_dtype)

    # ---- fused conv stack ----------------------------------------------------
    src = 0
    for l, m in enumerate(meta):
        last = (l == L - 1)
        w_ref, b_ref = w_refs[l], b_refs[l]
        src_buf = bufs[src]
        K, P, Cin, Cout = m.K, m.P, m.Cin, m.Cout
        Hout, Wout = m.Hout, m.Wout
        bias_row = b_ref[...]                      # (1, Cout) f32

        # Row-block size: M = HR*WF rows per matmul, sized so the f32 acc plus
        # the hoisted (M+16, Cin) window fit comfortably in the 64-vreg file.
        gi, go = _cdiv(Cin, 128), _cdiv(Cout, 128)
        HR = max(1, min(Hout, (320 // (gi + go)) // WF))
        M = HR * WF
        NB = _cdiv(Hout, HR)

        if not last:
            mn = meta[l + 1]
            dst_buf = bufs[1 - src]
            Pn = mn.P
            # zero only the destination FRAME rows (guards + halos)
            tn = (1 + Pn) * WF
            dst_buf[0:tn, :] = jnp.zeros((tn, CB), act_dtype)
            bn = (1 + Pn + mn.Hin) * WF
            dst_buf[bn:bn + tn, :] = jnp.zeros((tn, CB), act_dtype)
            # column-keep mask: zeroes cols >= Wout of every stored row, which
            # also provides the next layer's right halo / wrap zeros.
            col = lax.broadcasted_iota(jnp.int32, (M, 1), 0) % WF
            keep = col < Wout

        def compute_block(h0, base):
            acc = None
            for kh in range(K):
                # one 8-aligned window per kh; the kw shifts are static
                # in-vreg slices of it (K loads instead of K^2 per block).
                win_start = base + (kh + 1) * WF - 8
                window = src_buf[pl.ds(win_start, M + 16), 0:Cin]
                for kw in range(K):
                    off = 8 + kw - P               # static, 0 <= off <= 15
                    patch = window[off:off + M, :]
                    part = jnp.dot(patch, w_ref[kh, kw],
                                   preferred_element_type=jnp.float32)
                    acc = part if acc is None else acc + part
            av = acc + bias_row                    # bias folded into epilogue
            if last:
                tile = av.reshape(HR, WF, Cout)[:, 0:Wout, :]
                o_ref[0, pl.ds(h0, HR), :, :] = tile.astype(o_ref.dtype)
            else:
                stv = jnp.where(keep, av, 0.0).astype(act_dtype)
                dst_buf[pl.ds(base + (1 + Pn) * WF, M), 0:Cout] = stv

        if NB == 1:
            compute_block(0, 0)                    # fully static path
        else:
            @pl.loop(0, NB)
            def _(i):
                # clamp so every block is full HR rows (tail block overlaps)
                h0 = jnp.minimum(i * HR, Hout - HR)
                base = pl.multiple_of(h0 * WF, 8)  # WF % 8 == 0
                compute_block(h0, base)

        if not last:
            src = 1 - src


# ----------------------------------------------------------------------------
# Wrapper: static per-layer metadata, specs and VMEM plan
# ----------------------------------------------------------------------------
def _tile_bytes(shape, dt):
    s = list(shape)
    s[-1] = _round_up(s[-1], 128)
    if len(s) >= 2:
        s[-2] = _round_up(s[-2], 8)
    n = 1
    for d in s:
        n *= d
    return n * jnp.dtype(dt).itemsize


def simple_head_forward(x_nchw, params):
    """Fused forward of the whole conv stack.  x_nchw: (N, C, H, W) -> NCHW out."""
    N, C, H, W = x_nchw.shape
    dtype = x_nchw.dtype
    # Free reshape (no data movement): the NCHW->channel-minor relayout happens
    # on-chip in the kernel, so there is no XLA transpose / extra HBM round trip.
    x_r = x_nchw.reshape(N, C, H * W)

    metas = []
    flat_inputs = [x_r]
    in_specs = [pl.BlockSpec((1, C, H * W), lambda n: (n, 0, 0))]
    Hin, Win, Cin = H, W, C
    for (w_hwio, bias) in params:
        KH, KW, wci, Cout = w_hwio.shape
        assert KH == KW and wci == Cin and KH <= 8
        K, P = KH, KH // 2
        # correct for both odd and even k (even k grows the output by 1)
        Hout = Hin + 2 * P - K + 1
        Wout = Win + 2 * P - K + 1
        flat_inputs += [w_hwio.astype(dtype),
                        bias.astype(jnp.float32).reshape(1, Cout)]
        # Weights/bias are tiny and fetched once per grid step (constant index).
        in_specs += [pl.BlockSpec((K, K, Cin, Cout), lambda n: (0, 0, 0, 0)),
                     pl.BlockSpec((1, Cout), lambda n: (0, 0))]
        metas.append(_LayerMeta(Hin, Win, Cin, Hout, Wout, Cout, K, P))
        Hin, Win, Cin = Hout, Wout, Cout
    HL, WL, CL = Hin, Win, Cin
    metas = tuple(metas)

    # shared flat row width (sublane multiple) and ping-pong buffer size
    WF = _round_up(max(m.Win + 2 * m.P for m in metas), 8)
    CB = max(m.Cin for m in metas)
    ROWS = max((m.Hin + 2 * m.P + 2) * WF for m in metas)   # +guard rows
    scratch_shapes = [pltpu.VMEM((ROWS, CB), dtype),
                      pltpu.VMEM((ROWS, CB), dtype)]

    # explicit VMEM budget: double-buffered blocks + params + scratch + headroom
    est = 2 * _tile_bytes((1, C, H * W), dtype)
    est += 2 * _tile_bytes((1, HL, WL, CL), dtype)
    for m in metas:
        est += 2 * (_tile_bytes((m.K, m.K, m.Cin, m.Cout), dtype)
                    + _tile_bytes((1, m.Cout), jnp.float32))
    est += 2 * _tile_bytes((ROWS, CB), dtype)
    vmem_limit = min(max(int(est) + (8 << 20), 32 << 20), 100 << 20)

    out_nhwc = pl.pallas_call(
        functools.partial(_fused_head_kernel, meta=metas, WF=WF, CB=CB),
        out_shape=jax.ShapeDtypeStruct((N, HL, WL, CL), dtype),
        grid=(N,),
        in_specs=in_specs,
        out_specs=pl.BlockSpec((1, HL, WL, CL), lambda n: (n, 0, 0, 0)),
        scratch_shapes=scratch_shapes,
        compiler_params=pltpu.CompilerParams(
            dimension_semantics=("parallel",),
            vmem_limit_bytes=vmem_limit),
    )(*flat_inputs)
    # Output is small (num_joints channels): this transpose is cheap.
    return jnp.transpose(out_nhwc, (0, 3, 1, 2))


# ----------------------------------------------------------------------------
# SimpleSkeletonHead (forward only)
# ----------------------------------------------------------------------------
class SimpleSkeletonHead:
    def __init__(self, num_convs, in_channels, embed_channels=None,
                 kernel_size=None, num_joints=None, key=None):
        self.num_convs = num_convs
        self.in_channels = in_channels
        self.embed_channels = embed_channels
        self.kernel_size = kernel_size
        self.num_joints = num_joints
        self.params = self._make_layers(key)

    def _make_layers(self, key):
        params = []
        in_channels = self.in_channels
        for i in range(self.num_convs):
            if i < self.num_convs - 1:
                if isinstance(self.embed_channels, list):
                    out_channels = self.embed_channels[i]
                else:
                    out_channels = self.embed_channels
            else:
                out_channels = self.num_joints
            k = (self.kernel_size[i] if isinstance(self.kernel_size, list)
                 else self.kernel_size)
            key, wk = jax.random.split(key)
            # matches init_weights(): weight ~ N(0, 0.001), bias = 0
            # PyTorch Conv2d weight is (Cout, Cin, KH, KW); store HWIO.
            w_oihw = 0.001 * jax.random.normal(
                wk, (out_channels, in_channels, k, k), dtype=jnp.float32)
            w_hwio = jnp.transpose(w_oihw, (2, 3, 1, 0))
            b = jnp.zeros((out_channels,), jnp.float32)
            params.append((w_hwio, b))
            in_channels = out_channels
        return params

    def forward(self, x):
        # x is a list/tuple of feature maps (NCHW); only x[0] is used.
        return simple_head_forward(x[0], self.params)


# ----------------------------------------------------------------------------
# Pure-JAX reference + test harness
# ----------------------------------------------------------------------------
def _reference_forward(head, x):
    h = x[0]  # NCHW
    for (w_hwio, b) in head.params:
        w_oihw = jnp.transpose(w_hwio, (3, 2, 0, 1))
        k = w_hwio.shape[0]
        p = k // 2
        h = jax.lax.conv_general_dilated(
            h, w_oihw, window_strides=(1, 1), padding=((p, p), (p, p)),
            dimension_numbers=("NCHW", "OIHW", "NCHW"),
            precision=jax.lax.Precision.HIGHEST)
        h = h + b[None, :, None, None]
    return h


def _randomize_params(params, key, scale=0.3):
    # test-only: re-draw params at O(1) scale (incl. non-zero bias) so the
    # numerical check is meaningful; init_weights' std=0.001 / bias=0 makes
    # every output ~1e-6 and any comparison vacuous.
    new = []
    for (w, b) in params:
        key, k1, k2 = jax.random.split(key, 3)
        new.append((scale * jax.random.normal(k1, w.shape, w.dtype),
                    scale * jax.random.normal(k2, b.shape, b.dtype)))
    return new


def _check_close(out, ref, rel=2e-2):
    # NOTE: default-precision MXU matmuls use bf16 passes for f32 operands, so
    # a loose relative tolerance vs. the HIGHEST-precision reference is used.
    err = float(jnp.max(jnp.abs(out - ref)))
    scale = float(jnp.max(jnp.abs(ref))) + 1e-12
    assert err <= rel * scale, (err, scale)


if __name__ == "__main__":
    key = jax.random.PRNGKey(0)

    # ---- config 1: standard head (2 convs, k=3) ------------------------------
    key, xk, pk, rk = jax.random.split(key, 4)
    N, C, H, W = 2, 4, 16, 16
    x0 = jax.random.normal(xk, (N, C, H, W), dtype=jnp.float32)
    head = SimpleSkeletonHead(num_convs=2, in_channels=C, embed_channels=8,
                              kernel_size=3, num_joints=6, key=pk)
    head.params = _randomize_params(head.params, rk)

    out = jax.block_until_ready(head.forward([x0]))
    ref = jax.block_until_ready(_reference_forward(head, [x0]))
    assert out.shape == (N, 6, H, W), out.shape
    _check_close(out, ref)

    # ---- config 2: mixed kernel sizes (incl. even k=4 and 1x1), 3 convs ------
    key, xk2, pk2, rk2 = jax.random.split(key, 4)
    N2, C2, H2, W2 = 2, 4, 8, 8
    x2 = jax.random.normal(xk2, (N2, C2, H2, W2), dtype=jnp.float32)
    head2 = SimpleSkeletonHead(num_convs=3, in_channels=C2,
                               embed_channels=[8, 12], kernel_size=[3, 4, 1],
                               num_joints=5, key=pk2)
    head2.params = _randomize_params(head2.params, rk2)

    out2 = jax.block_until_ready(head2.forward([x2]))
    ref2 = jax.block_until_ready(_reference_forward(head2, [x2]))
    assert out2.shape == (N2, 5, H2 + 1, W2 + 1), out2.shape  # even k grows H, W
    _check_close(out2, ref2)

    print("KERNEL_OK")
</pallas_src>

<mosaic_0001>
module attributes {stable_mosaic.version = 11 : i64} {
  func.func @_fused_head_kernel(%arg0: i32, %arg1: memref<1x4x256xf32, #tpu.memory_space<vmem>>, %arg2: memref<3x3x4x8xf32, #tpu.memory_space<vmem>>, %arg3: memref<1x8xf32, #tpu.memory_space<vmem>>, %arg4: memref<3x3x8x6xf32, #tpu.memory_space<vmem>>, %arg5: memref<1x6xf32, #tpu.memory_space<vmem>>, %arg6: memref<1x16x16x6xf32, #tpu.memory_space<vmem>>, %arg7: memref<480x8xf32, #tpu.memory_space<vmem>>, %arg8: memref<480x8xf32, #tpu.memory_space<vmem>>) attributes {dimension_semantics = [#tpu.dimension_semantics<parallel>], iteration_bounds = array<i64: 2>, scalar_prefetch = 0 : i64, scratch_operands = 2 : i64, tpu.core_type = #tpu.core_type<tc>, window_params = [{transform_indices = @transform_0, window_bounds = array<i64: 1, 4, 256>}, {pipeline_mode = #tpu.pipeline_mode<synchronous>, transform_indices = @transform_1, window_bounds = array<i64: 3, 3, 4, 8>}, {pipeline_mode = #tpu.pipeline_mode<synchronous>, transform_indices = @transform_2, window_bounds = array<i64: 1, 8>}, {pipeline_mode = #tpu.pipeline_mode<synchronous>, transform_indices = @transform_3, window_bounds = array<i64: 3, 3, 8, 6>}, {pipeline_mode = #tpu.pipeline_mode<synchronous>, transform_indices = @transform_4, window_bounds = array<i64: 1, 6>}, {transform_indices = @transform_5, window_bounds = array<i64: 1, 16, 16, 6>}]} {
    %cst = arith.constant 0.000000e+00 : f32
    %0 = vector.broadcast %cst : f32 to vector<48x8xf32>
    %c0 = arith.constant 0 : index
    %c0_0 = arith.constant 0 : index
    %1 = vector.load %arg7[%c0, %c0_0] : memref<480x8xf32, #tpu.memory_space<vmem>>, vector<48x8xf32>
    tpu.vector_store %arg7[%c0, %c0_0], %0 {strides = array<i32>} : memref<480x8xf32, #tpu.memory_space<vmem>>, vector<48x8xf32>,
    %cst_1 = arith.constant 0.000000e+00 : f32
    %2 = vector.broadcast %cst_1 : f32 to vector<48x8xf32>
    %c432 = arith.constant 432 : index
    %c0_2 = arith.constant 0 : index
    %3 = vector.load %arg7[%c432, %c0_2] : memref<480x8xf32, #tpu.memory_space<vmem>>, vector<48x8xf32>
    tpu.vector_store %arg7[%c432, %c0_2], %2 {strides = array<i32>} : memref<480x8xf32, #tpu.memory_space<vmem>>, vector<48x8xf32>,
    %c0_3 = arith.constant 0 : index
    %c0_4 = arith.constant 0 : index
    %c0_5 = arith.constant 0 : index
    %4 = vector.load %arg1[%c0_3, %c0_4, %c0_5] : memref<1x4x256xf32, #tpu.memory_space<vmem>>, vector<1x4x16xf32>
    %5 = vector.shape_cast %4 : vector<1x4x16xf32> to vector<4x16xf32>
    %6 = tpu.transpose %5, [1, 0] : vector<4x16xf32> -> vector<16x4xf32>
    %c48 = arith.constant 48 : index
    %c0_6 = arith.constant 0 : index
    %7 = vector.load %arg7[%c48, %c0_6] : memref<480x8xf32, #tpu.memory_space<vmem>>, vector<16x4xf32>
    tpu.vector_store %arg7[%c48, %c0_6], %6 {strides = array<i32>} : memref<480x8xf32, #tpu.memory_space<vmem>>, vector<16x4xf32>,
    %cst_7 = arith.constant 0.000000e+00 : f32
    %8 = vector.broadcast %cst_7 : f32 to vector<8x8xf32>
    %c64 = arith.constant 64 : index
    %c0_8 = arith.constant 0 : index
    %9 = vector.load %arg7[%c64, %c0_8] : memref<480x8xf32, #tpu.memory_space<vmem>>, vector<8x8xf32>
    tpu.vector_store %arg7[%c64, %c0_8], %8 {strides = array<i32>} : memref<480x8xf32, #tpu.memory_space<vmem>>, vector<8x8xf32>,
    %c0_9 = arith.constant 0 : index
    %c0_10 = arith.constant 0 : index
    %c16 = arith.constant 16 : index
    %10 = vector.load %arg1[%c0_9, %c0_10, %c16] : memref<1x4x256xf32, #tpu.memory_space<vmem>>, vector<1x4x16xf32>
    %11 = vector.shape_cast %10 : vector<1x4x16xf32> to vector<4x16xf32>
    %12 = tpu.transpose %11, [1, 0] : vector<4x16xf32> -> vector<16x4xf32>
    %c72 = arith.constant 72 : index
    %c0_11 = arith.constant 0 : index
    %13 = vector.load %arg7[%c72, %c0_11] : memref<480x8xf32, #tpu.memory_space<vmem>>, vector<16x4xf32>
    tpu.vector_store %arg7[%c72, %c0_11], %12 {strides = array<i32>} : memref<480x8xf32, #tpu.memory_space<vmem>>, vector<16x4xf32>,
    %cst_12 = arith.constant 0.000000e+00 : f32
    %14 = vector.broadcast %cst_12 : f32 to vector<8x8xf32>
    %c88 = arith.constant 88 : index
    %c0_13 = arith.constant 0 : index
    %15 = vector.load %arg7[%c88, %c0_13] : memref<480x8xf32, #tpu.memory_space<vmem>>, vector<8x8xf32>
    tpu.vector_store %arg7[%c88, %c0_13], %14 {strides = array<i32>} : memref<480x8xf32, #tpu.memory_space<vmem>>, vector<8x8xf32>,
    %c0_14 = arith.constant 0 : index
    %c0_15 = arith.constant 0 : index
    %c32 = arith.constant 32 : index
    %16 = vector.load %arg1[%c0_14, %c0_15, %c32] : memref<1x4x256xf32, #tpu.memory_space<vmem>>, vector<1x4x16xf32>
    %17 = vector.shape_cast %16 : vector<1x4x16xf32> to vector<4x16xf32>
    %18 = tpu.transpose %17, [1, 0] : vector<4x16xf32> -> vector<16x4xf32>
    %c96 = arith.constant 96 : index
    %c0_16 = arith.constant 0 : index
    %19 = vector.load %arg7[%c96, %c0_16] : memref<480x8xf32, #tpu.memory_space<vmem>>, vector<16x4xf32>
    tpu.vector_store %arg7[%c96, %c0_16], %18 {strides = array<i32>} : memref<480x8xf32, #tpu.memory_space<vmem>>, vector<16x4xf32>,
    %cst_17 = arith.constant 0.000000e+00 : f32
    %20 = vector.broadcast %cst_17 : f32 to vector<8x8xf32>
    %c112 = arith.constant 112 : index
    %c0_18 = arith.constant 0 : index
    %21 = vector.load %arg7[%c112, %c0_18] : memref<480x8xf32, #tpu.memory_space<vmem>>, vector<8x8xf32>
    tpu.vector_store %arg7[%c112, %c0_18], %20 {strides = array<i32>} : memref<480x8xf32, #tpu.memory_space<vmem>>, vector<8x8xf32>,
    %c0_19 = arith.constant 0 : index
    %c0_20 = arith.constant 0 : index
    %c48_21 = arith.constant 48 : index
    %22 = vector.load %arg1[%c0_19, %c0_20, %c48_21] : memref<1x4x256xf32, #tpu.memory_space<vmem>>, vector<1x4x16xf32>
    %23 = vector.shape_cast %22 : vector<1x4x16xf32> to vector<4x16xf32>
    %24 = tpu.transpose %23, [1, 0] : vector<4x16xf32> -> vector<16x4xf32>
    %c120 = arith.constant 120 : index
    %c0_22 = arith.constant 0 : index
    %25 = vector.load %arg7[%c120, %c0_22] : memref<480x8xf32, #tpu.memory_space<vmem>>, vector<16x4xf32>
    tpu.vector_store %arg7[%c120, %c0_22], %24 {strides = array<i32>} : memref<480x8xf32, #tpu.memory_space<vmem>>, vector<16x4xf32>,
    %cst_23 = arith.constant 0.000000e+00 : f32
    %26 = vector.broadcast %cst_23 : f32 to vector<8x8xf32>
    %c136 = arith.constant 136 : index
    %c0_24 = arith.constant 0 : index
    %27 = vector.load %arg7[%c136, %c0_24] : memref<480x8xf32, #tpu.memory_space<vmem>>, vector<8x8xf32>
    tpu.vector_store %arg7[%c136, %c0_24], %26 {strides = array<i32>} : memref<480x8xf32, #tpu.memory_space<vmem>>, vector<8x8xf32>,
    %c0_25 = arith.constant 0 : index
    %c0_26 = arith.constant 0 : index
    %c64_27 = arith.constant 64 : index
    %28 = vector.load %arg1[%c0_25, %c0_26, %c64_27] : memref<1x4x256xf32, #tpu.memory_space<vmem>>, vector<1x4x16xf32>
    %29 = vector.shape_cast %28 : vector<1x4x16xf32> to vector<4x16xf32>
    %30 = tpu.transpose %29, [1, 0] : vector<4x16xf32> -> vector<16x4xf32>
    %c144 = arith.constant 144 : index
    %c0_28 = arith.constant 0 : index
    %31 = vector.load %arg7[%c144, %c0_28] : memref<480x8xf32, #tpu.memory_space<vmem>>, vector<16x4xf32>
    tpu.vector_store %arg7[%c144, %c0_28], %30 {strides = array<i32>} : memref<480x8xf32, #tpu.memory_space<vmem>>, vector<16x4xf32>,
    %cst_29 = arith.constant 0.000000e+00 : f32
    %32 = vector.broadcast %cst_29 : f32 to vector<8x8xf32>
    %c160 = arith.constant 160 : index
    %c0_30 = arith.constant 0 : index
    %33 = vector.load %arg7[%c160, %c0_30] : memref<480x8xf32, #tpu.memory_space<vmem>>, vector<8x8xf32>
    tpu.vector_store %arg7[%c160, %c0_30], %32 {strides = array<i32>} : memref<480x8xf32, #tpu.memory_space<vmem>>, vector<8x8xf32>,
    %c0_31 = arith.constant 0 : index
    %c0_32 = arith.constant 0 : index
    %c80 = arith.constant 80 : index
    %34 = vector.load %arg1[%c0_31, %c0_32, %c80] : memref<1x4x256xf32, #tpu.memory_space<vmem>>, vector<1x4x16xf32>
    %35 = vector.shape_cast %34 : vector<1x4x16xf32> to vector<4x16xf32>
    %36 = tpu.transpose %35, [1, 0] : vector<4x16xf32> -> vector<16x4xf32>
    %c168 = arith.constant 168 : index
    %c0_33 = arith.constant 0 : index
    %37 = vector.load %arg7[%c168, %c0_33] : memref<480x8xf32, #tpu.memory_space<vmem>>, vector<16x4xf32>
    tpu.vector_store %arg7[%c168, %c0_33], %36 {strides = array<i32>} : memref<480x8xf32, #tpu.memory_space<vmem>>, vector<16x4xf32>,
    %cst_34 = arith.constant 0.000000e+00 : f32
    %38 = vector.broadcast %cst_34 : f32 to vector<8x8xf32>
    %c184 = arith.constant 184 : index
    %c0_35 = arith.constant 0 : index
    %39 = vector.load %arg7[%c184, %c0_35] : memref<480x8xf32, #tpu.memory_space<vmem>>, vector<8x8xf32>
    tpu.vector_store %arg7[%c184, %c0_35], %38 {strides = array<i32>} : memref<480x8xf32, #tpu.memory_space<vmem>>, vector<8x8xf32>,
    %c0_36 = arith.constant 0 : index
    %c0_37 = arith.constant 0 : index
    %c96_38 = arith.constant 96 : index
    %40 = vector.load %arg1[%c0_36, %c0_37, %c96_38] : memref<1x4x256xf32, #tpu.memory_space<vmem>>, vector<1x4x16xf32>
    %41 = vector.shape_cast %40 : vector<1x4x16xf32> to vector<4x16xf32>
    %42 = tpu.transpose %41, [1, 0] : vector<4x16xf32> -> vector<16x4xf32>
    %c192 = arith.constant 192 : index
    %c0_39 = arith.constant 0 : index
    %43 = vector.load %arg7[%c192, %c0_39] : memref<480x8xf32, #tpu.memory_space<vmem>>, vector<16x4xf32>
    tpu.vector_store %arg7[%c192, %c0_39], %42 {strides = array<i32>} : memref<480x8xf32, #tpu.memory_space<vmem>>, vector<16x4xf32>,
    %cst_40 = arith.constant 0.000000e+00 : f32
    %44 = vector.broadcast %cst_40 : f32 to vector<8x8xf32>
    %c208 = arith.constant 208 : index
    %c0_41 = arith.constant 0 : index
    %45 = vector.load %arg7[%c208, %c0_41] : memref<480x8xf32, #tpu.memory_space<vmem>>, vector<8x8xf32>
    tpu.vector_store %arg7[%c208, %c0_41], %44 {strides = array<i32>} : memref<480x8xf32, #tpu.memory_space<vmem>>, vector<8x8xf32>,
    %c0_42 = arith.constant 0 : index
    %c0_43 = arith.constant 0 : index
    %c112_44 = arith.constant 112 : index
    %46 = vector.load %arg1[%c0_42, %c0_43, %c112_44] : memref<1x4x256xf32, #tpu.memory_space<vmem>>, vector<1x4x16xf32>
    %47 = vector.shape_cast %46 : vector<1x4x16xf32> to vector<4x16xf32>
    %48 = tpu.transpose %47, [1, 0] : vector<4x16xf32> -> vector<16x4xf32>
    %c216 = arith.constant 216 : index
    %c0_45 = arith.constant 0 : index
    %49 = vector.load %arg7[%c216, %c0_45] : memref<480x8xf32, #tpu.memory_space<vmem>>, vector<16x4xf32>
    tpu.vector_store %arg7[%c216, %c0_45], %48 {strides = array<i32>} : memref<480x8xf32, #tpu.memory_space<vmem>>, vector<16x4xf32>,
    %cst_46 = arith.constant 0.000000e+00 : f32
    %50 = vector.broadcast %cst_46 : f32 to vector<8x8xf32>
    %c232 = arith.constant 232 : index
    %c0_47 = arith.constant 0 : index
    %51 = vector.load %arg7[%c232, %c0_47] : memref<480x8xf32, #tpu.memory_space<vmem>>, vector<8x8xf32>
    tpu.vector_store %arg7[%c232, %c0_47], %50 {strides = array<i32>} : memref<480x8xf32, #tpu.memory_space<vmem>>, vector<8x8xf32>,
    %c0_48 = arith.constant 0 : index
    %c0_49 = arith.constant 0 : index
    %c128 = arith.constant 128 : index
    %52 = vector.load %arg1[%c0_48, %c0_49, %c128] : memref<1x4x256xf32, #tpu.memory_space<vmem>>, vector<1x4x16xf32>
    %53 = vector.shape_cast %52 : vector<1x4x16xf32> to vector<4x16xf32>
    %54 = tpu.transpose %53, [1, 0] : vector<4x16xf32> -> vector<16x4xf32>
    %c240 = arith.constant 240 : index
    %c0_50 = arith.constant 0 : index
    %55 = vector.load %arg7[%c240, %c0_50] : memref<480x8xf32, #tpu.memory_space<vmem>>, vector<16x4xf32>
    tpu.vector_store %arg7[%c240, %c0_50], %54 {strides = array<i32>} : memref<480x8xf32, #tpu.memory_space<vmem>>, vector<16x4xf32>,
    %cst_51 = arith.constant 0.000000e+00 : f32
    %56 = vector.broadcast %cst_51 : f32 to vector<8x8xf32>
    %c256 = arith.constant 256 : index
    %c0_52 = arith.constant 0 : index
    %57 = vector.load %arg7[%c256, %c0_52] : memref<480x8xf32, #tpu.memory_space<vmem>>, vector<8x8xf32>
    tpu.vector_store %arg7[%c256, %c0_52], %56 {strides = array<i32>} : memref<480x8xf32, #tpu.memory_space<vmem>>, vector<8x8xf32>,
    %c0_53 = arith.constant 0 : index
    %c0_54 = arith.constant 0 : index
    %c144_55 = arith.constant 144 : index
    %58 = vector.load %arg1[%c0_53, %c0_54, %c144_55] : memref<1x4x256xf32, #tpu.memory_space<vmem>>, vector<1x4x16xf32>
    %59 = vector.shape_cast %58 : vector<1x4x16xf32> to vector<4x16xf32>
    %60 = tpu.transpose %59, [1, 0] : vector<4x16xf32> -> vector<16x4xf32>
    %c264 = arith.constant 264 : index
    %c0_56 = arith.constant 0 : index
    %61 = vector.load %arg7[%c264, %c0_56] : memref<480x8xf32, #tpu.memory_space<vmem>>, vector<16x4xf32>
    tpu.vector_store %arg7[%c264, %c0_56], %60 {strides = array<i32>} : memref<480x8xf32, #tpu.memory_space<vmem>>, vector<16x4xf32>,
    %cst_57 = arith.constant 0.000000e+00 : f32
    %62 = vector.broadcast %cst_57 : f32 to vector<8x8xf32>
    %c280 = arith.constant 280 : index
    %c0_58 = arith.constant 0 : index
    %63 = vector.load %arg7[%c280, %c0_58] : memref<480x8xf32, #tpu.memory_space<vmem>>, vector<8x8xf32>
    tpu.vector_store %arg7[%c280, %c0_58], %62 {strides = array<i32>} : memref<480x8xf32, #tpu.memory_space<vmem>>, vector<8x8xf32>,
    %c0_59 = arith.constant 0 : index
    %c0_60 = arith.constant 0 : index
    %c160_61 = arith.constant 160 : index
    %64 = vector.load %arg1[%c0_59, %c0_60, %c160_61] : memref<1x4x256xf32, #tpu.memory_space<vmem>>, vector<1x4x16xf32>
    %65 = vector.shape_cast %64 : vector<1x4x16xf32> to vector<4x16xf32>
    %66 = tpu.transpose %65, [1, 0] : vector<4x16xf32> -> vector<16x4xf32>
    %c288 = arith.constant 288 : index
    %c0_62 = arith.constant 0 : index
    %67 = vector.load %arg7[%c288, %c0_62] : memref<480x8xf32, #tpu.memory_space<vmem>>, vector<16x4xf32>
    tpu.vector_store %arg7[%c288, %c0_62], %66 {strides = array<i32>} : memref<480x8xf32, #tpu.memory_space<vmem>>, vector<16x4xf32>,
    %cst_63 = arith.constant 0.000000e+00 : f32
    %68 = vector.broadcast %cst_63 : f32 to vector<8x8xf32>
    %c304 = arith.constant 304 : index
    %c0_64 = arith.constant 0 : index
    %69 = vector.load %arg7[%c304, %c0_64] : memref<480x8xf32, #tpu.memory_space<vmem>>, vector<8x8xf32>
    tpu.vector_store %arg7[%c304, %c0_64], %68 {strides = array<i32>} : memref<480x8xf32, #tpu.memory_space<vmem>>, vector<8x8xf32>,
    %c0_65 = arith.constant 0 : index
    %c0_66 = arith.constant 0 : index
    %c176 = arith.constant 176 : index
    %70 = vector.load %arg1[%c0_65, %c0_66, %c176] : memref<1x4x256xf32, #tpu.memory_space<vmem>>, vector<1x4x16xf32>
    %71 = vector.shape_cast %70 : vector<1x4x16xf32> to vector<4x16xf32>
    %72 = tpu.transpose %71, [1, 0] : vector<4x16xf32> -> vector<16x4xf32>
    %c312 = arith.constant 312 : index
    %c0_67 = arith.constant 0 : index
    %73 = vector.load %arg7[%c312, %c0_67] : memref<480x8xf32, #tpu.memory_space<vmem>>, vector<16x4xf32>
    tpu.vector_store %arg7[%c312, %c0_67], %72 {strides = array<i32>} : memref<480x8xf32, #tpu.memory_space<vmem>>, vector<16x4xf32>,
    %cst_68 = arith.constant 0.000000e+00 : f32
    %74 = vector.broadcast %cst_68 : f32 to vector<8x8xf32>
    %c328 = arith.constant 328 : index
    %c0_69 = arith.constant 0 : index
    %75 = vector.load %arg7[%c328, %c0_69] : memref<480x8xf32, #tpu.memory_space<vmem>>, vector<8x8xf32>
    tpu.vector_store %arg7[%c328, %c0_69], %74 {strides = array<i32>} : memref<480x8xf32, #tpu.memory_space<vmem>>, vector<8x8xf32>,
    %c0_70 = arith.constant 0 : index
    %c0_71 = arith.constant 0 : index
    %c192_72 = arith.constant 192 : index
    %76 = vector.load %arg1[%c0_70, %c0_71, %c192_72] : memref<1x4x256xf32, #tpu.memory_space<vmem>>, vector<1x4x16xf32>
    %77 = vector.shape_cast %76 : vector<1x4x16xf32> to vector<4x16xf32>
    %78 = tpu.transpose %77, [1, 0] : vector<4x16xf32> -> vector<16x4xf32>
    %c336 = arith.constant 336 : index
    %c0_73 = arith.constant 0 : index
    %79 = vector.load %arg7[%c336, %c0_73] : memref<480x8xf32, #tpu.memory_space<vmem>>, vector<16x4xf32>
    tpu.vector_store %arg7[%c336, %c0_73], %78 {strides = array<i32>} : memref<480x8xf32, #tpu.memory_space<vmem>>, vector<16x4xf32>,
    %cst_74 = arith.constant 0.000000e+00 : f32
    %80 = vector.broadcast %cst_74 : f32 to vector<8x8xf32>
    %c352 = arith.constant 352 : index
    %c0_75 = arith.constant 0 : index
    %81 = vector.load %arg7[%c352, %c0_75] : memref<480x8xf32, #tpu.memory_space<vmem>>, vector<8x8xf32>
    tpu.vector_store %arg7[%c352, %c0_75], %80 {strides = array<i32>} : memref<480x8xf32, #tpu.memory_space<vmem>>, vector<8x8xf32>,
    %c0_76 = arith.constant 0 : index
    %c0_77 = arith.constant 0 : index
    %c208_78 = arith.constant 208 : index
    %82 = vector.load %arg1[%c0_76, %c0_77, %c208_78] : memref<1x4x256xf32, #tpu.memory_space<vmem>>, vector<1x4x16xf32>
    %83 = vector.shape_cast %82 : vector<1x4x16xf32> to vector<4x16xf32>
    %84 = tpu.transpose %83, [1, 0] : vector<4x16xf32> -> vector<16x4xf32>
    %c360 = arith.constant 360 : index
    %c0_79 = arith.constant 0 : index
    %85 = vector.load %arg7[%c360, %c0_79] : memref<480x8xf32, #tpu.memory_space<vmem>>, vector<16x4xf32>
    tpu.vector_store %arg7[%c360, %c0_79], %84 {strides = array<i32>} : memref<480x8xf32, #tpu.memory_space<vmem>>, vector<16x4xf32>,
    %cst_80 = arith.constant 0.000000e+00 : f32
    %86 = vector.broadcast %cst_80 : f32 to vector<8x8xf32>
    %c376 = arith.constant 376 : index
    %c0_81 = arith.constant 0 : index
    %87 = vector.load %arg7[%c376, %c0_81] : memref<480x8xf32, #tpu.memory_space<vmem>>, vector<8x8xf32>
    tpu.vector_store %arg7[%c376, %c0_81], %86 {strides = array<i32>} : memref<480x8xf32, #tpu.memory_space<vmem>>, vector<8x8xf32>,
    %c0_82 = arith.constant 0 : index
    %c0_83 = arith.constant 0 : index
    %c224 = arith.constant 224 : index
    %88 = vector.load %arg1[%c0_82, %c0_83, %c224] : memref<1x4x256xf32, #tpu.memory_space<vmem>>, vector<1x4x16xf32>
    %89 = vector.shape_cast %88 : vector<1x4x16xf32> to vector<4x16xf32>
    %90 = tpu.transpose %89, [1, 0] : vector<4x16xf32> -> vector<16x4xf32>
    %c384 = arith.constant 384 : index
    %c0_84 = arith.constant 0 : index
    %91 = vector.load %arg7[%c384, %c0_84] : memref<480x8xf32, #tpu.memory_space<vmem>>, vector<16x4xf32>
    tpu.vector_store %arg7[%c384, %c0_84], %90 {strides = array<i32>} : memref<480x8xf32, #tpu.memory_space<vmem>>, vector<16x4xf32>,
    %cst_85 = arith.constant 0.000000e+00 : f32
    %92 = vector.broadcast %cst_85 : f32 to vector<8x8xf32>
    %c400 = arith.constant 400 : index
    %c0_86 = arith.constant 0 : index
    %93 = vector.load %arg7[%c400, %c0_86] : memref<480x8xf32, #tpu.memory_space<vmem>>, vector<8x8xf32>
    tpu.vector_store %arg7[%c400, %c0_86], %92 {strides = array<i32>} : memref<480x8xf32, #tpu.memory_space<vmem>>, vector<8x8xf32>,
    %c0_87 = arith.constant 0 : index
    %c0_88 = arith.constant 0 : index
    %c240_89 = arith.constant 240 : index
    %94 = vector.load %arg1[%c0_87, %c0_88, %c240_89] : memref<1x4x256xf32, #tpu.memory_space<vmem>>, vector<1x4x16xf32>
    %95 = vector.shape_cast %94 : vector<1x4x16xf32> to vector<4x16xf32>
    %96 = tpu.transpose %95, [1, 0] : vector<4x16xf32> -> vector<16x4xf32>
    %c408 = arith.constant 408 : index
    %c0_90 = arith.constant 0 : index
    %97 = vector.load %arg7[%c408, %c0_90] : memref<480x8xf32, #tpu.memory_space<vmem>>, vector<16x4xf32>
    tpu.vector_store %arg7[%c408, %c0_90], %96 {strides = array<i32>} : memref<480x8xf32, #tpu.memory_space<vmem>>, vector<16x4xf32>,
    %cst_91 = arith.constant 0.000000e+00 : f32
    %98 = vector.broadcast %cst_91 : f32 to vector<8x8xf32>
    %c424 = arith.constant 424 : index
    %c0_92 = arith.constant 0 : index
    %99 = vector.load %arg7[%c424, %c0_92] : memref<480x8xf32, #tpu.memory_space<vmem>>, vector<8x8xf32>
    tpu.vector_store %arg7[%c424, %c0_92], %98 {strides = array<i32>} : memref<480x8xf32, #tpu.memory_space<vmem>>, vector<8x8xf32>,
    %c0_93 = arith.constant 0 : index
    %c0_94 = arith.constant 0 : index
    %100 = vector.load %arg3[%c0_93, %c0_94] : memref<1x8xf32, #tpu.memory_space<vmem>>, vector<1x8xf32>
    %cst_95 = arith.constant 0.000000e+00 : f32
    %101 = vector.broadcast %cst_95 : f32 to vector<48x8xf32>
    %c0_96 = arith.constant 0 : index
    %c0_97 = arith.constant 0 : index
    %102 = vector.load %arg8[%c0_96, %c0_97] : memref<480x8xf32, #tpu.memory_space<vmem>>, vector<48x8xf32>
    tpu.vector_store %arg8[%c0_96, %c0_97], %101 {strides = array<i32>} : memref<480x8xf32, #tpu.memory_space<vmem>>, vector<48x8xf32>,
    %cst_98 = arith.constant 0.000000e+00 : f32
    %103 = vector.broadcast %cst_98 : f32 to vector<48x8xf32>
    %c432_99 = arith.constant 432 : index
    %c0_100 = arith.constant 0 : index
    %104 = vector.load %arg8[%c432_99, %c0_100] : memref<480x8xf32, #tpu.memory_space<vmem>>, vector<48x8xf32>
    tpu.vector_store %arg8[%c432_99, %c0_100], %103 {strides = array<i32>} : memref<480x8xf32, #tpu.memory_space<vmem>>, vector<48x8xf32>,
    %105 = tpu.iota {dimensions = array<i32: 0>} : vector<144x1xi32>
    %c24_i32 = arith.constant 24 : i32
    %c0_i32 = arith.constant 0 : i32
    %106 = arith.cmpi eq, %c24_i32, %c0_i32 : i32
    %c1_i32 = arith.constant 1 : i32
    %107 = arith.select %106, %c1_i32, %c24_i32 : i32
    %108 = vector.broadcast %107 : i32 to vector<144x1xi32>
    %109 = arith.remsi %105, %108 : vector<144x1xi32>
    %c0_i32_101 = arith.constant 0 : i32
    %110 = vector.broadcast %c0_i32_101 : i32 to vector<144x1xi32>
    %111 = arith.cmpi ne, %109, %110 : vector<144x1xi32>
    %c0_i32_102 = arith.constant 0 : i32
    %112 = vector.broadcast %c0_i32_102 : i32 to vector<144x1xi32>
    %113 = arith.cmpi slt, %109, %112 : vector<144x1xi32>
    %c0_i32_103 = arith.constant 0 : i32
    %114 = arith.cmpi slt, %107, %c0_i32_103 : i32
    %115 = vector.broadcast %114 : i1 to vector<144x1xi1>
    %116 = vector.broadcast %115 : vector<144x1xi1> to vector<144x1xi1>
    %117 = arith.xori %113, %116 : vector<144x1xi1>
    %118 = arith.andi %117, %111 : vector<144x1xi1>
    %119 = vector.broadcast %107 : i32 to vector<144x1xi32>
    %120 = arith.addi %109, %119 : vector<144x1xi32>
    %121 = arith.select %118, %120, %109 : vector<144x1xi1>, vector<144x1xi32>
    %c16_i32 = arith.constant 16 : i32
    %122 = vector.broadcast %c16_i32 : i32 to vector<144x1xi32>
    %123 = arith.cmpi slt, %121, %122 : vector<144x1xi32>
    %c0_i32_104 = arith.constant 0 : i32
    %c3_i32 = arith.constant 3 : i32
    %124 = arith.addi %c0_i32_104, %c3_i32 : i32
    %c1_i32_105 = arith.constant 1 : i32
    scf.for %arg9 = %c0_i32_104 to %124 step %c1_i32_105  : i32 {
      %c1_i32_113 = arith.constant 1 : i32
      %127 = arith.muli %arg9, %c1_i32_113 : i32
      %c0_i32_114 = arith.constant 0 : i32
      %128 = arith.addi %c0_i32_114, %127 : i32
      %c6_i32 = arith.constant 6 : i32
      %129 = arith.muli %128, %c6_i32 : i32
      %c10_i32 = arith.constant 10 : i32
      %130 = arith.minsi %129, %c10_i32 : i32
      %c24_i32_115 = arith.constant 24 : i32
      %131 = arith.muli %130, %c24_i32_115 : i32
      %132 = tpu.assume_multiple %131, 8 : i32
      %c24_i32_116 = arith.constant 24 : i32
      %133 = arith.addi %132, %c24_i32_116 : i32
      %c8_i32 = arith.constant 8 : i32
      %134 = arith.subi %133, %c8_i32 : i32
      %135 = arith.index_cast %134 : i32 to index
      %c0_117 = arith.constant 0 : index
      %136 = vector.load %arg7[%135, %c0_117] : memref<480x8xf32, #tpu.memory_space<vmem>>, vector<160x4xf32>
      %137 = vector.extract_strided_slice %136 {offsets = [7, 0], sizes = [144, 4], strides = [1, 1]} : vector<160x4xf32> to vector<144x4xf32>
      %c0_118 = arith.constant 0 : index
      %c0_119 = arith.constant 0 : index
      %c0_120 = arith.constant 0 : index
      %c0_121 = arith.constant 0 : index
      %138 = vector.load %arg2[%c0_118, %c0_119, %c0_120, %c0_121] : memref<3x3x4x8xf32, #tpu.memory_space<vmem>>, vector<1x1x4x8xf32>
      %139 = vector.shape_cast %138 : vector<1x1x4x8xf32> to vector<4x8xf32>
      %cst_122 = arith.constant dense<0.000000e+00> : vector<144x8xf32>
      %140 = tpu.matmul %137, %139, %cst_122 {dimension_numbers = #tpu.dot_dimension_numbers<[1], [0], [0], [1], [0, 0, 1, 1], [], []>} : vector<144x4xf32>, vector<4x8xf32>, vector<144x8xf32> -> vector<144x8xf32>
      %141 = vector.extract_strided_slice %136 {offsets = [8, 0], sizes = [144, 4], strides = [1, 1]} : vector<160x4xf32> to vector<144x4xf32>
      %c0_123 = arith.constant 0 : index
      %c1 = arith.constant 1 : index
      %c0_124 = arith.constant 0 : index
      %c0_125 = arith.constant 0 : index
      %142 = vector.load %arg2[%c0_123, %c1, %c0_124, %c0_125] : memref<3x3x4x8xf32, #tpu.memory_space<vmem>>, vector<1x1x4x8xf32>
      %143 = vector.shape_cast %142 : vector<1x1x4x8xf32> to vector<4x8xf32>
      %cst_126 = arith.constant dense<0.000000e+00> : vector<144x8xf32>
      %144 = tpu.matmul %141, %143, %cst_126 {dimension_numbers = #tpu.dot_dimension_numbers<[1], [0], [0], [1], [0, 0, 1, 1], [], []>} : vector<144x4xf32>, vector<4x8xf32>, vector<144x8xf32> -> vector<144x8xf32>
      %145 = arith.addf %140, %144 : vector<144x8xf32>
      %146 = vector.extract_strided_slice %136 {offsets = [9, 0], sizes = [144, 4], strides = [1, 1]} : vector<160x4xf32> to vector<144x4xf32>
      %c0_127 = arith.constant 0 : index
      %c2 = arith.constant 2 : index
      %c0_128 = arith.constant 0 : index
      %c0_129 = arith.constant 0 : index
      %147 = vector.load %arg2[%c0_127, %c2, %c0_128, %c0_129] : memref<3x3x4x8xf32, #tpu.memory_space<vmem>>, vector<1x1x4x8xf32>
      %148 = vector.shape_cast %147 : vector<1x1x4x8xf32> to vector<4x8xf32>
      %cst_130 = arith.constant dense<0.000000e+00> : vector<144x8xf32>
      %149 = tpu.matmul %146, %148, %cst_130 {dimension_numbers = #tpu.dot_dimension_numbers<[1], [0], [0], [1], [0, 0, 1, 1], [], []>} : vector<144x4xf32>, vector<4x8xf32>, vector<144x8xf32> -> vector<144x8xf32>
      %150 = arith.addf %145, %149 : vector<144x8xf32>
      %c48_i32 = arith.constant 48 : i32
      %151 = arith.addi %132, %c48_i32 : i32
      %c8_i32_131 = arith.constant 8 : i32
      %152 = arith.subi %151, %c8_i32_131 : i32
      %153 = arith.index_cast %152 : i32 to index
      %c0_132 = arith.constant 0 : index
      %154 = vector.load %arg7[%153, %c0_132] : memref<480x8xf32, #tpu.memory_space<vmem>>, vector<160x4xf32>
      %155 = vector.extract_strided_slice %154 {offsets = [7, 0], sizes = [144, 4], strides = [1, 1]} : vector<160x4xf32> to vector<144x4xf32>
      %c1_133 = arith.constant 1 : index
      %c0_134 = arith.constant 0 : index
      %c0_135 = arith.constant 0 : index
      %c0_136 = arith.constant 0 : index
      %156 = vector.load %arg2[%c1_133, %c0_134, %c0_135, %c0_136] : memref<3x3x4x8xf32, #tpu.memory_space<vmem>>, vector<1x1x4x8xf32>
      %157 = vector.shape_cast %156 : vector<1x1x4x8xf32> to vector<4x8xf32>
      %cst_137 = arith.constant dense<0.000000e+00> : vector<144x8xf32>
      %158 = tpu.matmul %155, %157, %cst_137 {dimension_numbers = #tpu.dot_dimension_numbers<[1], [0], [0], [1], [0, 0, 1, 1], [], []>} : vector<144x4xf32>, vector<4x8xf32>, vector<144x8xf32> -> vector<144x8xf32>
      %159 = arith.addf %150, %158 : vector<144x8xf32>
      %160 = vector.extract_strided_slice %154 {offsets = [8, 0], sizes = [144, 4], strides = [1, 1]} : vector<160x4xf32> to vector<144x4xf32>
      %c1_138 = arith.constant 1 : index
      %c1_139 = arith.constant 1 : index
      %c0_140 = arith.constant 0 : index
      %c0_141 = arith.constant 0 : index
      %161 = vector.load %arg2[%c1_138, %c1_139, %c0_140, %c0_141] : memref<3x3x4x8xf32, #tpu.memory_space<vmem>>, vector<1x1x4x8xf32>
      %162 = vector.shape_cast %161 : vector<1x1x4x8xf32> to vector<4x8xf32>
      %cst_142 = arith.constant dense<0.000000e+00> : vector<144x8xf32>
      %163 = tpu.matmul %160, %162, %cst_142 {dimension_numbers = #tpu.dot_dimension_numbers<[1], [0], [0], [1], [0, 0, 1, 1], [], []>} : vector<144x4xf32>, vector<4x8xf32>, vector<144x8xf32> -> vector<144x8xf32>
      %164 = arith.addf %159, %163 : vector<144x8xf32>
      %165 = vector.extract_strided_slice %154 {offsets = [9, 0], sizes = [144, 4], strides = [1, 1]} : vector<160x4xf32> to vector<144x4xf32>
      %c1_143 = arith.constant 1 : index
      %c2_144 = arith.constant 2 : index
      %c0_145 = arith.constant 0 : index
      %c0_146 = arith.constant 0 : index
      %166 = vector.load %arg2[%c1_143, %c2_144, %c0_145, %c0_146] : memref<3x3x4x8xf32, #tpu.memory_space<vmem>>, vector<1x1x4x8xf32>
      %167 = vector.shape_cast %166 : vector<1x1x4x8xf32> to vector<4x8xf32>
      %cst_147 = arith.constant dense<0.000000e+00> : vector<144x8xf32>
      %168 = tpu.matmul %165, %167, %cst_147 {dimension_numbers = #tpu.dot_dimension_numbers<[1], [0], [0], [1], [0, 0, 1, 1], [], []>} : vector<144x4xf32>, vector<4x8xf32>, vector<144x8xf32> -> vector<144x8xf32>
      %169 = arith.addf %164, %168 : vector<144x8xf32>
      %c72_i32 = arith.constant 72 : i32
      %170 = arith.addi %132, %c72_i32 : i32
      %c8_i32_148 = arith.constant 8 : i32
      %171 = arith.subi %170, %c8_i32_148 : i32
      %172 = arith.index_cast %171 : i32 to index
      %c0_149 = arith.constant 0 : index
      %173 = vector.load %arg7[%172, %c0_149] : memref<480x8xf32, #tpu.memory_space<vmem>>, vector<160x4xf32>
      %174 = vector.extract_strided_slice %173 {offsets = [7, 0], sizes = [144, 4], strides = [1, 1]} : vector<160x4xf32> to vector<144x4xf32>
      %c2_150 = arith.constant 2 : index
      %c0_151 = arith.constant 0 : index
      %c0_152 = arith.constant 0 : index
      %c0_153 = arith.constant 0 : index
      %175 = vector.load %arg2[%c2_150, %c0_151, %c0_152, %c0_153] : memref<3x3x4x8xf32, #tpu.memory_space<vmem>>, vector<1x1x4x8xf32>
      %176 = vector.shape_cast %175 : vector<1x1x4x8xf32> to vector<4x8xf32>
      %cst_154 = arith.constant dense<0.000000e+00> : vector<144x8xf32>
      %177 = tpu.matmul %174, %176, %cst_154 {dimension_numbers = #tpu.dot_dimension_numbers<[1], [0], [0], [1], [0, 0, 1, 1], [], []>} : vector<144x4xf32>, vector<4x8xf32>, vector<144x8xf32> -> vector<144x8xf32>
      %178 = arith.addf %169, %177 : vector<144x8xf32>
      %179 = vector.extract_strided_slice %173 {offsets = [8, 0], sizes = [144, 4], strides = [1, 1]} : vector<160x4xf32> to vector<144x4xf32>
      %c2_155 = arith.constant 2 : index
      %c1_156 = arith.constant 1 : index
      %c0_157 = arith.constant 0 : index
      %c0_158 = arith.constant 0 : index
      %180 = vector.load %arg2[%c2_155, %c1_156, %c0_157, %c0_158] : memref<3x3x4x8xf32, #tpu.memory_space<vmem>>, vector<1x1x4x8xf32>
      %181 = vector.shape_cast %180 : vector<1x1x4x8xf32> to vector<4x8xf32>
      %cst_159 = arith.constant dense<0.000000e+00> : vector<144x8xf32>
      %182 = tpu.matmul %179, %181, %cst_159 {dimension_numbers = #tpu.dot_dimension_numbers<[1], [0], [0], [1], [0, 0, 1, 1], [], []>} : vector<144x4xf32>, vector<4x8xf32>, vector<144x8xf32> -> vector<144x8xf32>
      %183 = arith.addf %178, %182 : vector<144x8xf32>
      %184 = vector.extract_strided_slice %173 {offsets = [9, 0], sizes = [144, 4], strides = [1, 1]} : vector<160x4xf32> to vector<144x4xf32>
      %c2_160 = arith.constant 2 : index
      %c2_161 = arith.constant 2 : index
      %c0_162 = arith.constant 0 : index
      %c0_163 = arith.constant 0 : index
      %185 = vector.load %arg2[%c2_160, %c2_161, %c0_162, %c0_163] : memref<3x3x4x8xf32, #tpu.memory_space<vmem>>, vector<1x1x4x8xf32>
      %186 = vector.shape_cast %185 : vector<1x1x4x8xf32> to vector<4x8xf32>
      %cst_164 = arith.constant dense<0.000000e+00> : vector<144x8xf32>
      %187 = tpu.matmul %184, %186, %cst_164 {dimension_numbers = #tpu.dot_dimension_numbers<[1], [0], [0], [1], [0, 0, 1, 1], [], []>} : vector<144x4xf32>, vector<4x8xf32>, vector<144x8xf32> -> vector<144x8xf32>
      %188 = arith.addf %183, %187 : vector<144x8xf32>
      %189 = vector.broadcast %100 : vector<1x8xf32> to vector<144x8xf32>
      %190 = arith.addf %188, %189 : vector<144x8xf32>
      %cst_165 = arith.constant 0.000000e+00 : f32
      %191 = vector.shape_cast %123 : vector<144x1xi1> to vector<144x1xi1>
      %192 = vector.broadcast %191 : vector<144x1xi1> to vector<144x8xi1>
      %193 = vector.broadcast %cst_165 : f32 to vector<144x8xf32>
      %194 = arith.select %192, %190, %193 : vector<144x8xi1>, vector<144x8xf32>
      %c48_i32_166 = arith.constant 48 : i32
      %195 = arith.addi %132, %c48_i32_166 : i32
      %196 = arith.index_cast %195 : i32 to index
      %c0_167 = arith.constant 0 : index
      %197 = vector.load %arg8[%196, %c0_167] : memref<480x8xf32, #tpu.memory_space<vmem>>, vector<144x8xf32>
      tpu.vector_store %arg8[%196, %c0_167], %194 {strides = array<i32>} : memref<480x8xf32, #tpu.memory_space<vmem>>, vector<144x8xf32>,
    }
    %c3_i32_106 = arith.constant 3 : i32
    %c0_107 = arith.constant 0 : index
    %c0_108 = arith.constant 0 : index
    %125 = vector.load %arg5[%c0_107, %c0_108] : memref<1x6xf32, #tpu.memory_space<vmem>>, vector<1x6xf32>
    %c0_i32_109 = arith.constant 0 : i32
    %c3_i32_110 = arith.constant 3 : i32
    %126 = arith.addi %c0_i32_109, %c3_i32_110 : i32
    %c1_i32_111 = arith.constant 1 : i32
    scf.for %arg9 = %c0_i32_109 to %126 step %c1_i32_111  : i32 {
      %c1_i32_113 = arith.constant 1 : i32
      %127 = arith.muli %arg9, %c1_i32_113 : i32
      %c0_i32_114 = arith.constant 0 : i32
      %128 = arith.addi %c0_i32_114, %127 : i32
      %c6_i32 = arith.constant 6 : i32
      %129 = arith.muli %128, %c6_i32 : i32
      %c10_i32 = arith.constant 10 : i32
      %130 = arith.minsi %129, %c10_i32 : i32
      %c24_i32_115 = arith.constant 24 : i32
      %131 = arith.muli %130, %c24_i32_115 : i32
      %132 = tpu.assume_multiple %131, 8 : i32
      %c24_i32_116 = arith.constant 24 : i32
      %133 = arith.addi %132, %c24_i32_116 : i32
      %c8_i32 = arith.constant 8 : i32
      %134 = arith.subi %133, %c8_i32 : i32
      %135 = arith.index_cast %134 : i32 to index
      %c0_117 = arith.constant 0 : index
      %136 = vector.load %arg8[%135, %c0_117] : memref<480x8xf32, #tpu.memory_space<vmem>>, vector<160x8xf32>
      %137 = vector.extract_strided_slice %136 {offsets = [7, 0], sizes = [144, 8], strides = [1, 1]} : vector<160x8xf32> to vector<144x8xf32>
      %c0_118 = arith.constant 0 : index
      %c0_119 = arith.constant 0 : index
      %c0_120 = arith.constant 0 : index
      %c0_121 = arith.constant 0 : index
      %138 = vector.load %arg4[%c0_118, %c0_119, %c0_120, %c0_121] : memref<3x3x8x6xf32, #tpu.memory_space<vmem>>, vector<1x1x8x6xf32>
      %139 = vector.shape_cast %138 : vector<1x1x8x6xf32> to vector<8x6xf32>
      %cst_122 = arith.constant dense<0.000000e+00> : vector<144x6xf32>
      %140 = tpu.matmul %137, %139, %cst_122 {dimension_numbers = #tpu.dot_dimension_numbers<[1], [0], [0], [1], [0, 0, 1, 1], [], []>} : vector<144x8xf32>, vector<8x6xf32>, vector<144x6xf32> -> vector<144x6xf32>
      %141 = vector.extract_strided_slice %136 {offsets = [8, 0], sizes = [144, 8], strides = [1, 1]} : vector<160x8xf32> to vector<144x8xf32>
      %c0_123 = arith.constant 0 : index
      %c1 = arith.constant 1 : index
      %c0_124 = arith.constant 0 : index
      %c0_125 = arith.constant 0 : index
      %142 = vector.load %arg4[%c0_123, %c1, %c0_124, %c0_125] : memref<3x3x8x6xf32, #tpu.memory_space<vmem>>, vector<1x1x8x6xf32>
      %143 = vector.shape_cast %142 : vector<1x1x8x6xf32> to vector<8x6xf32>
      %cst_126 = arith.constant dense<0.000000e+00> : vector<144x6xf32>
      %144 = tpu.matmul %141, %143, %cst_126 {dimension_numbers = #tpu.dot_dimension_numbers<[1], [0], [0], [1], [0, 0, 1, 1], [], []>} : vector<144x8xf32>, vector<8x6xf32>, vector<144x6xf32> -> vector<144x6xf32>
      %145 = arith.addf %140, %144 : vector<144x6xf32>
      %146 = vector.extract_strided_slice %136 {offsets = [9, 0], sizes = [144, 8], strides = [1, 1]} : vector<160x8xf32> to vector<144x8xf32>
      %c0_127 = arith.constant 0 : index
      %c2 = arith.constant 2 : index
      %c0_128 = arith.constant 0 : index
      %c0_129 = arith.constant 0 : index
      %147 = vector.load %arg4[%c0_127, %c2, %c0_128, %c0_129] : memref<3x3x8x6xf32, #tpu.memory_space<vmem>>, vector<1x1x8x6xf32>
      %148 = vector.shape_cast %147 : vector<1x1x8x6xf32> to vector<8x6xf32>
      %cst_130 = arith.constant dense<0.000000e+00> : vector<144x6xf32>
      %149 = tpu.matmul %146, %148, %cst_130 {dimension_numbers = #tpu.dot_dimension_numbers<[1], [0], [0], [1], [0, 0, 1, 1], [], []>} : vector<144x8xf32>, vector<8x6xf32>, vector<144x6xf32> -> vector<144x6xf32>
      %150 = arith.addf %145, %149 : vector<144x6xf32>
      %c48_i32 = arith.constant 48 : i32
      %151 = arith.addi %132, %c48_i32 : i32
      %c8_i32_131 = arith.constant 8 : i32
      %152 = arith.subi %151, %c8_i32_131 : i32
      %153 = arith.index_cast %152 : i32 to index
      %c0_132 = arith.constant 0 : index
      %154 = vector.load %arg8[%153, %c0_132] : memref<480x8xf32, #tpu.memory_space<vmem>>, vector<160x8xf32>
      %155 = vector.extract_strided_slice %154 {offsets = [7, 0], sizes = [144, 8], strides = [1, 1]} : vector<160x8xf32> to vector<144x8xf32>
      %c1_133 = arith.constant 1 : index
      %c0_134 = arith.constant 0 : index
      %c0_135 = arith.constant 0 : index
      %c0_136 = arith.constant 0 : index
      %156 = vector.load %arg4[%c1_133, %c0_134, %c0_135, %c0_136] : memref<3x3x8x6xf32, #tpu.memory_space<vmem>>, vector<1x1x8x6xf32>
      %157 = vector.shape_cast %156 : vector<1x1x8x6xf32> to vector<8x6xf32>
      %cst_137 = arith.constant dense<0.000000e+00> : vector<144x6xf32>
      %158 = tpu.matmul %155, %157, %cst_137 {dimension_numbers = #tpu.dot_dimension_numbers<[1], [0], [0], [1], [0, 0, 1, 1], [], []>} : vector<144x8xf32>, vector<8x6xf32>, vector<144x6xf32> -> vector<144x6xf32>
      %159 = arith.addf %150, %158 : vector<144x6xf32>
      %160 = vector.extract_strided_slice %154 {offsets = [8, 0], sizes = [144, 8], strides = [1, 1]} : vector<160x8xf32> to vector<144x8xf32>
      %c1_138 = arith.constant 1 : index
      %c1_139 = arith.constant 1 : index
      %c0_140 = arith.constant 0 : index
      %c0_141 = arith.constant 0 : index
      %161 = vector.load %arg4[%c1_138, %c1_139, %c0_140, %c0_141] : memref<3x3x8x6xf32, #tpu.memory_space<vmem>>, vector<1x1x8x6xf32>
      %162 = vector.shape_cast %161 : vector<1x1x8x6xf32> to vector<8x6xf32>
      %cst_142 = arith.constant dense<0.000000e+00> : vector<144x6xf32>
      %163 = tpu.matmul %160, %162, %cst_142 {dimension_numbers = #tpu.dot_dimension_numbers<[1], [0], [0], [1], [0, 0, 1, 1], [], []>} : vector<144x8xf32>, vector<8x6xf32>, vector<144x6xf32> -> vector<144x6xf32>
      %164 = arith.addf %159, %163 : vector<144x6xf32>
      %165 = vector.extract_strided_slice %154 {offsets = [9, 0], sizes = [144, 8], strides = [1, 1]} : vector<160x8xf32> to vector<144x8xf32>
      %c1_143 = arith.constant 1 : index
      %c2_144 = arith.constant 2 : index
      %c0_145 = arith.constant 0 : index
      %c0_146 = arith.constant 0 : index
      %166 = vector.load %arg4[%c1_143, %c2_144, %c0_145, %c0_146] : memref<3x3x8x6xf32, #tpu.memory_space<vmem>>, vector<1x1x8x6xf32>
      %167 = vector.shape_cast %166 : vector<1x1x8x6xf32> to vector<8x6xf32>
      %cst_147 = arith.constant dense<0.000000e+00> : vector<144x6xf32>
      %168 = tpu.matmul %165, %167, %cst_147 {dimension_numbers = #tpu.dot_dimension_numbers<[1], [0], [0], [1], [0, 0, 1, 1], [], []>} : vector<144x8xf32>, vector<8x6xf32>, vector<144x6xf32> -> vector<144x6xf32>
      %169 = arith.addf %164, %168 : vector<144x6xf32>
      %c72_i32 = arith.constant 72 : i32
      %170 = arith.addi %132, %c72_i32 : i32
      %c8_i32_148 = arith.constant 8 : i32
      %171 = arith.subi %170, %c8_i32_148 : i32
      %172 = arith.index_cast %171 : i32 to index
      %c0_149 = arith.constant 0 : index
      %173 = vector.load %arg8[%172, %c0_149] : memref<480x8xf32, #tpu.memory_space<vmem>>, vector<160x8xf32>
      %174 = vector.extract_strided_slice %173 {offsets = [7, 0], sizes = [144, 8], strides = [1, 1]} : vector<160x8xf32> to vector<144x8xf32>
      %c2_150 = arith.constant 2 : index
      %c0_151 = arith.constant 0 : index
      %c0_152 = arith.constant 0 : index
      %c0_153 = arith.constant 0 : index
      %175 = vector.load %arg4[%c2_150, %c0_151, %c0_152, %c0_153] : memref<3x3x8x6xf32, #tpu.memory_space<vmem>>, vector<1x1x8x6xf32>
      %176 = vector.shape_cast %175 : vector<1x1x8x6xf32> to vector<8x6xf32>
      %cst_154 = arith.constant dense<0.000000e+00> : vector<144x6xf32>
      %177 = tpu.matmul %174, %176, %cst_154 {dimension_numbers = #tpu.dot_dimension_numbers<[1], [0], [0], [1], [0, 0, 1, 1], [], []>} : vector<144x8xf32>, vector<8x6xf32>, vector<144x6xf32> -> vector<144x6xf32>
      %178 = arith.addf %169, %177 : vector<144x6xf32>
      %179 = vector.extract_strided_slice %173 {offsets = [8, 0], sizes = [144, 8], strides = [1, 1]} : vector<160x8xf32> to vector<144x8xf32>
      %c2_155 = arith.constant 2 : index
      %c1_156 = arith.constant 1 : index
      %c0_157 = arith.constant 0 : index
      %c0_158 = arith.constant 0 : index
      %180 = vector.load %arg4[%c2_155, %c1_156, %c0_157, %c0_158] : memref<3x3x8x6xf32, #tpu.memory_space<vmem>>, vector<1x1x8x6xf32>
      %181 = vector.shape_cast %180 : vector<1x1x8x6xf32> to vector<8x6xf32>
      %cst_159 = arith.constant dense<0.000000e+00> : vector<144x6xf32>
      %182 = tpu.matmul %179, %181, %cst_159 {dimension_numbers = #tpu.dot_dimension_numbers<[1], [0], [0], [1], [0, 0, 1, 1], [], []>} : vector<144x8xf32>, vector<8x6xf32>, vector<144x6xf32> -> vector<144x6xf32>
      %183 = arith.addf %178, %182 : vector<144x6xf32>
      %184 = vector.extract_strided_slice %173 {offsets = [9, 0], sizes = [144, 8], strides = [1, 1]} : vector<160x8xf32> to vector<144x8xf32>
      %c2_160 = arith.constant 2 : index
      %c2_161 = arith.constant 2 : index
      %c0_162 = arith.constant 0 : index
      %c0_163 = arith.constant 0 : index
      %185 = vector.load %arg4[%c2_160, %c2_161, %c0_162, %c0_163] : memref<3x3x8x6xf32, #tpu.memory_space<vmem>>, vector<1x1x8x6xf32>
      %186 = vector.shape_cast %185 : vector<1x1x8x6xf32> to vector<8x6xf32>
      %cst_164 = arith.constant dense<0.000000e+00> : vector<144x6xf32>
      %187 = tpu.matmul %184, %186, %cst_164 {dimension_numbers = #tpu.dot_dimension_numbers<[1], [0], [0], [1], [0, 0, 1, 1], [], []>} : vector<144x8xf32>, vector<8x6xf32>, vector<144x6xf32> -> vector<144x6xf32>
      %188 = arith.addf %183, %187 : vector<144x6xf32>
      %189 = vector.broadcast %125 : vector<1x6xf32> to vector<144x6xf32>
      %190 = arith.addf %188, %189 : vector<144x6xf32>
      %191 = vector.shape_cast %190 : vector<144x6xf32> to vector<6x24x6xf32>
      %192 = vector.extract_strided_slice %191 {offsets = [0, 0, 0], sizes = [6, 16, 6], strides = [1, 1, 1]} : vector<6x24x6xf32> to vector<6x16x6xf32>
      %c0_165 = arith.constant 0 : index
      %193 = arith.index_cast %130 : i32 to index
      %c0_166 = arith.constant 0 : index
      %c0_167 = arith.constant 0 : index
      %194 = vector.load %arg6[%c0_165, %193, %c0_166, %c0_167] : memref<1x16x16x6xf32, #tpu.memory_space<vmem>>, vector<1x6x16x6xf32>
      %195 = vector.shape_cast %194 : vector<1x6x16x6xf32> to vector<6x16x6xf32>
      %196 = vector.shape_cast %192 : vector<6x16x6xf32> to vector<1x6x16x6xf32>
      tpu.vector_store %arg6[%c0_165, %193, %c0_166, %c0_167], %196 {strides = array<i32>} : memref<1x16x16x6xf32, #tpu.memory_space<vmem>>, vector<1x6x16x6xf32>,
    }
    %c3_i32_112 = arith.constant 3 : i32
    return
  }
  func.func @transform_0(%arg0: i32) -> (i32, i32, i32) {
    %c0_i32 = arith.constant 0 : i32
    %c0_i32_0 = arith.constant 0 : i32
    %c0_i32_1 = arith.constant 0 : i32
    return %arg0, %c0_i32, %c0_i32_0 : i32, i32, i32
  }
  func.func @transform_1(%arg0: i32) -> (i32, i32, i32, i32) {
    %c0_i32 = arith.constant 0 : i32
    %c0_i32_0 = arith.constant 0 : i32
    %c0_i32_1 = arith.constant 0 : i32
    %c0_i32_2 = arith.constant 0 : i32
    %c0_i32_3 = arith.constant 0 : i32
    return %c0_i32, %c0_i32_0, %c0_i32_1, %c0_i32_2 : i32, i32, i32, i32
  }
  func.func @transform_2(%arg0: i32) -> (i32, i32) {
    %c0_i32 = arith.constant 0 : i32
    %c0_i32_0 = arith.constant 0 : i32
    %c0_i32_1 = arith.constant 0 : i32
    return %c0_i32, %c0_i32_0 : i32, i32
  }
  func.func @transform_3(%arg0: i32) -> (i32, i32, i32, i32) {
    %c0_i32 = arith.constant 0 : i32
    %c0_i32_0 = arith.constant 0 : i32
    %c0_i32_1 = arith.constant 0 : i32
    %c0_i32_2 = arith.constant 0 : i32
    %c0_i32_3 = arith.constant 0 : i32
    return %c0_i32, %c0_i32_0, %c0_i32_1, %c0_i32_2 : i32, i32, i32, i32
  }
  func.func @transform_4(%arg0: i32) -> (i32, i32) {
    %c0_i32 = arith.constant 0 : i32
    %c0_i32_0 = arith.constant 0 : i32
    %c0_i32_1 = arith.constant 0 : i32
    return %c0_i32, %c0_i32_0 : i32, i32
  }
  func.func @transform_5(%arg0: i32) -> (i32, i32, i32, i32) {
    %c0_i32 = arith.constant 0 : i32
    %c0_i32_0 = arith.constant 0 : i32
    %c0_i32_1 = arith.constant 0 : i32
    %c0_i32_2 = arith.constant 0 : i32
    return %arg0, %c0_i32, %c0_i32_0, %c0_i32_1 : i32, i32, i32, i32
  }
}

</mosaic_0001>

<bundles_post_ra>
// kernel: tpu_custom_call.1
= control target key start
LH: loop header
LB: loop body
LE: loop exit
PB: predicated region body
PF: predicated region fallthrough
CT: control target
= control target key end

     0   :  { %10 = vsyncpa [#allocation5], 0  ;;  %s7577_s0 = inlined_call_operand.hbm [shape: f32[2,4,256], index: 0, kind: input, shape index: {}]   ;;  %s7578_s1 = inlined_call_operand.hbm [shape: f32[3,3,4,8], index: 1, kind: input, shape index: {}]   ;;  %s7579_s2 = inlined_call_operand.vmem [shape: f32[1,8], index: 2, kind: input, shape index: {}]   ;;  %s7580_s3 = inlined_call_operand.hbm [shape: f32[3,3,8,6], index: 3, kind: input, shape index: {}]   ;;  %s7581_s4 = inlined_call_operand.vmem [shape: f32[1,6], index: 4, kind: input, shape index: {}]   ;;  %s7582_s5 = inlined_call_operand.vmem [shape: f32[2,16,16,6], index: 5, kind: output, shape index: {}]  }
   0x1   :  { %12 = vsyncpa [#allocation5 + $0x1], 0 }
   0x2   :  { %13 = vsyncpa [#allocation7], 0  ;;  %s5499_s18 = smov 0   ;;  %s5501_s19 = smov 0  }
   0x3   :  { %s5503_s20 = smov 0   ;;  %s5505_s21 = smov 0  }
   0x4 LB: > { %s171_s24 = sshll.u32 %s7578_s1, 4  ;;  %s5523_s25 = sadd.s32 4294967295, %s5444_s21   ;;  %s5444_s21 = sphi %s5505_s21, %s8106_s21   ;;  %s5440_s20 = sphi %s5503_s20, %s8105_s20   ;;  %s5436_s19 = sphi %s5501_s19, %s8104_s19   ;;  %s5432_s18 = sphi %s5499_s18, %s8103_s18   ;;  %s172_s24 = int_to_ptr.hbm [resolvable:$true] %s171_s24 }
   0x5   : > { %p4724_p0 = scmp.ge.s32.totalorder %s5444_s21, 1  ;;  %p40_p1 = scmp.eq.s32.totalorder %s5523_s25, 0 }
   0x6   : > { %p160_p2 = scmp.lt.s32.totalorder %s5444_s21, 3  ;;  %s5454_s27 = smov [#allocation6]  }
   0x7   : > { %s173_s28 = sshll.u32 %s5454_s27, 4  ;;  %s188_s6 = sshll.u32 %s7580_s3, 4  ;;  %s174_s28 = int_to_ptr.vmem [resolvable:$true] %s173_s28  ;;  %s189_s6 = int_to_ptr.hbm [resolvable:$true] %s188_s6 }
   0x8   : > { %p5528_p3 = pnand %p4724_p0, %p160_p2  ;;  %s5455_s7 = smov [#allocation8]  }
   0x9   : > { %s190_s8 = sshll.u32 %s5455_s7, 4  ;;  %s5456_s9 = smov 64   ;;  %s191_s8 = int_to_ptr.vmem [resolvable:$true] %s190_s8 }
   0xa   : > { %p5229_p4 = pneg %p5528_p3  ;;  %s5457_s10 = smov 4  }
   0xb   : > { %s5458_s11 = smov 128   ;;  %s5459_s12 = smov 8  }
   0xc   : > { %p5230_p5 = pnand %p5229_p4, %p40_p1  ;;  %s5540_s13 = sadd.s32 1, %s5444_s21  }
   0xd   : > { %s23_s14 = ssub.s32 %s5444_s21, %s5540_s13  ;;  %s26_s15 = sadd.s32 1, %s5440_s20 }
   0xe   : > { %5232 = dma.hbm_to_vmem [thread:$0]  (!%p5230_p5), %s172_s24, 576, %s174_s28, [#allocation7], %s5456_s9, %s5456_s9, %s5457_s10  }
   0xf   : > { %5235 = dma.hbm_to_vmem [thread:$0]  (!%p5230_p5), %s189_s6, 1152, %s191_s8, [#allocation7], %s5458_s11, %s5458_s11, %s5459_s12  }
  0x10   : > { %p24_p6 = scmp.eq.s32.totalorder %s23_s14, 0  ;;  %p33_p7 = scmp.ne.s32.totalorder %s5440_s20, %s5436_s19 }
  0x11   : > { %p34_p8 = scmp.eq.s32.totalorder %s5444_s21, 0  ;;  %p39_p9 = scmp.ne.s32.totalorder %s5436_s19, %s5432_s18 }
  0x12   : > { %s5551_s16 = scalar_select %p24_p6, %s5440_s20, %s26_s15  }
  0x13   : > { %p5555_p10 = por %p40_p1, %p39_p9  ;;  %p5242_p11 = scmp.lt.s32.totalorder %s5444_s21, 2 }
  0x14   : > { %s207_s22 = sand.u32 1, %s5440_s20   ;;  %s5211_s23 = sshll.u32 %s5444_s21, 3 }
  0x15   : > { %p35_p12 = por %p34_p8, %p33_p7  ;;  %s4728_s24 = sshll.u32 %s207_s22, 3 }
  0x16   : > { %s216_s29 = scalar_lea.hbm %s7577_s0, %s5211_s23  ;;  %s211_s6 = scalar_lea.vmem [#allocation4], %s4728_s24 }
  0x17   : > { %s218_s30 = sshll.u32 %s216_s29, 4  ;;  %s220_s7 = sshll.u32 %s211_s6, 4  ;;  %s219_s30 = int_to_ptr.hbm [resolvable:$true] %s218_s30  ;;  %s221_s7 = int_to_ptr.vmem [resolvable:$true] %s220_s7 }
  0x18   : > { %p5565_p13 = pnand %p5242_p11, %p35_p12  ;;  %s208_s8 = scalar_lea.sflag [#allocation5], %s207_s22 }
  0x19   : > { %s5368_s9 = sshra.s32 %s219_s30, 4  ;;  %s5375_s12 = scalar_lea.hbm %s7577_s0, 16  ;;  %s5369_s9 = int_to_ptr.hbm [resolvable:$true] %s5368_s9 }
  0x1a   : > { %s5370_s21 = scalar_lea.hbm %s5369_s9, 8  ;;  %p5372_p2 = pneg %p5565_p13 }
  0x1b   : > { %p5371_p0 = scmp.ne.s32.totalorder %s5369_s9, %s5370_s21  ;;  %p5376_p6 = scmp.lt.s32.totalorder %s5369_s9, %s7577_s0 }
  0x1c   : > { %p5377_p7 = scmp.lt.s32.totalorder %s5375_s12, %s5370_s21 }
  0x1d   : > { %p5373_p4 = pnand %p5372_p2, %p5371_p0 }
  0x1e   : > { %p5378_p8 = por %p5377_p7, %p5376_p6 }
  0x1f   : > { %p5374_p5 = pneg %p5373_p4 }
  0x21   : > { %p5379_p9 = pnand %p5378_p8, %p5374_p5 }
  0x23   : > { %5382 = shalt.err (!%p5379_p9)
}
  0x24   : > { %5239 = dma.hbm_to_vmem [thread:$0]  (!%p5565_p13), %s219_s30, 128, %s221_s7, %s208_s8  }
  0x25   : > { %229 = sbr.rel (%p5528_p3) target bundleno = 1915 (0x77b), region = 40 }
  0x2a   : > { %s231_s22 = sand.u32 1, %s5436_s19  }
  0x2b   : > { %s4732_s23 = sshll.u32 %s231_s22, 3  ;;  %s232_s24 = scalar_lea.sflag [#allocation5], %s231_s22 }
  0x2c   : > { %s5582_s27 = scalar_lea.vmem [#allocation4], %s4732_s23 }
  0x2d   : > { %5423 = dma.done.wait (%p5555_p10), %s232_s24, 128  }
  0x2e   : > { %5425 = vsyncadd (%p5555_p10), %s232_s24, 4294967168 }
  0x2f   : > { %5427 = dma.done.wait (%p40_p1), [#allocation7], 1728  }
  0x30   : > { %5429 = vsyncadd (%p40_p1), [#allocation7], 4294965568  ;;  %vm7583_vm0 = vcmask 64512   ;;  %v5460_v0 = vmov 0.0   ;;  %v5602_v1 = vld [vmem:[%s7579_s2] sm:$0x1] }
  0x31   : > { %279 = vst.msk [vmem:[#allocation2] sm:$0xff] %vm7583_vm0, %v5460_v0  ;;  %v328_v2 = vld [vmem:[%s5582_s27] sm:$0xf]  ;;  %s5461_s28 = smov 112   ;;  %s5462_s29 = smov 96   ;;  %vm7584_vm1 = vcmask 31744  }
  0x32   : > { %280 = vst.msk [vmem:[#allocation2 + $0x8] sm:$0xff] %vm7583_vm0, %v5460_v0  ;;  %v370_v3 = vld [vmem:[%s5582_s27] sm:$0xf]  ;;  %s5463_s30 = smov 80   ;;  %s5464_s6 = smov 64  }
  0x33   : > { %281 = vst.msk [vmem:[#allocation2 + $0x10] sm:$0xff] %vm7583_vm0, %v5460_v0  ;;  %v412_v5 = vld [vmem:[%s5582_s27] sm:$0xf]  ;;  %s5465_s7 = smov 48   ;;  %s5466_s18 = smov 32  }
  0x34   : > { %282 = vst.msk [vmem:[#allocation2 + $0x18] sm:$0xff] %vm7583_vm0, %v5460_v0  ;;  %v454_v7 = vld [vmem:[%s5582_s27] sm:$0xf]  ;;  %v658_v15 = vld [vmem:[%s5582_s27 + $0x4] sm:$0xf]  ;;  %s5467_s8 = smov 16  }
  0x35   : > { %283 = vst.msk [vmem:[#allocation2 + $0x20] sm:$0xff] %vm7583_vm0, %v5460_v0  ;;  %v496_v9 = vld [vmem:[%s5582_s27] sm:$0xf]  ;;  %v700_v17 = vld [vmem:[%s5582_s27 + $0x4] sm:$0xf]  ;;  %p273_p1 = scmp.lt.s32.totalorder %s5523_s25, 1 }
  0x36   : > { %284 = vst.msk [vmem:[#allocation2 + $0x28] sm:$0xff] %vm7583_vm0, %v5460_v0  ;;  %v538_v11 = vld [vmem:[%s5582_s27] sm:$0xf]  ;;  %v742_v19 = vld [vmem:[%s5582_s27 + $0x4] sm:$0xf] }
  0x37   : > { %285 = vst.msk [vmem:[#allocation2 + $0x1b0] sm:$0xff] %vm7583_vm0, %v5460_v0  ;;  %v580_v13 = vld [vmem:[%s5582_s27] sm:$0xf]  ;;  %v784_v21 = vld [vmem:[%s5582_s27 + $0x4] sm:$0xf]  ;;  %s8108_s25 = smov (!%p273_p1, %s5523_s25), 1 }
  0x38   : > { %7619 = vst [vmem:[#allocation11_spill] sm:$0xff] %v5602_v1  ;;  %v826_v23 = vld [vmem:[%s5582_s27 + $0x4] sm:$0xf]  ;;  %v291_v27 = vld [vmem:[%s5582_s27] sm:$0xf]  ;;  %s5212_s9 = sshll.u32 %s8108_s25, 8 }
  0x39   : > { %286 = vst.msk [vmem:[#allocation2 + $0x1b8] sm:$0xff] %vm7583_vm0, %v5460_v0  ;;  %v868_v25 = vld [vmem:[%s5582_s27 + $0x4] sm:$0xf]  ;;  %s5700_s11 = scalar_lea.vmem %s7582_s5, %s5212_s9  ;;  %s6191_s25 = smov 0  }
  0x3a   : > { %287 = vst.msk [vmem:[#allocation2 + $0x1c0] sm:$0xff] %vm7583_vm0, %v5460_v0  ;;  %v622_v38 = vld [vmem:[%s5582_s27 + $0x4] sm:$0xf] }
  0x3b   : > { %288 = vst.msk [vmem:[#allocation2 + $0x1c8] sm:$0xff] %vm7583_vm0, %v5460_v0  ;;  %v910_v55 = vld [vmem:[%s5582_s27 + $0x4] sm:$0xf] }
  0x3c   : > { %289 = vst.msk [vmem:[#allocation2 + $0x1d0] sm:$0xff] %vm7583_vm0, %v5460_v0 }
  0x3d   : > { %290 = vst.msk [vmem:[#allocation2 + $0x1d8] sm:$0xff] %vm7583_vm0, %v5460_v0 }
  0x3e   : > { %327 = vst.msk [vmem:[#allocation2 + $0x40] sm:$0xff] %vm7583_vm0, %v5460_v0 }
  0x3f   : > { %369 = vst.msk [vmem:[#allocation2 + $0x58] sm:$0xff] %vm7583_vm0, %v5460_v0 }
  0x40   : > { %411 = vst.msk [vmem:[#allocation2 + $0x70] sm:$0xff] %vm7583_vm0, %v5460_v0 }
  0x41   : > { %453 = vst.msk [vmem:[#allocation2 + $0x88] sm:$0xff] %vm7583_vm0, %v5460_v0 }
  0x42   : > { %495 = vst.msk [vmem:[#allocation2 + $0xa0] sm:$0xff] %vm7583_vm0, %v5460_v0 }
  0x43   : > { %537 = vst.msk [vmem:[#allocation2 + $0xb8] sm:$0xff] %vm7583_vm0, %v5460_v0 }
  0x44   : > { %579 = vst.msk [vmem:[#allocation2 + $0xd0] sm:$0xff] %vm7583_vm0, %v5460_v0 }
  0x45   : > { %621 = vst.msk [vmem:[#allocation2 + $0xe8] sm:$0xff] %vm7583_vm0, %v5460_v0 }
  0x46   : > { %657 = vst.msk [vmem:[#allocation2 + $0x100] sm:$0xff] %vm7583_vm0, %v5460_v0 }
  0x47   : > { %699 = vst.msk [vmem:[#allocation2 + $0x118] sm:$0xff] %vm7583_vm0, %v5460_v0 }
  0x48   : > { %741 = vst.msk [vmem:[#allocation2 + $0x130] sm:$0xff] %vm7583_vm0, %v5460_v0 }
  0x49   : > { %783 = vst.msk [vmem:[#allocation2 + $0x148] sm:$0xff] %vm7583_vm0, %v5460_v0 }
  0x4a   : > { %825 = vst.msk [vmem:[#allocation2 + $0x160] sm:$0xff] %vm7583_vm0, %v5460_v0 }
  0x4b   : > { %867 = vst.msk [vmem:[#allocation2 + $0x178] sm:$0xff] %vm7583_vm0, %v5460_v0 }
  0x4c   : > { %909 = vst.msk [vmem:[#allocation2 + $0x190] sm:$0xff] %vm7583_vm0, %v5460_v0 }
  0x4d   : > { %951 = vst.msk [vmem:[#allocation2 + $0x1a8] sm:$0xff] %vm7583_vm0, %v5460_v0 }
  0x4e   : > { %953 = vst.msk [vmem:[#allocation3] sm:$0xff] %vm7583_vm0, %v5460_v0 }
  0x4f   : > { %954 = vst.msk [vmem:[#allocation3 + $0x8] sm:$0xff] %vm7583_vm0, %v5460_v0 }
  0x50   : > { %955 = vst.msk [vmem:[#allocation3 + $0x10] sm:$0xff] %vm7583_vm0, %v5460_v0 }
  0x51   : > { %956 = vst.msk [vmem:[#allocation3 + $0x18] sm:$0xff] %vm7583_vm0, %v5460_v0 }
  0x52   : > { %957 = vst.msk [vmem:[#allocation3 + $0x20] sm:$0xff] %vm7583_vm0, %v5460_v0 }
  0x53   : > { %958 = vst.msk [vmem:[#allocation3 + $0x28] sm:$0xff] %vm7583_vm0, %v5460_v0 }
  0x54   : > { %959 = vst.msk [vmem:[#allocation3 + $0x1b0] sm:$0xff] %vm7583_vm0, %v5460_v0 }
  0x55   : > { %960 = vst.msk [vmem:[#allocation3 + $0x1b8] sm:$0xff] %vm7583_vm0, %v5460_v0 }
  0x56   : > { %961 = vst.msk [vmem:[#allocation3 + $0x1c0] sm:$0xff] %vm7583_vm0, %v5460_v0 }
  0x57   : > { %962 = vst.msk [vmem:[#allocation3 + $0x1c8] sm:$0xff] %vm7583_vm0, %v5460_v0 }
  0x58   : > { %963 = vst.msk [vmem:[#allocation3 + $0x1d0] sm:$0xff] %vm7583_vm0, %v5460_v0 }
  0x59   : > { %964 = vst.msk [vmem:[#allocation3 + $0x1d8] sm:$0xff] %vm7583_vm0, %v5460_v0 }
  0x5a   : > { %330 = vst [vmem:[#allocation1] ss:$2 sm:$0xff] %v328_v2 }
  0x61   : > { %v331_v4 = vld.sshfl [vmem:[#allocation1] sm:$0xff pattern:$0x75316420] }
  0x62   : > { %332 = vrot.lane.b32.xlu0 %v331_v4, %s5461_s28  ;;  %372 = vst [vmem:[#allocation1] ss:$2 sm:$0xff] %v370_v3 }
  0x69   : > { %v373_v6 = vld.sshfl [vmem:[#allocation1] sm:$0xff pattern:$0x75316420] }
  0x6a   : > { %374 = vrot.lane.b32.xlu1 %v373_v6, %s5462_s29  ;;  %414 = vst [vmem:[#allocation1] ss:$2 sm:$0xff] %v412_v5 }
  0x71   : > { %v415_v8 = vld.sshfl [vmem:[#allocation1] sm:$0xff pattern:$0x75316420] }
  0x72   : > { %416 = vrot.lane.b32.xlu2 %v415_v8, %s5463_s30  ;;  %456 = vst [vmem:[#allocation1] ss:$2 sm:$0xff] %v454_v7 }
  0x79   : > { %v457_v10 = vld.sshfl [vmem:[#allocation1] sm:$0xff pattern:$0x75316420] }
  0x7a   : > { %498 = vst [vmem:[#allocation1] ss:$2 sm:$0xff] %v496_v9  ;;  %458 = vrot.lane.b32.xlu2 %v457_v10, %s5464_s6 }
  0x81   : > { %v499_v12 = vld.sshfl [vmem:[#allocation1] sm:$0xff pattern:$0x75316420] }
  0x82   : > { %540 = vst [vmem:[#allocation1] ss:$2 sm:$0xff] %v538_v11  ;;  %500 = vrot.lane.b32.xlu2 %v499_v12, %s5465_s7 }
  0x89   : > { %v541_v14 = vld.sshfl [vmem:[#allocation1] sm:$0xff pattern:$0x75316420] }
  0x8a   : > { %542 = vrot.lane.b32.xlu1 %v541_v14, %s5466_s18  ;;  %582 = vst [vmem:[#allocation1] ss:$2 sm:$0xff] %v580_v13  ;;  %v965_v13 = vlaneseq }
  0x8c   : > { %v5702_v14 = vshrl.u32 %v965_v13, 7 }
  0x91   : > { %v583_v16 = vld.sshfl [vmem:[#allocation1] sm:$0xff pattern:$0x75316420] }
  0x92   : > { %660 = vst [vmem:[#allocation1] ss:$2 sm:$0xff] %v658_v15  ;;  %584 = vrot.lane.b32.xlu2 %v583_v16, %s5467_s8  ;;  %v5705_v15 = vadd.s32 8, %v5702_v14  ;;  %v5708_v16 = vadd.s32 16, %v5702_v14 }
  0x99   : > { %v661_v18 = vld.sshfl [vmem:[#allocation1] sm:$0xff pattern:$0x75316420] }
  0x9a   : > { %702 = vst [vmem:[#allocation1] ss:$2 sm:$0xff] %v700_v17  ;;  %662 = vrot.lane.b32.xlu0 %v661_v18, %s5461_s28  ;;  %v5711_v17 = vadd.s32 24, %v5702_v14  ;;  %v5714_v18 = vadd.s32 32, %v5702_v14 }
  0xa1   : > { %v703_v20 = vld.sshfl [vmem:[#allocation1] sm:$0xff pattern:$0x75316420] }
  0xa2   : > { %744 = vst [vmem:[#allocation1] ss:$2 sm:$0xff] %v742_v19  ;;  %704 = vrot.lane.b32.xlu2 %v703_v20, %s5462_s29  ;;  %v5717_v19 = vadd.s32 40, %v5702_v14  ;;  %v5720_v20 = vadd.s32 48, %v5702_v14 }
  0xa9   : > { %v745_v22 = vld.sshfl [vmem:[#allocation1] sm:$0xff pattern:$0x75316420] }
  0xaa   : > { %746 = vrot.lane.b32.xlu1 %v745_v22, %s5463_s30  ;;  %786 = vst [vmem:[#allocation1] ss:$2 sm:$0xff] %v784_v21  ;;  %v5723_v21 = vadd.s32 56, %v5702_v14  ;;  %v5726_v22 = vadd.s32 64, %v5702_v14 }
  0xb1   : > { %v787_v24 = vld.sshfl [vmem:[#allocation1] sm:$0xff pattern:$0x75316420] }
  0xb2   : > { %788 = vrot.lane.b32.xlu2 %v787_v24, %s5464_s6  ;;  %828 = vst [vmem:[#allocation1] ss:$2 sm:$0xff] %v826_v23  ;;  %v5729_v23 = vadd.s32 72, %v5702_v14  ;;  %v5732_v24 = vadd.s32 80, %v5702_v14 }
  0xb9   : > { %v829_v26 = vld.sshfl [vmem:[#allocation1] sm:$0xff pattern:$0x75316420] }
  0xba   : > { %870 = vst [vmem:[#allocation1] ss:$2 sm:$0xff] %v868_v25  ;;  %v5735_v25 = vadd.s32 88, %v5702_v14 }
  0xbc   : > { %292 = vxpose.xlu0.b32.start.end [1/1] (short) (narrow) %v291_v27, 16  ;;  %v988_v27 = vshrl.u32 %v5702_v14, 16 }
  0xc1   : > { %v871_v28 = vld.sshfl [vmem:[#allocation1] sm:$0xff pattern:$0x75316420] }
  0xc2   : > { %872 = vrot.lane.b32.xlu2 %v871_v28, %s5466_s18  ;;  %912 = vst [vmem:[#allocation1] ss:$2 sm:$0xff] %v910_v55  ;;  %v1016_v28 = vand.u32 65535, %v5705_v15 }
  0xc9   : > { %v913_v62 = vld.sshfl [vmem:[#allocation1] sm:$0xff pattern:$0x75316420] }
  0xcc   : > { %v417_v29 = vpop.permute.xlu2 %416 }
  0xd4   : > { %v459_v30 = vpop.permute.xlu2 %458  ;;  %v333_v31 = vpop.permute.xlu0 %332 }
  0xd5   : > { %461 = vxpose.xlu0.b32.start.end [1/1] (short) (narrow) %v459_v30, 16  ;;  %v1017_v30 = vshrl.u32 %v5705_v15, 16 }
  0xdc   : > { %v375_v32 = vpop.permute.xlu1 %374  ;;  %v501_v33 = vpop.permute.xlu2 %500 }
  0xdf   : > { %335 = vxpose.xlu1.b32.start.end [1/1] (short) (narrow) %v333_v31, 16  ;;  %v1045_v31 = vand.u32 65535, %v5708_v16 }
  0xe8   : > { %377 = vxpose.xlu2.b32.start.end [1/1] (short) (narrow) %v375_v32, 16  ;;  %v1046_v32 = vshrl.u32 %v5708_v16, 16 }
  0xec   : > { %v585_v35 = vpop.permute.xlu2 %584 }
  0xef   : > { %419 = vxpose.xlu1.b32.start.end [1/1] (short) (narrow) %v417_v29, 16  ;;  %v5741_v29 = vadd.s32 96, %v5702_v14 }
  0xf8   : > { %503 = vxpose.xlu2.b32.start.end [1/1] (short) (narrow) %v501_v33, 16 }
  0xfc   : > { %v543_v34 = vpop.permute.xlu1 %542  ;;  %v705_v37 = vpop.permute.xlu2 %704 }
  0xfd   : > { %545 = vxpose.xlu0.b32.start.end [1/1] (short) (narrow) %v543_v34, 16 }
 0x108   : > { %707 = vxpose.xlu2.b32.start.end [1/1] (short) (narrow) %v705_v37, 16  ;;  %v1019_v37 = vmul.u32 43691, %v1016_v28 }
 0x10c   : > { %v663_v36 = vpop.permute.xlu0 %662  ;;  %v789_v40 = vpop.permute.xlu2 %788 }
 0x10d   : > { %587 = vxpose.xlu0.b32.start.end [1/1] (short) (narrow) %v585_v35, 16  ;;  %665 = vxpose.xlu1.b32.start.end [1/1] (short) (narrow) %v663_v36, 16  ;;  %v992_v35 = vmul.u32 43691, %v988_v27  ;;  %v1074_v36 = vand.u32 65535, %v5711_v17 }
 0x11c   : > { %v747_v39 = vpop.permute.xlu1 %746  ;;  %v873_v59 = vpop.permute.xlu2 %872 }
 0x11d   : > { %623 = vxpose.xlu0.b32.start.end [1/1] (short) (narrow) %v622_v38, 16  ;;  %875 = vxpose.xlu2.b32.start.end [1/1] (short) (narrow) %v873_v59, 16  ;;  %v1020_v38 = vmul.u32 43690, %v1016_v28  ;;  %v5758_v28 = vadd.s32 104, %v5702_v14 }
 0x11f   : > { %v1024_v59 = vshrl.u32 %v1020_v38, 16 }
 0x12d   : > { %749 = vxpose.xlu0.b32.start.end [1/1] (short) (narrow) %v747_v39, 16  ;;  %v1021_v39 = vmul.u32 43691, %v1017_v30 }
 0x13d   : > { %791 = vxpose.xlu0.b32.start.end [1/1] (short) (narrow) %v789_v40, 16  ;;  %v1049_v40 = vmul.u32 43690, %v1045_v31 }
 0x160   : > { %v308_v41 = vpop.trf.xlu0 }
 0x161   : > { %325 = vst.msk [vmem:[#allocation2 + $0x30] sm:$0xff] %vm7584_vm1, %v308_v41  ;;  %v993_v41 = vmul.u32 43690, %v988_v27 }
 0x168   : > { %v309_v42 = vpop.trf.xlu0 }
 0x169   : > { %326 = vst.msk [vmem:[#allocation2 + $0x38] sm:$0xff] %vm7584_vm1, %v309_v42 }
 0x179   : > { %v477_v43 = vpop.trf.xlu0 }
 0x17a   : > { %493 = vst.msk [vmem:[#allocation2 + $0x90] sm:$0xff] %vm7584_vm1, %v477_v43  ;;  %v996_v43 = vshll.u32 %v992_v35, 16 }
 0x181   : > { %v478_v44 = vpop.trf.xlu0  ;;  %v393_v4 = vpop.trf.xlu2 }
 0x182   : > { %494 = vst.msk [vmem:[#allocation2 + $0x98] sm:$0xff] %vm7584_vm1, %v478_v44  ;;  %v1023_v44 = vshll.u32 %v1020_v38, 16  ;;  %v5764_v38 = vadd.s32 120, %v5702_v14 }
 0x183   : > { %v351_v57 = vpop.trf.xlu1  ;;  %409 = vst.msk [vmem:[#allocation2 + $0x60] sm:$0xff] %vm7584_vm1, %v393_v4 }
 0x184   : > { %367 = vst.msk [vmem:[#allocation2 + $0x48] sm:$0xff] %vm7584_vm1, %v351_v57  ;;  %vm1027_vm3 = vc.u32 %v1019_v37, %v1023_v44 }
 0x189   : > { %v394_v5 = vpop.trf.xlu2 }
 0x18a   : > { %410 = vst.msk [vmem:[#allocation2 + $0x68] sm:$0xff] %vm7584_vm1, %v394_v5 }
 0x18b   : > { %v352_v58 = vpop.trf.xlu1 }
 0x18c   : > { %368 = vst.msk [vmem:[#allocation2 + $0x50] sm:$0xff] %vm7584_vm1, %v352_v58 }
 0x191   : > { %v519_v6 = vpop.trf.xlu2 }
 0x192   : > { %535 = vst.msk [vmem:[#allocation2 + $0xa8] sm:$0xff] %vm7584_vm1, %v519_v6 }
 0x193   : > { %v435_v60 = vpop.trf.xlu1 }
 0x194   : > { %451 = vst.msk [vmem:[#allocation2 + $0x78] sm:$0xff] %vm7584_vm1, %v435_v60 }
 0x199   : > { %v520_v7 = vpop.trf.xlu2 }
 0x19a   : > { %536 = vst.msk [vmem:[#allocation2 + $0xb0] sm:$0xff] %vm7584_vm1, %v520_v7 }
 0x19b   : > { %v436_v61 = vpop.trf.xlu1 }
 0x19c   : > { %452 = vst.msk [vmem:[#allocation2 + $0x80] sm:$0xff] %vm7584_vm1, %v436_v61  ;;  %v997_v61 = vshrl.u32 %v992_v35, 16 }
 0x1a1   : > { %v561_v45 = vpop.trf.xlu0  ;;  %v723_v9 = vpop.trf.xlu2 }
 0x1a2   : > { %577 = vst.msk [vmem:[#allocation2 + $0xc0] sm:$0xff] %vm7584_vm1, %v561_v45  ;;  %v1025_v45 = vshll.u32 %v1021_v39, 16 }
 0x1a3   : > { %739 = vst.msk [vmem:[#allocation2 + $0x120] sm:$0xff] %vm7584_vm1, %v723_v9 }
 0x1a9   : > { %v562_v46 = vpop.trf.xlu0  ;;  %v724_v10 = vpop.trf.xlu2 }
 0x1aa   : > { %578 = vst.msk [vmem:[#allocation2 + $0xc8] sm:$0xff] %vm7584_vm1, %v562_v46  ;;  %v1048_v46 = vmul.u32 43691, %v1045_v31 }
 0x1ab   : > { %740 = vst.msk [vmem:[#allocation2 + $0x128] sm:$0xff] %vm7584_vm1, %v724_v10  ;;  %v1077_v10 = vmul.u32 43691, %v1074_v36 }
 0x1b1   : > { %v603_v47 = vpop.trf.xlu0  ;;  %v681_v63 = vpop.trf.xlu1 }
 0x1b2   : > { %619 = vst.msk [vmem:[#allocation2 + $0xd8] sm:$0xff] %vm7584_vm1, %v603_v47  ;;  %v5747_v47 = vmul.u32 43691, %v1046_v32 }
 0x1b3   : > { %830 = vrot.lane.b32.xlu0 %v829_v26, %s5465_s7  ;;  %697 = vst.msk [vmem:[#allocation2 + $0x108] sm:$0xff] %vm7584_vm1, %v681_v63  ;;  %v987_v26 = vand.u32 65535, %v5702_v14 }
 0x1b4   : > { %v1054_v57 = vshll.u32 %v5747_v47, 16 }
 0x1b5   : > { %v990_v33 = vmul.u32 43691, %v987_v26  ;;  %v991_v34 = vmul.u32 43690, %v987_v26 }
 0x1b6   : > { %v891_v11 = vpop.trf.xlu2 }
 0x1b7   : > { %907 = vst.msk [vmem:[#allocation2 + $0x180] sm:$0xff] %vm7584_vm1, %v891_v11  ;;  %v994_v42 = vshll.u32 %v991_v34, 16  ;;  %v995_v55 = vshrl.u32 %v991_v34, 16  ;;  %v1078_v11 = vmul.u32 43690, %v1074_v36 }
 0x1b9   : > { %v604_v48 = vpop.trf.xlu0  ;;  %v682_v0 = vpop.trf.xlu1  ;;  %vm998_vm2 = vc.u32 %v990_v33, %v994_v42 }
 0x1ba   : > { %620 = vst.msk [vmem:[#allocation2 + $0xe0] sm:$0xff] %vm7584_vm1, %v604_v48  ;;  %v1000_v48 = vadd.s32 %v994_v42, %v990_v33  ;;  %v5761_v33 = vadd.s32 112, %v5702_v14 }
 0x1bb   : > { %698 = vst.msk [vmem:[#allocation2 + $0x110] sm:$0xff] %vm7584_vm1, %v682_v0  ;;  %v1053_v0 = vshrl.u32 %v1049_v40, 16 }
 0x1bc   : > { %vm1002_vm4 = vc.u32 %v1000_v48, %v996_v43  ;;  %v1104_v43 = vshrl.u32 %v5714_v18, 16 }
 0x1be   : > { %v892_v12 = vpop.trf.xlu2 }
 0x1bf   : > { %908 = vst.msk [vmem:[#allocation2 + $0x188] sm:$0xff] %vm7584_vm1, %v892_v12 }
 0x1c1   : > { %v639_v49 = vpop.trf.xlu0 }
 0x1c2   : > { %655 = vst.msk [vmem:[#allocation2 + $0xf0] sm:$0xff] %vm7584_vm1, %v639_v49  ;;  %v1022_v49 = vmul.u32 43690, %v1017_v30 }
 0x1c9   : > { %v640_v50 = vpop.trf.xlu0 }
 0x1ca   : > { %656 = vst.msk [vmem:[#allocation2 + $0xf8] sm:$0xff] %vm7584_vm1, %v640_v50  ;;  %v1051_v50 = vmul.u32 43690, %v1046_v32  ;;  %v1081_v32 = vshll.u32 %v1078_v11, 16 }
 0x1cc   : > { %vm1085_vm8 = vc.u32 %v1077_v10, %v1081_v32  ;;  %v1087_v36 = vadd.s32 %v1081_v32, %v1077_v10 }
 0x1d1   : > { %v765_v51 = vpop.trf.xlu0 }
 0x1d2   : > { %781 = vst.msk [vmem:[#allocation2 + $0x138] sm:$0xff] %vm7584_vm1, %v765_v51  ;;  %v5468_v51 = vmov 0  }
 0x1d3   : > { %v1003_v58 = vsel %vm1002_vm4, 1, %v5468_v51  ;;  %v1028_v60 = vsel %vm1027_vm3, 1, %v5468_v51  ;;  %v1086_v42 = vsel %vm1085_vm8, 1, %v5468_v51 }
 0x1d4   : > { %v1030_v63 = vadd.s32 %v1028_v60, %v1022_v49  ;;  %v5776_v60 = vadd.s32 136, %v5702_v14 }
 0x1d9   : > { %v766_v52 = vpop.trf.xlu0 }
 0x1da   : > { %782 = vst.msk [vmem:[#allocation2 + $0x140] sm:$0xff] %vm7584_vm1, %v766_v52  ;;  %v999_v52 = vsel %vm998_vm2, 1, %v5468_v51 }
 0x1e1   : > { %v807_v53 = vpop.trf.xlu0 }
 0x1e2   : > { %823 = vst.msk [vmem:[#allocation2 + $0x150] sm:$0xff] %vm7584_vm1, %v807_v53  ;;  %v1029_v53 = vadd.s32 %v1023_v44, %v1019_v37 }
 0x1e4   : > { %vm1031_vm5 = vc.u32 %v1029_v53, %v1025_v45  ;;  %v1082_v45 = vshrl.u32 %v1078_v11, 16  ;;  %v5772_v53 = vadd.s32 128, %v5702_v14 }
 0x1e9   : > { %v808_v54 = vpop.trf.xlu0 }
 0x1ea   : > { %824 = vst.msk [vmem:[#allocation2 + $0x158] sm:$0xff] %vm7584_vm1, %v808_v54  ;;  %v1052_v54 = vshll.u32 %v1049_v40, 16  ;;  %v1055_v40 = vshrl.u32 %v5747_v47, 16  ;;  %v1108_v47 = vmul.u32 43691, %v1104_v43 }
 0x1ec   : > { %vm1056_vm6 = vc.u32 %v1048_v46, %v1052_v54  ;;  %v1058_v4 = vadd.s32 %v1052_v54, %v1048_v46 }
 0x1ed   : > { %v1057_v7 = vsel %vm1056_vm6, 1, %v5468_v51 }
 0x1ee   : > { %v1059_v9 = vadd.s32 %v1057_v7, %v1051_v50  ;;  %vm1060_vm7 = vc.u32 %v1058_v4, %v1054_v57  ;;  %v1109_v57 = vmul.u32 43690, %v1104_v43 }
 0x1ef   : > { %v1061_v26 = vsel %vm1060_vm7, 1, %v5468_v51 }
 0x1f0   : > { %v1063_v30 = vadd.s32 %v1061_v26, %v1059_v9  ;;  %v1113_v26 = vshrl.u32 %v1108_v47, 16 }
 0x225   : > { %v831_v56 = vpop.permute.xlu0 %830 }
 0x226   : > { %833 = vxpose.xlu1.b32.start.end [1/1] (short) (narrow) %v831_v56, 16  ;;  %v1001_v56 = vadd.s32 %v999_v52, %v993_v41  ;;  %v1064_v41 = vadd.s32 %v1063_v30, %v1053_v0 }
 0x288   : > { %914 = vrot.lane.b32.xlu1 %v913_v62, %s5467_s8  ;;  %v1005_v62 = vadd.s32 %v1003_v58, %v1001_v56  ;;  %v1065_v56 = vadd.s32 %v1064_v41, %v1055_v40 }
 0x28a   : > { %v1006_v5 = vadd.s32 %v1005_v62, %v995_v55 }
 0x28c   : > { %v1007_v12 = vadd.s32 %v1006_v5, %v997_v61 }
 0x28e   : > { %v1008_v34 = vshrl.u32 %v1007_v12, 4 }
 0x290   : > { %v1009_v44 = vmul.u32 24, %v1008_v34 }
 0x292   : > { %v5779_v61 = vsub.s32 %v5702_v14, %v1009_v44 }
 0x2ca   : > { %v849_v2 = vpop.trf.xlu1 }
 0x2cb   : > { %865 = vst.msk [vmem:[#allocation2 + $0x168] sm:$0xff] %vm7584_vm1, %v849_v2  ;;  %v1026_v2 = vshrl.u32 %v1021_v39, 16  ;;  %v1103_v39 = vand.u32 65535, %v5714_v18 }
 0x2cd   : > { %v1106_v50 = vmul.u32 43691, %v1103_v39  ;;  %v1107_v52 = vmul.u32 43690, %v1103_v39 }
 0x2cf   : > { %v1110_v58 = vshll.u32 %v1107_v52, 16  ;;  %v1111_v11 = vshrl.u32 %v1107_v52, 16 }
 0x2d1   : > { %vm1114_vm10 = vc.u32 %v1106_v50, %v1110_v58 }
 0x2d2   : > { %v850_v3 = vpop.trf.xlu1  ;;  %v1115_v5 = vsel %vm1114_vm10, 1, %v5468_v51 }
 0x2d3   : > { %866 = vst.msk [vmem:[#allocation2 + $0x170] sm:$0xff] %vm7584_vm1, %v850_v3  ;;  %v1032_v3 = vsel %vm1031_vm5, 1, %v5468_v51  ;;  %v1117_v9 = vadd.s32 %v1115_v5, %v1109_v57 }
 0x2d4   : > { %v1034_v6 = vadd.s32 %v1032_v3, %v1030_v63  ;;  %v1112_v63 = vshll.u32 %v1108_v47, 16  ;;  %v1133_v3 = vshrl.u32 %v5717_v19, 16 }
 0x2d6   : > { %v1035_v13 = vadd.s32 %v1034_v6, %v1024_v59  ;;  %v1132_v59 = vand.u32 65535, %v5717_v19  ;;  %v1137_v10 = vmul.u32 43691, %v1133_v3  ;;  %v1138_v12 = vmul.u32 43690, %v1133_v3 }
 0x2d8   : > { %v1036_v35 = vadd.s32 %v1035_v13, %v1026_v2  ;;  %v1116_v2 = vadd.s32 %v1110_v58, %v1106_v50  ;;  %v1135_v6 = vmul.u32 43691, %v1132_v59  ;;  %v1136_v7 = vmul.u32 43690, %v1132_v59 }
 0x2d9   : > { %v1141_v30 = vshll.u32 %v1137_v10, 16  ;;  %v1142_v50 = vshrl.u32 %v1137_v10, 16 }
 0x2da   : > { %v1037_v48 = vshrl.u32 %v1036_v35, 4  ;;  %vm1118_vm11 = vc.u32 %v1116_v2, %v1112_v63  ;;  %v1139_v13 = vshll.u32 %v1136_v7, 16  ;;  %v1162_v35 = vshrl.u32 %v5720_v20, 16 }
 0x2db   : > { %v1119_v14 = vsel %vm1118_vm11, 1, %v5468_v51 }
 0x2dc   : > { %v1038_v0 = vmul.u32 24, %v1037_v48  ;;  %vm1143_vm12 = vc.u32 %v1135_v6, %v1139_v13  ;;  %v1145_v34 = vadd.s32 %v1139_v13, %v1135_v6  ;;  %v1166_v43 = vmul.u32 43691, %v1162_v35 }
 0x2de   : > { %vm1147_vm13 = vc.u32 %v1145_v34, %v1141_v30  ;;  %v5788_v44 = vsub.s32 %v5705_v15, %v1038_v0  ;;  %v1191_v15 = vshrl.u32 %v5723_v21, 16  ;;  %v1219_v0 = vand.u32 65535, %v5726_v22 }
 0x2e0   : > { %v1195_v5 = vmul.u32 43691, %v1191_v15  ;;  %v1223_v30 = vmul.u32 43690, %v1219_v0 }
 0x2fa   : > { %v915_v8 = vpop.permute.xlu1 %914 }
 0x2fb   : > { %917 = vxpose.xlu2.b32.start.end [1/1] (short) (narrow) %v915_v8, 16  ;;  %v1075_v8 = vshrl.u32 %v5711_v17, 16 }
 0x2fd   : > { %v1079_v27 = vmul.u32 43691, %v1075_v8  ;;  %v1080_v31 = vmul.u32 43690, %v1075_v8  ;;  %v1066_v8 = vshrl.u32 %v1065_v56, 4  ;;  %v1190_v56 = vand.u32 65535, %v5723_v21 }
 0x2ff   : > { %v1083_v37 = vshll.u32 %v1079_v27, 16  ;;  %v1088_v46 = vadd.s32 %v1086_v42, %v1080_v31  ;;  %v1084_v54 = vshrl.u32 %v1079_v27, 16  ;;  %v1121_v27 = vadd.s32 %v1119_v14, %v1117_v9 }
 0x300   : > { %v1161_v31 = vand.u32 65535, %v5720_v20  ;;  %v1193_v3 = vmul.u32 43691, %v1190_v56  ;;  %v1220_v9 = vshrl.u32 %v5726_v22, 16 }
 0x301   : > { %vm1089_vm9 = vc.u32 %v1087_v36, %v1083_v37  ;;  %v1140_v37 = vshrl.u32 %v1136_v7, 16  ;;  %v1144_v36 = vsel %vm1143_vm12, 1, %v5468_v51  ;;  %v1122_v41 = vadd.s32 %v1121_v27, %v1111_v11 }
 0x302   : > { %v1090_v49 = vsel %vm1089_vm9, 1, %v5468_v51  ;;  %v1164_v39 = vmul.u32 43691, %v1161_v31  ;;  %v1165_v40 = vmul.u32 43690, %v1161_v31  ;;  %v1146_v42 = vadd.s32 %v1144_v36, %v1138_v12 }
 0x303   : > { %v1092_v55 = vadd.s32 %v1090_v49, %v1088_v46  ;;  %v1167_v46 = vmul.u32 43690, %v1162_v35  ;;  %v1067_v49 = vmul.u32 24, %v1066_v8  ;;  %v1123_v57 = vadd.s32 %v1122_v41, %v1113_v26 }
 0x304   : > { %v1168_v48 = vshll.u32 %v1165_v40, 16  ;;  %v1171_v7 = vshrl.u32 %v1166_v43, 16  ;;  %v1196_v11 = vmul.u32 43690, %v1191_v15  ;;  %v1199_v12 = vshll.u32 %v1195_v5, 16 }
 0x305   : > { %v1093_v62 = vadd.s32 %v1092_v55, %v1082_v45  ;;  %v1148_v45 = vsel %vm1147_vm13, 1, %v5468_v51  ;;  %v5798_v10 = vsub.s32 %v5708_v16, %v1067_v49  ;;  %v1124_v26 = vshrl.u32 %v1123_v57, 4 }
 0x306   : > { %v1150_v52 = vadd.s32 %v1148_v45, %v1146_v42  ;;  %vm1172_vm14 = vc.u32 %v1164_v39, %v1168_v48  ;;  %v1174_v47 = vadd.s32 %v1168_v48, %v1164_v39  ;;  %v5803_v34 = vmul.u32 43691, %v1220_v9 }
 0x307   : > { %v1094_v4 = vadd.s32 %v1093_v62, %v1084_v54  ;;  %v1170_v54 = vshll.u32 %v1166_v43, 16  ;;  %v1173_v59 = vsel %vm1172_vm14, 1, %v5468_v51  ;;  %v1169_v62 = vshrl.u32 %v1165_v40, 16 }
 0x308   : > { %v1151_v58 = vadd.s32 %v1150_v52, %v1140_v37  ;;  %v1175_v63 = vadd.s32 %v1173_v59, %v1167_v46  ;;  %v1226_v16 = vshll.u32 %v1223_v30, 16  ;;  %v1225_v41 = vmul.u32 43690, %v1220_v9 }
 0x309   : > { %v1095_v32 = vshrl.u32 %v1094_v4, 4  ;;  %vm1176_vm15 = vc.u32 %v1174_v47, %v1170_v54  ;;  %v1194_v4 = vmul.u32 43690, %v1190_v56  ;;  %v1125_v42 = vmul.u32 24, %v1124_v26 }
 0x30a   : > { %v1177_v2 = vsel %vm1176_vm15, 1, %v5468_v51  ;;  %v1152_v6 = vadd.s32 %v1151_v58, %v1142_v50  ;;  %v1228_v45 = vshll.u32 %v5803_v34, 16  ;;  %v1248_v49 = vand.u32 65535, %v5729_v23 }
 0x30b   : > { %v1096_v55 = vmul.u32 24, %v1095_v32  ;;  %v1179_v8 = vadd.s32 %v1177_v2, %v1175_v63  ;;  %v1197_v14 = vshll.u32 %v1194_v4, 16  ;;  %v1222_v32 = vmul.u32 43691, %v1219_v0 }
 0x30c   : > { %v1153_v35 = vshrl.u32 %v1152_v6, 4  ;;  %v1198_v39 = vshrl.u32 %v1194_v4, 16  ;;  %v1249_v47 = vshrl.u32 %v5729_v23, 16  ;;  %v1277_v58 = vand.u32 65535, %v5732_v24 }
 0x30d   : > { %v5801_v13 = vsub.s32 %v5711_v17, %v1096_v55  ;;  %v1180_v27 = vadd.s32 %v1179_v8, %v1169_v62  ;;  %vm1201_vm2 = vc.u32 %v1193_v3, %v1197_v14  ;;  %v1203_v31 = vadd.s32 %v1197_v14, %v1193_v3 }
 0x30e   : > { %v1202_v36 = vsel %vm1201_vm2, 1, %v5468_v51  ;;  %v1200_v17 = vshrl.u32 %v1195_v5, 16  ;;  %vm1230_vm4 = vc.u32 %v1222_v32, %v1226_v16  ;;  %v1232_v48 = vadd.s32 %v1226_v16, %v1222_v32 }
 0x30f   : > { %v1181_v37 = vadd.s32 %v1180_v27, %v1171_v7  ;;  %v1204_v40 = vadd.s32 %v1202_v36, %v1196_v11  ;;  %vm1205_vm3 = vc.u32 %v1203_v31, %v1199_v12  ;;  %v1154_v52 = vmul.u32 24, %v1153_v35 }
 0x310   : > { %v1206_v43 = vsel %vm1205_vm3, 1, %v5468_v51  ;;  %v1231_v55 = vsel %vm1230_vm4, 1, %v5468_v51  ;;  %vm1234_vm5 = vc.u32 %v1232_v48, %v1228_v45  ;;  %v1251_v15 = vmul.u32 43691, %v1248_v49 }
 0x311   : > { %v1208_v46 = vadd.s32 %v1206_v43, %v1204_v40  ;;  %v1182_v54 = vshrl.u32 %v1181_v37, 4  ;;  %v1233_v57 = vadd.s32 %v1231_v55, %v1225_v41  ;;  %v1235_v59 = vsel %vm1234_vm5, 1, %v5468_v51 }
 0x312   : > { %v1252_v62 = vmul.u32 43690, %v1248_v49  ;;  %v1253_v63 = vmul.u32 43691, %v1249_v47  ;;  %v5815_v0 = vsub.s32 %v5714_v18, %v1125_v42  ;;  %v1227_v2 = vshrl.u32 %v1223_v30, 16 }
 0x313   : > { %v1209_v56 = vadd.s32 %v1208_v46, %v1198_v39  ;;  %v1237_v3 = vadd.s32 %v1235_v59, %v1233_v57  ;;  %v1278_v4 = vshrl.u32 %v5732_v24, 16  ;;  %v5819_v5 = vsub.s32 %v5717_v19, %v1154_v52 }
 0x314   : > { %v1254_v6 = vmul.u32 43690, %v1249_v47  ;;  %v1255_v7 = vshll.u32 %v1252_v62, 16  ;;  %v1257_v8 = vshll.u32 %v1253_v63, 16  ;;  %v1183_v9 = vmul.u32 24, %v1182_v54 }
 0x315   : > { %v1210_v11 = vadd.s32 %v1209_v56, %v1200_v17  ;;  %v1229_v14 = vshrl.u32 %v5803_v34, 16  ;;  %v1281_v12 = vmul.u32 43690, %v1277_v58  ;;  %v1280_v27 = vmul.u32 43691, %v1277_v58 }
 0x316   : > { %vm1259_vm6 = vc.u32 %v1251_v15, %v1255_v7  ;;  %v1261_v26 = vadd.s32 %v1255_v7, %v1251_v15  ;;  %v1282_v18 = vmul.u32 43691, %v1278_v4  ;;  %v1238_v31 = vadd.s32 %v1237_v3, %v1227_v2 }
 0x317   : > { %v1256_v30 = vshrl.u32 %v1252_v62, 16  ;;  %v1260_v32 = vsel %vm1259_vm6, 1, %v5468_v51  ;;  %v1284_v35 = vshll.u32 %v1281_v12, 16  ;;  %v1283_v36 = vmul.u32 43690, %v1278_v4 }
 0x318   : > { %v1262_v19 = vadd.s32 %v1260_v32, %v1254_v6  ;;  %vm1263_vm7 = vc.u32 %v1261_v26, %v1257_v8  ;;  %v1286_v16 = vshll.u32 %v1282_v18, 16  ;;  %v5825_v39 = vsub.s32 %v5720_v20, %v1183_v9 }
 0x319   : > { %v1211_v34 = vshrl.u32 %v1210_v11, 4  ;;  %v1258_v40 = vshrl.u32 %v1253_v63, 16  ;;  %v1264_v41 = vsel %vm1263_vm7, 1, %v5468_v51  ;;  %vm1288_vm8 = vc.u32 %v1280_v27, %v1284_v35 }
 0x31a   : > { %v1266_v42 = vadd.s32 %v1264_v41, %v1262_v19  ;;  %v1290_v17 = vadd.s32 %v1284_v35, %v1280_v27  ;;  %v1306_v43 = vand.u32 65535, %v5735_v25  ;;  %v1239_v45 = vadd.s32 %v1238_v31, %v1229_v14 }
 0x31b   : > { %v1285_v46 = vshrl.u32 %v1281_v12, 16  ;;  %v1289_v48 = vsel %vm1288_vm8, 1, %v5468_v51  ;;  %v1307_v49 = vshrl.u32 %v5735_v25, 16  ;;  %v1335_v20 = vand.u32 65535, %v5741_v29 }
 0x31c   : > { %v1291_v52 = vadd.s32 %v1289_v48, %v1283_v36  ;;  %vm1292_vm9 = vc.u32 %v1290_v17, %v1286_v16  ;;  %v1309_v55 = vmul.u32 43691, %v1306_v43  ;;  %v1310_v47 = vmul.u32 43690, %v1306_v43 }
 0x31d   : > { %v1293_v54 = vsel %vm1292_vm9, 1, %v5468_v51  ;;  %v1311_v56 = vmul.u32 43691, %v1307_v49  ;;  %v1287_v58 = vshrl.u32 %v1282_v18, 16  ;;  %v1336_v15 = vshrl.u32 %v5741_v29, 16 }
 0x31e   : > { %v1295_v59 = vadd.s32 %v1293_v54, %v1291_v52  ;;  %v1212_v62 = vmul.u32 24, %v1211_v34  ;;  %v1312_v63 = vmul.u32 43690, %v1307_v49  ;;  %v1313_v2 = vshll.u32 %v1310_v47, 16 }
 0x31f   : > { %v1315_v3 = vshll.u32 %v1311_v56, 16  ;;  %v1240_v4 = vshrl.u32 %v1239_v45, 4  ;;  %v1314_v7 = vshrl.u32 %v1310_v47, 16  ;;  %v1339_v8 = vmul.u32 43690, %v1335_v20 }
 0x320   : > { %v1296_v6 = vadd.s32 %v1295_v59, %v1285_v46  ;;  %vm1317_vm10 = vc.u32 %v1309_v55, %v1313_v2  ;;  %v1319_v9 = vadd.s32 %v1313_v2, %v1309_v55  ;;  %v1338_v11 = vmul.u32 43691, %v1335_v20 }
 0x321   : > { %v1340_v14 = vmul.u32 43691, %v1336_v15  ;;  %v1318_v27 = vsel %vm1317_vm10, 1, %v5468_v51  ;;  %v1342_v18 = vshll.u32 %v1339_v8, 16  ;;  %v5836_v35 = vsub.s32 %v5723_v21, %v1212_v62 }
 0x322   : > { %v1297_v26 = vadd.s32 %v1296_v6, %v1287_v58  ;;  %v1320_v31 = vadd.s32 %v1318_v27, %v1312_v63  ;;  %vm1321_vm11 = vc.u32 %v1319_v9, %v1315_v3  ;;  %v1316_v19 = vshrl.u32 %v1311_v56, 16 }
 0x323   : > { %v1344_v32 = vshll.u32 %v1340_v14, 16  ;;  %v1322_v36 = vsel %vm1321_vm11, 1, %v5468_v51  ;;  %vm1346_vm12 = vc.u32 %v1338_v11, %v1342_v18  ;;  %v1348_v34 = vadd.s32 %v1342_v18, %v1338_v11 }
 0x324   : > { %v1324_v16 = vadd.s32 %v1322_v36, %v1320_v31  ;;  %v1347_v17 = vsel %vm1346_vm12, 1, %v5468_v51  ;;  %v1365_v43 = vshrl.u32 %v5758_v28, 16  ;;  %v1393_v21 = vand.u32 65535, %v5761_v33 }
 0x325   : > { %vm1350_vm13 = vc.u32 %v1348_v34, %v1344_v32  ;;  %v1343_v54 = vshrl.u32 %v1339_v8, 16  ;;  %v1394_v47 = vshrl.u32 %v5761_v33, 16  ;;  %v1345_v63 = vshrl.u32 %v1340_v14, 16 }
 0x326   : > { %v1325_v45 = vadd.s32 %v1324_v16, %v1314_v7  ;;  %v1351_v48 = vsel %vm1350_vm13, 1, %v5468_v51  ;;  %v1369_v52 = vmul.u32 43691, %v1365_v43  ;;  %v1397_v2 = vmul.u32 43690, %v1393_v21 }
 0x327   : > { %v1398_v6 = vmul.u32 43691, %v1394_v47  ;;  %v1422_v32 = vand.u32 65535, %v5764_v38  ;;  %v1423_v16 = vshrl.u32 %v5764_v38, 16  ;;  %vm1506_vm8 = vcmp.ne.s32.totalorder %v5779_v61, 0 }
 0x328   : > { %v1373_v59 = vshll.u32 %v1369_v52, 16  ;;  %v1326_v62 = vadd.s32 %v1325_v45, %v1316_v19  ;;  %v1400_v9 = vshll.u32 %v1397_v2, 16  ;;  %v1374_v18 = vshrl.u32 %v1369_v52, 16 }
 0x329   : > { %v1401_v19 = vshrl.u32 %v1397_v2, 16  ;;  %vm1507_vm10 = vcmp.ne.s32.totalorder %v5788_v44, 0  ;;  %vm1508_vm12 = vcmp.ne.s32.totalorder %v5798_v10, 0  ;;  %vm1509_vm13 = vcmp.ne.s32.totalorder %v5801_v13, 0 }
 0x32a   : > { %v1327_v27 = vshrl.u32 %v1326_v62, 4 }
 0x394   : > { %v933_v50 = vpop.trf.xlu2 }
 0x395   : > { %949 = vst.msk [vmem:[#allocation2 + $0x198] sm:$0xff] %vm7584_vm1, %v933_v50  ;;  %v1267_v50 = vadd.s32 %v1266_v42, %v1256_v30  ;;  %v1341_v30 = vmul.u32 43690, %v1336_v15  ;;  %v1298_v42 = vshrl.u32 %v1297_v26, 4 }
 0x397   : > { %v1268_v57 = vadd.s32 %v1267_v50, %v1258_v40  ;;  %v1364_v40 = vand.u32 65535, %v5758_v28  ;;  %v1349_v46 = vadd.s32 %v1347_v17, %v1341_v30  ;;  %v1299_v15 = vmul.u32 24, %v1298_v42 }
 0x398   : > { %v1425_v42 = vmul.u32 43691, %v1422_v32  ;;  %v1426_v17 = vmul.u32 43690, %v1422_v32  ;;  %v1481_v32 = vshrl.u32 %v5776_v60, 16 }
 0x399   : > { %v1269_v12 = vshrl.u32 %v1268_v57, 4  ;;  %v1367_v49 = vmul.u32 43691, %v1364_v40  ;;  %v1368_v50 = vmul.u32 43690, %v1364_v40  ;;  %v1353_v55 = vadd.s32 %v1351_v48, %v1349_v46 }
 0x39a   : > { %v1370_v57 = vmul.u32 43690, %v1365_v43  ;;  %v5853_v26 = vsub.s32 %v5732_v24, %v1299_v15  ;;  %v1451_v24 = vand.u32 65535, %v5772_v53  ;;  %v1427_v43 = vmul.u32 43691, %v1423_v16 }
 0x39b   : > { %v1270_v41 = vmul.u32 24, %v1269_v12  ;;  %v1371_v58 = vshll.u32 %v1368_v50, 16  ;;  %v1372_v7 = vshrl.u32 %v1368_v50, 16  ;;  %v1402_v12 = vshll.u32 %v1398_v6, 16 }
 0x39c   : > { %v934_v37 = vpop.trf.xlu2  ;;  %v1403_v46 = vshrl.u32 %v1398_v6, 16  ;;  %v1452_v48 = vshrl.u32 %v5772_v53, 16  ;;  %v1428_v50 = vmul.u32 43690, %v1423_v16  ;;  %v1429_v52 = vshll.u32 %v1426_v17, 16 }
 0x39d   : > { %950 = vst.msk [vmem:[#allocation2 + $0x1a0] sm:$0xff] %vm7584_vm1, %v934_v37  ;;  %v1241_v37 = vmul.u32 24, %v1240_v4  ;;  %v5849_v56 = vsub.s32 %v5729_v23, %v1270_v41  ;;  %vm1375_vm14 = vc.u32 %v1367_v49, %v1371_v58  ;;  %v1377_v3 = vadd.s32 %v1371_v58, %v1367_v49 }
 0x39e   : > { %v1396_v4 = vmul.u32 43691, %v1393_v21  ;;  %v1376_v8 = vsel %vm1375_vm14, 1, %v5468_v51  ;;  %v1399_v23 = vmul.u32 43690, %v1394_v47  ;;  %v1328_v49 = vmul.u32 24, %v1327_v27 }
 0x39f   : > { %v5845_v20 = vsub.s32 %v5726_v22, %v1241_v37  ;;  %v1354_v22 = vadd.s32 %v1353_v55, %v1343_v54  ;;  %v1378_v11 = vadd.s32 %v1376_v8, %v1370_v57  ;;  %vm1379_vm15 = vc.u32 %v1377_v3, %v1373_v59 }
 0x3a0   : > { %v1380_v14 = vsel %vm1379_vm15, 1, %v5468_v51  ;;  %vm1404_vm2 = vc.u32 %v1396_v4, %v1400_v9  ;;  %v1406_v30 = vadd.s32 %v1400_v9, %v1396_v4  ;;  %v1431_v54 = vshll.u32 %v1427_v43, 16 }
 0x3a1   : > { %v1382_v31 = vadd.s32 %v1380_v14, %v1378_v11  ;;  %v1355_v37 = vadd.s32 %v1354_v22, %v1345_v63  ;;  %v1405_v36 = vsel %vm1404_vm2, 1, %v5468_v51  ;;  %v1430_v57 = vshrl.u32 %v1426_v17, 16 }
 0x3a2   : > { %v1407_v40 = vadd.s32 %v1405_v36, %v1399_v23  ;;  %vm1408_vm3 = vc.u32 %v1406_v30, %v1402_v12  ;;  %v1455_v58 = vmul.u32 43690, %v1451_v24  ;;  %vm1433_vm4 = vc.u32 %v1425_v42, %v1429_v52 }
 0x3a3   : > { %v1383_v34 = vadd.s32 %v1382_v31, %v1372_v7  ;;  %v1409_v41 = vsel %vm1408_vm3, 1, %v5468_v51  ;;  %v1356_v55 = vshrl.u32 %v1355_v37, 4  ;;  %v1435_v59 = vadd.s32 %v1429_v52, %v1425_v42 }
 0x3a4   : > { %v1411_v21 = vadd.s32 %v1409_v41, %v1407_v40  ;;  %v1454_v15 = vmul.u32 43691, %v1451_v24  ;;  %v1456_v62 = vmul.u32 43691, %v1452_v48  ;;  %v1434_v3 = vsel %vm1433_vm4, 1, %v5468_v51 }
 0x3a5   : > { %v1384_v45 = vadd.s32 %v1383_v34, %v1374_v18  ;;  %v1458_v4 = vshll.u32 %v1455_v58, 16  ;;  %v1436_v6 = vadd.s32 %v1434_v3, %v1428_v50  ;;  %vm1437_vm5 = vc.u32 %v1435_v59, %v1431_v54 }
 0x3a6   : > { %v1412_v47 = vadd.s32 %v1411_v21, %v1401_v19  ;;  %v1457_v22 = vmul.u32 43690, %v1452_v48  ;;  %v1460_v7 = vshll.u32 %v1456_v62, 16  ;;  %v1357_v8 = vmul.u32 24, %v1356_v55 }
 0x3a7   : > { %v1385_v63 = vshrl.u32 %v1384_v45, 4  ;;  %v1432_v11 = vshrl.u32 %v1427_v43, 16  ;;  %v1438_v23 = vsel %vm1437_vm5, 1, %v5468_v51  ;;  %vm1462_vm6 = vc.u32 %v1454_v15, %v1458_v4 }
 0x3a8   : > { %v1413_v2 = vadd.s32 %v1412_v47, %v1403_v46  ;;  %v1440_v12 = vadd.s32 %v1438_v23, %v1436_v6  ;;  %v1464_v27 = vadd.s32 %v1458_v4, %v1454_v15  ;;  %v1480_v18 = vand.u32 65535, %v5776_v60 }
 0x3a9   : > { %v1386_v14 = vmul.u32 24, %v1385_v63  ;;  %v1459_v31 = vshrl.u32 %v1455_v58, 16  ;;  %v1463_v30 = vsel %vm1462_vm6, 1, %v5468_v51  ;;  %v1485_v24 = vmul.u32 43691, %v1481_v32 }
 0x3aa   : > { %v1414_v9 = vshrl.u32 %v1413_v2, 4  ;;  %v1441_v19 = vadd.s32 %v1440_v12, %v1430_v57  ;;  %v1465_v36 = vadd.s32 %v1463_v30, %v1457_v22  ;;  %vm1466_vm7 = vc.u32 %v1464_v27, %v1460_v7 }
 0x3ab   : > { %v1467_v16 = vsel %vm1466_vm7, 1, %v5468_v51  ;;  %v1483_v34 = vmul.u32 43691, %v1480_v18  ;;  %v1484_v40 = vmul.u32 43690, %v1480_v18  ;;  %v5869_v41 = vsub.s32 %v5735_v25, %v1328_v49 }
 0x3ac   : > { %v1415_v37 = vmul.u32 24, %v1414_v9  ;;  %v1442_v42 = vadd.s32 %v1441_v19, %v1432_v11  ;;  %v1461_v17 = vshrl.u32 %v1456_v62, 16  ;;  %v1469_v43 = vadd.s32 %v1467_v16, %v1465_v36 }
 0x3ad   : > { %v5872_v45 = vsub.s32 %v5741_v29, %v1357_v8  ;;  %v1486_v46 = vmul.u32 43690, %v1481_v32  ;;  %v1487_v21 = vshll.u32 %v1484_v40, 16  ;;  %v1489_v48 = vshll.u32 %v1485_v24, 16 }
 0x3ae   : > { %v5875_v50 = vsub.s32 %v5758_v28, %v1386_v14  ;;  %v1443_v52 = vshrl.u32 %v1442_v42, 4  ;;  %v1470_v54 = vadd.s32 %v1469_v43, %v1459_v31  ;;  %v5879_v55 = vsub.s32 %v5761_v33, %v1415_v37 }
 0x3af   : > { %vm1491_vm9 = vc.u32 %v1483_v34, %v1487_v21  ;;  %v1493_v25 = vadd.s32 %v1487_v21, %v1483_v34  ;;  %v1488_v47 = vshrl.u32 %v1484_v40, 16  ;;  %v1490_v58 = vshrl.u32 %v1485_v24, 16 }
 0x3b0   : > { %v1444_v49 = vmul.u32 24, %v1443_v52  ;;  %v1471_v29 = vadd.s32 %v1470_v54, %v1461_v17  ;;  %v1492_v57 = vsel %vm1491_vm9, 1, %v5468_v51  ;;  %vm1510_vm14 = vcmp.ne.s32.totalorder %v5815_v0, 0 }
 0x3b1   : > { %v1494_v59 = vadd.s32 %v1492_v57, %v1486_v46  ;;  %vm1495_vm11 = vc.u32 %v1493_v25, %v1489_v48  ;;  %vm1524_vm6 = vcmp.lt.s32.totalorder %v5779_v61, 0  ;;  %vm1525_vm7 = vcmp.lt.s32.totalorder %v5788_v44, 0 }
 0x3b2   : > { %v1472_v28 = vshrl.u32 %v1471_v29, 4  ;;  %v1496_v15 = vsel %vm1495_vm11, 1, %v5468_v51  ;;  %v5891_v62 = vsub.s32 %v5764_v38, %v1444_v49  ;;  %vm1526_vm9 = vcmp.lt.s32.totalorder %v5798_v10, 0  ;;  %vm5906_vm4 = vmand %vm1524_vm6, %vm1506_vm8 }
 0x3b3   : > { %v1498_v33 = vadd.s32 %v1496_v15, %v1494_v59  ;;  %vm1527_vm1 = vcmp.lt.s32.totalorder %v5801_v13, 0  ;;  %vm1529_vm2 = vcmp.lt.s32.totalorder %v5819_v5, 0  ;;  %vm5916_vm0 = vmand %vm1525_vm7, %vm1507_vm10  ;;  %vm1531_vm6 = vcmp.lt.s32.totalorder %v5836_v35, 0 }
 0x3b4   : > { %v1473_v63 = vmul.u32 24, %v1472_v28  ;;  %vm1533_vm5 = vcmp.lt.s32.totalorder %v5849_v56, 0  ;;  %vm5929_vm15 = vmand %vm1526_vm9, %vm1508_vm12  ;;  %vm7628_vm8 = vcmp.lt.s32.totalorder %v5815_v0, 0  ;;  %v1560_v8 = vadd.s32 24, %v5779_v61 }
 0x3b5   : > { %v1499_v51 = vadd.s32 %v1498_v33, %v1488_v47  ;;  %vm5941_vm3 = vmand %vm1527_vm1, %vm1509_vm13  ;;  %v1561_v9 = vadd.s32 24, %v5788_v44  ;;  %vm7631_vm12 = vcmp.ne.s32.totalorder %v5819_v5, 0  ;;  %v1562_v12 = vadd.s32 24, %v5798_v10 }
 0x3b6   : > { %v5899_v2 = vsub.s32 %v5772_v53, %v1473_v63  ;;  %vm5952_vm7 = vmand %vm7628_vm8, %vm1510_vm14  ;;  %v1563_v27 = vadd.s32 24, %v5801_v13  ;;  %v1564_v18 = vadd.s32 24, %v5815_v0  ;;  %vm7634_vm14 = vcmp.ne.s32.totalorder %v5825_v39, 0 }
 0x3b7   : > { %v1500_v3 = vadd.s32 %v1499_v51, %v1490_v58  ;;  %vm5964_vm10 = vmand %vm1529_vm2, %vm7631_vm12  ;;  %vm7635_vm8 = vcmp.lt.s32.totalorder %v5825_v39, 0  ;;  %v1565_v31 = vadd.s32 24, %v5819_v5  ;;  %v1566_v30 = vadd.s32 24, %v5825_v39 }
 0x3b8   : > { %vm5975_vm1 = vmand %vm7635_vm8, %vm7634_vm14  ;;  %v1567_v32 = vadd.s32 24, %v5836_v35  ;;  %v1568_v37 = vadd.s32 24, %v5845_v20  ;;  %vm7638_vm2 = vcmp.ne.s32.totalorder %v5836_v35, 0  ;;  %v1569_v16 = vadd.s32 24, %v5849_v56 }
 0x3b9   : > { %v1501_v6 = vshrl.u32 %v1500_v3, 4  ;;  %vm5988_vm12 = vmand %vm1531_vm6, %vm7638_vm2  ;;  %v1570_v34 = vadd.s32 24, %v5853_v26  ;;  %v1571_v40 = vadd.s32 24, %v5869_v41  ;;  %vm7641_vm14 = vcmp.ne.s32.totalorder %v5845_v20, 0 }
 0x3ba   : > { %vm7642_vm8 = vcmp.lt.s32.totalorder %v5845_v20, 0  ;;  %v1572_v24 = vadd.s32 24, %v5872_v45  ;;  %v1573_v42 = vadd.s32 24, %v5875_v50  ;;  %v1574_v17 = vadd.s32 24, %v5879_v55 }
 0x3bb   : > { %v1502_v11 = vmul.u32 24, %v1501_v6  ;;  %vm5999_vm13 = vmand %vm7642_vm8, %vm7641_vm14  ;;  %v1575_v43 = vadd.s32 24, %v5891_v62  ;;  %vm7645_vm9 = vcmp.ne.s32.totalorder %v5849_v56, 0  ;;  %v1576_v21 = vadd.s32 24, %v5899_v2 }
 0x3bc   : > { %vm6011_vm11 = vmand %vm1533_vm5, %vm7645_vm9  ;;  %vm7648_vm14 = vcmp.ne.s32.totalorder %v5853_v26, 0  ;;  %vm7649_vm8 = vcmp.lt.s32.totalorder %v5853_v26, 0  ;;  %v1578_v54 = vsel %vm5906_vm4, %v1560_v8, %v5779_v61  ;;  %v1579_v25 = vsel %vm5916_vm0, %v1561_v9, %v5788_v44 }
 0x3bd   : > { %v1503_v19 = vsub.s32 %v5776_v60, %v1502_v11  ;;  %v7643_v60 = vmov 0  ;;  %v1580_v49 = vsel %vm5929_vm15, %v1562_v12, %v5798_v10  ;;  %v1581_v29 = vsel %vm5941_vm3, %v1563_v27, %v5801_v13 }
 0x3be   : > { %v7644_v60 = vsel %vm5999_vm13, 4294967295, %v7643_v60  ;;  %vm6020_vm13 = vmand %vm7649_vm8, %vm7648_vm14  ;;  %vm7652_vm5 = vcmp.ne.s32.totalorder %v5869_v41, 0  ;;  %vm7653_vm9 = vcmp.lt.s32.totalorder %v5869_v41, 0  ;;  %v1582_v61 = vsel %vm5952_vm7, %v1564_v18, %v5815_v0 }
 0x3bf   : > { %v1577_v48 = vadd.s32 24, %v1503_v19  ;;  %vm6040_vm14 = vmand %vm7653_vm9, %vm7652_vm5  ;;  %v1583_v44 = vsel %vm5964_vm10, %v1565_v31, %v5819_v5  ;;  %v1584_v10 = vsel %vm5975_vm1, %v1566_v30, %v5825_v39  ;;  %v1585_v13 = vsel %vm5988_vm12, %v1567_v32, %v5836_v35 }
 0x3c0   : > { %vm7656_vm0 = vcmp.ne.s32.totalorder %v5872_v45, 0  ;;  %vm7657_vm15 = vcmp.lt.s32.totalorder %v5872_v45, 0  ;;  %vm7660_vm4 = vnez %v7644_v60  ;;  %v1587_v5 = vsel %vm6011_vm11, %v1569_v16, %v5849_v56 }
 0x3c1   : > { %vm6060_vm3 = vmand %vm7657_vm15, %vm7656_vm0  ;;  %v1586_v0 = vsel %vm7660_vm4, %v1568_v37, %v5845_v20  ;;  %v1588_v39 = vsel %vm6020_vm13, %v1570_v34, %v5853_v26  ;;  %v1589_v35 = vsel %vm6040_vm14, %v1571_v40, %v5869_v41  ;;  %vm7661_vm10 = vcmp.ne.s32.totalorder %v5875_v50, 0 }
 0x3c2   : > { %vm7662_vm7 = vcmp.lt.s32.totalorder %v5875_v50, 0  ;;  %v1590_v20 = vsel %vm6060_vm3, %v1572_v24, %v5872_v45  ;;  %vm6087_vm11 = vcmp.lt.s32.totalorder %v1578_v54, 16  ;;  %v7665_v56 = vmov 0 }
 0x3c3   : > { %vm6080_vm1 = vmand %vm7662_vm7, %vm7661_vm10  ;;  %v7666_v56 = vsel %vm6087_vm11, 4294967295, %v7665_v56  ;;  %vm6091_vm13 = vcmp.lt.s32.totalorder %v1579_v25, 16  ;;  %v7668_v26 = vmov 0  ;;  %vm6095_vm12 = vcmp.lt.s32.totalorder %v1580_v49, 16 }
 0x3c4   : > { %7667 = vst [vmem:[#allocation12_spill] sm:$0xff] %v7666_v56  ;;  %v7669_v26 = vsel %vm6091_vm13, 4294967295, %v7668_v26  ;;  %v7671_v41 = vmov 0  ;;  %vm7674_vm8 = vcmp.ne.s32.totalorder %v5879_v55, 0  ;;  %vm7675_vm5 = vcmp.lt.s32.totalorder %v5879_v55, 0 }
 0x3c5   : > { %7670 = vst [vmem:[#allocation13_spill] sm:$0xff] %v7669_v26  ;;  %v7672_v41 = vsel %vm6095_vm12, 4294967295, %v7671_v41  ;;  %vm6103_vm9 = vmand %vm7675_vm5, %vm7674_vm8  ;;  %v1591_v45 = vsel %vm6080_vm1, %v1573_v42, %v5875_v50  ;;  %vm6110_vm14 = vcmp.lt.s32.totalorder %v1581_v29, 16  ;;  %v7678_v28 = vmov 0 }
 0x3c6   : > { %7673 = vst [vmem:[#allocation14_spill] sm:$0xff] %v7672_v41  ;;  %v7679_v28 = vsel %vm6110_vm14, 4294967295, %v7678_v28  ;;  %vm6114_vm0 = vcmp.lt.s32.totalorder %v1582_v61, 16  ;;  %v7681_v15 = vmov 0  ;;  %vm6118_vm15 = vcmp.lt.s32.totalorder %v1583_v44, 16 }
 0x3c7   : > { %7680 = vst [vmem:[#allocation15_spill] sm:$0xff] %v7679_v28  ;;  %v7682_v15 = vsel %vm6114_vm0, 4294967295, %v7681_v15  ;;  %v7684_v33 = vmov 0  ;;  %vm7687_vm3 = vcmp.ne.s32.totalorder %v5891_v62, 0  ;;  %vm7688_vm4 = vcmp.lt.s32.totalorder %v5891_v62, 0 }
 0x3c8   : > { %7683 = vst [vmem:[#allocation16_spill] sm:$0xff] %v7682_v15  ;;  %v7685_v33 = vsel %vm6118_vm15, 4294967295, %v7684_v33  ;;  %vm6126_vm10 = vmand %vm7688_vm4, %vm7687_vm3  ;;  %v1592_v50 = vsel %vm6103_vm9, %v1574_v17, %v5879_v55  ;;  %vm6133_vm7 = vcmp.lt.s32.totalorder %v1584_v10, 16  ;;  %v7691_v51 = vmov 0 }
 0x3c9   : > { %7686 = vst [vmem:[#allocation17_spill] sm:$0xff] %v7685_v33  ;;  %v7692_v51 = vsel %vm6133_vm7, 4294967295, %v7691_v51  ;;  %vm6137_vm1 = vcmp.lt.s32.totalorder %v1585_v13, 16  ;;  %v7694_v38 = vmov 0  ;;  %vm6141_vm8 = vcmp.lt.s32.totalorder %v1586_v0, 16 }
 0x3ca   : > { %7693 = vst [vmem:[#allocation18_spill] sm:$0xff] %v7692_v51  ;;  %v7695_v38 = vsel %vm6137_vm1, 4294967295, %v7694_v38  ;;  %v7697_v3 = vmov 0  ;;  %vm7700_vm5 = vcmp.ne.s32.totalorder %v5899_v2, 0  ;;  %vm7701_vm3 = vcmp.lt.s32.totalorder %v5899_v2, 0 }
 0x3cb   : > { %7696 = vst [vmem:[#allocation19_spill] sm:$0xff] %v7695_v38  ;;  %v7698_v3 = vsel %vm6141_vm8, 4294967295, %v7697_v3  ;;  %vm1558_vm4 = vmand %vm7701_vm3, %vm7700_vm5  ;;  %v1593_v55 = vsel %vm6126_vm10, %v1575_v43, %v5891_v62  ;;  %vm6152_vm9 = vcmp.lt.s32.totalorder %v1587_v5, 16  ;;  %v7702_v53 = vmov 0 }
 0x3cc   : > { %7699 = vst [vmem:[#allocation20_spill] sm:$0xff] %v7698_v3  ;;  %v7703_v53 = vsel %vm6152_vm9, 4294967295, %v7702_v53  ;;  %vm6156_vm2 = vcmp.lt.s32.totalorder %v1588_v39, 16  ;;  %v7705_v4 = vmov 0  ;;  %vm6160_vm6 = vcmp.lt.s32.totalorder %v1589_v35, 16 }
 0x3cd   : > { %7704 = vst [vmem:[#allocation21_spill] sm:$0xff] %v7703_v53  ;;  %v7706_v4 = vsel %vm6156_vm2, 4294967295, %v7705_v4  ;;  %v7708_v6 = vmov 0  ;;  %vm7711_vm8 = vcmp.ne.s32.totalorder %v1503_v19, 0  ;;  %vm7712_vm1 = vcmp.lt.s32.totalorder %v1503_v19, 0 }
 0x3ce   : > { %7707 = vst [vmem:[#allocation22_spill] sm:$0xff] %v7706_v4  ;;  %v7709_v6 = vsel %vm6160_vm6, 4294967295, %v7708_v6  ;;  %vm1559_vm7 = vmand %vm7712_vm1, %vm7711_vm8  ;;  %v1594_v22 = vsel %vm1558_vm4, %v1576_v21, %v5899_v2  ;;  %vm6167_vm5 = vcmp.lt.s32.totalorder %v1590_v20, 16  ;;  %v7713_v7 = vmov 0 }
 0x3cf   : > { %7710 = vst [vmem:[#allocation23_spill] sm:$0xff] %v7709_v6  ;;  %v7714_v7 = vsel %vm6167_vm5, 4294967295, %v7713_v7  ;;  %vm6171_vm10 = vcmp.lt.s32.totalorder %v1591_v45, 16  ;;  %v7716_v62 = vmov 0  ;;  %vm6175_vm3 = vcmp.lt.s32.totalorder %v1592_v50, 16 }
 0x3d0   : > { %7715 = vst [vmem:[#allocation24_spill] sm:$0xff] %v7714_v7  ;;  %v7717_v62 = vsel %vm6171_vm10, 4294967295, %v7716_v62  ;;  %v7719_v8 = vmov 0  ;;  %v1595_v9 = vsel %vm1559_vm7, %v1577_v48, %v1503_v19  ;;  %vm6179_vm2 = vcmp.lt.s32.totalorder %v1593_v55, 16 }
 0x3d1   : > { %7718 = vst [vmem:[#allocation25_spill] sm:$0xff] %v7717_v62  ;;  %v7720_v8 = vsel %vm6175_vm3, 4294967295, %v7719_v8  ;;  %v7722_v11 = vmov 0  ;;  %vm6183_vm1 = vcmp.lt.s32.totalorder %v1594_v22, 16  ;;  %v7725_v23 = vmov 0 }
 0x3d2   : > { %7721 = vst [vmem:[#allocation26_spill] sm:$0xff] %v7720_v8  ;;  %v7723_v11 = vsel %vm6179_vm2, 4294967295, %v7722_v11  ;;  %v7726_v23 = vsel %vm6183_vm1, 4294967295, %v7725_v23  ;;  %vm6187_vm8 = vcmp.lt.s32.totalorder %v1595_v9, 16  ;;  %v7728_v2 = vmov 0 }
 0x3d3   : > { %7724 = vst [vmem:[#allocation27_spill] sm:$0xff] %v7723_v11  ;;  %v7729_v2 = vsel %vm6187_vm8, 4294967295, %v7728_v2 }
 0x3d4   : > { %7727 = vst [vmem:[#allocation28_spill] sm:$0xff] %v7726_v23 }
 0x3d5   : > { %7730 = vst [vmem:[#allocation29_spill] sm:$0xff] %v7729_v2 }
 0x3d6 LB: >> { %v1648_v12 = vld [vmem:[#allocation6 + $0x4] sm:$0xf]  ;;  %vm7585_vm7 = vcmask 1043456   ;;  %v1928_v27 = vld [vmem:[#allocation6 + $0x8] sm:$0xf]  ;;  %s1620_s12 = smul.u32 6, %s5448_s25  ;;  %s5448_s25 = sphi %s6191_s25, %s1619_s25  }
 0x3d7   : >> { %5213 = vmatpush.msk.msra.mxu1 %vm7585_vm7, %v1648_v12  ;;  %5214 = vmatpush.msk.msra.mxu2 %vm7585_vm7, %v1648_v12  ;;  %v1646_v18 = vld [vmem:[#allocation6] sm:$0xf]  ;;  %v2305_v14 = vld [vmem:[#allocation6 + $0x10] sm:$0xf]  ;;  %v2119_v31 = vld [vmem:[#allocation6 + $0xc] sm:$0xf] }
 0x3d8   : >> { %4757 = vmatpush.msk.msra.mxu0 %vm7585_vm7, %v1648_v12  ;;  %5215 = vmatpush.msk.msra.mxu3 %vm7585_vm7, %v1648_v12  ;;  %p1621_p3 = scmp.lt.s32.totalorder %s1620_s12, 10  ;;  %vm7731_vm4 = vcmask 31744   ;;  %v2625_v60 = vld [vmem:[#allocation6 + $0x18] sm:$0xf]  ;;  %v2811_v24 = vld [vmem:[#allocation6 + $0x1c] sm:$0xf] }
 0x3d9   : >> { %4795 = vmatpush.msk.msrb.mxu2 %vm7585_vm7, %v1928_v27  ;;  %4776 = vmatpush.msk.msrb.mxu1 %vm7585_vm7, %v1646_v18  ;;  %vm7733_vm8 = vmmov %vm7731_vm4  ;;  %v2435_v42 = vld [vmem:[#allocation6 + $0x14] sm:$0xf]  ;;  %v2941_v48 = vld [vmem:[#allocation6 + $0x20] sm:$0xf]  ;;  %s1619_s25 = sadd.s32 1, %s5448_s25  }
 0x3da   : >> { %4853 = vmatpush.msk.msrb.mxu0 %vm7585_vm7, %v2305_v14  ;;  %4834 = vmatpush.msk.msrb.mxu3 %vm7585_vm7, %v2119_v31  ;;  %s8110_s12 = smov (!%p1621_p3, %s1620_s12), 10  ;;  %vm7732_vm7 = vmmov %vm7731_vm4  ;;  %p1616_p10 = scmp.ge.s32.totalorder %s1619_s25, 3  }
 0x3db   : >> { %s4644_s14 = smul.u32 24, %s8110_s12  ;;  %vm7734_vm1 = vmmov %vm7731_vm4  ;;  %s6935_s27 = smov (%p1616_p10), 0  }
 0x3dc   : >> { %vm7753_vm10 = vmmov %vm7734_vm1 }
 0x3dd   : >> { %s6210_s15 = scalar_lea.vmem [#allocation2], %s4644_s14  ;;  %s6822_s22 = scalar_lea.vmem [#allocation3], %s4644_s14 }
 0x3de   : >> { %v6213_v30 = vld [vmem:[%s6210_s15 + $0x40] sm:$0xff]  ;;  %v6216_v32 = vld [vmem:[%s6210_s15 + $0x68] sm:$0xff]  ;;  %v6223_v37 = vld [vmem:[%s6210_s15 + $0x18] sm:$0xff] }
 0x3df   : >> { %4763 = vmatmul.msk.f32.vlgmr.msra.gmra.mxu1 %vm7731_vm4, %v6213_v30  ;;  %4768 = vmatmul.msk.f32.vlgmr.msra.gmra.mxu2 %vm7732_vm7, %v6216_v32  ;;  %v6228_v19 = vld [vmem:[%s6210_s15 + $0x90] sm:$0xff]  ;;  %v6233_v36 = vld [vmem:[%s6210_s15 + $0x48] sm:$0xff]  ;;  %v6239_v34 = vld [vmem:[%s6210_s15 + $0x20] sm:$0xff]  ;;  %v1781_v5 = vrot.slane %v6223_v37, 7  ;;  %v1931_v39 = vrot.slane %v6223_v37, 1  ;;  %v1791_v20 = vrot.slane %v6213_v30, 7 }
 0x3e0   : >> { %4758 = vmatmul.msk.f32.vlgmr.msra.gmra.mxu0 %vm7733_vm8, %v6223_v37  ;;  %4773 = vmatmul.msk.f32.vlgmr.msra.gmra.mxu3 %vm7734_vm1, %v6228_v19  ;;  %v6236_v16 = vld [vmem:[%s6210_s15 + $0x70] sm:$0xff]  ;;  %vm7735_vm7 = vmmov %vm7734_vm1  ;;  %v6246_v40 = vld [vmem:[%s6210_s15 + $0x98] sm:$0xff]  ;;  %vm7737_vm8 = vcmask 1043456   ;;  %v1932_v35 = vrot.slane %v6239_v34, 1  ;;  %v1783_v50 = vrot.slane %v6239_v34, 7  ;;  %v1793_v22 = vrot.slane %v6233_v36, 7 }
 0x3e1   : >> { %vm7736_vm4 = vmmov %vm7734_vm1  ;;  %4911 = vmatpush.msk.msra.mxu2 %vm7737_vm8, %v2625_v60  ;;  %v6256_v17 = vld [vmem:[%s6210_s15 + $0x50] sm:$0xff]  ;;  %v6259_v43 = vld [vmem:[%s6210_s15 + $0x78] sm:$0xff]  ;;  %v1960_v6 = vrot.slane %v6228_v19, 1  ;;  %v1962_v15 = vrot.slane %v6246_v40, 1 }
 0x3e2   : >> { %vm7738_vm2 = vmmov %vm7737_vm8  ;;  %v4740_v46 = vld [vmem:[%s6210_s15 + $0x28] sm:$0xff]  ;;  %v6267_v21 = vld [vmem:[%s6210_s15 + $0xa0] sm:$0xff]  ;;  %v1795_v14 = vrot.slane %v6256_v17, 7 }
 0x3e3   : >> { %4930 = vmatpush.msk.msra.mxu3 %vm7738_vm2, %v2811_v24  ;;  %vm7739_vm3 = vmmov %vm7738_vm2  ;;  %7742 = vst [vmem:[#allocation30_spill] sm:$0xff] %v6267_v21  ;;  %v4741_v52 = vld [vmem:[%s6210_s15 + $0x30] sm:$0xff]  ;;  %v1785_v54 = vrot.slane %v4740_v46, 7  ;;  %v6275_v49 = vld [vmem:[%s6210_s15 + $0x58] sm:$0xff]  ;;  %v1934_v55 = vrot.slane %v4740_v46, 1 }
 0x3e4   : >> { %4872 = vmatpush.msk.msra.mxu1 %vm7739_vm3, %v2435_v42  ;;  %vm7743_vm2 = vmmov %vm7734_vm1  ;;  %4949 = vmatpush.msk.msra.mxu0 %vm7739_vm3, %v2941_v48  ;;  %v1787_v25 = vrot.slane %v4741_v52, 7  ;;  %v6278_v29 = vld [vmem:[%s6210_s15 + $0x80] sm:$0xff]  ;;  %v4742_v61 = vld [vmem:[%s6210_s15 + $0x38] sm:$0xff]  ;;  %v1936_v18 = vrot.slane %v4741_v52, 1  ;;  %v1797_v24 = vrot.slane %v6275_v49, 7  ;;  %v1940_v48 = vrot.slane %v6213_v30, 1 }
 0x3e5   : >> { %vm7744_vm8 = vmmov %vm7734_vm1  ;;  %v1789_v44 = vrot.slane %v4742_v61, 7  ;;  %v6289_v10 = vld [vmem:[%s6210_s15 + $0x60] sm:$0xff]  ;;  %v6292_v13 = vld [vmem:[%s6210_s15 + $0x88] sm:$0xff]  ;;  %v1938_v60 = vrot.slane %v4742_v61, 1 }
 0x3e6   : >> { %vm7747_vm3 = vmmov %vm7734_vm1  ;;  %v4737_v57 = vld [vmem:[%s6210_s15 + $0x10] sm:$0xff] }
 0x3e7   : >> { %4764 = vmatmul.msk.f32.gmra.mxu1 %vm7735_vm7, %v6233_v36  ;;  %4769 = vmatmul.msk.f32.gmra.mxu2 %vm7736_vm4, %v6236_v16  ;;  %vm7740_vm7 = vmmov %vm7734_vm1  ;;  %v1780_v58 = vrot.slane %v4737_v57, 7  ;;  %v1944_v57 = vrot.slane %v6256_v17, 1 }
 0x3e8   : >> { %4759 = vmatmul.msk.f32.gmra.mxu0 %vm7734_vm1, %v6239_v34  ;;  %4774 = vmatmul.msk.f32.gmra.mxu3 %vm7740_vm7, %v6246_v40  ;;  %vm7741_vm4 = vmmov %vm7734_vm1  ;;  %vm1779_vm7 = vcmask 1040384  }
 0x3e9   : >> { %v2141_v47 = vsel %vm1779_vm7, %v1785_v54, %v1787_v25  ;;  %v2143_v0 = vsel %vm1779_vm7, %v1787_v25, %v1789_v44  ;;  %v1782_v59 = vsel %vm1779_vm7, %v1780_v58, %v1781_v5  ;;  %v2145_v63 = vsel %vm1779_vm7, %v1789_v44, %v1791_v20 }
 0x3ea   : >> { %v1784_v9 = vsel %vm1779_vm7, %v1781_v5, %v1783_v50  ;;  %v6320_v27 = vsel %vm1779_vm7, %v1791_v20, %v1793_v22  ;;  %v1786_v31 = vsel %vm1779_vm7, %v1783_v50, %v1785_v54  ;;  %v6331_v34 = vsel %vm1779_vm7, %v1793_v22, %v1795_v14 }
 0x3eb   : >> { %v1805_v58 = vrot.slane %v6259_v43, 7  ;;  %v1950_v22 = vrot.slane %v6216_v32, 1 }
 0x3ef   : >> { %4765 = vmatmul.msk.f32.gmra.mxu1 %vm7741_vm4, %v6256_v17  ;;  %4770 = vmatmul.msk.f32.gmra.mxu2 %vm7734_vm1, %v6259_v43  ;;  %vm7745_vm4 = vmmov %vm7734_vm1 }
 0x3f0   : >> { %4760 = vmatmul.msk.f32.gmra.mxu0 %vm7743_vm2, %v4740_v46  ;;  %4775 = vmatmul.msk.f32.gmra.mxu3 %vm7744_vm8, %v6267_v21  ;;  %vm7746_vm2 = vmmov %vm7734_vm1  ;;  %v6345_v46 = vsel %vm1779_vm7, %v1795_v14, %v1797_v24  ;;  %v1952_v14 = vrot.slane %v6236_v16, 1 }
 0x3f1   : >> { %vm7748_vm8 = vmmov %vm7734_vm1 }
 0x3f7   : >> { %4766 = vmatmul.msk.f32.gmra.mxu1 %vm7745_vm4, %v6275_v49  ;;  %4771 = vmatmul.msk.f32.gmra.mxu2 %vm7734_vm1, %v6278_v29  ;;  %vm7749_vm4 = vmmov %vm7734_vm1 }
 0x3f8   : >> { %4761 = vmatmul.msk.f32.gmra.mxu0 %vm7746_vm2, %v4741_v52  ;;  %4835 = vmatmul.msk.f32.vlgmr.msrb.gmra.mxu3 %vm7747_vm3, %v2141_v47  ;;  %vm1930_vm2 = vcmask 1046528   ;;  %vm7750_vm3 = vmmov %vm7734_vm1 }
 0x3f9   : >> { %v1933_v45 = vsel %vm1930_vm2, %v1931_v39, %v1932_v35  ;;  %v1935_v12 = vsel %vm1930_vm2, %v1932_v35, %v1934_v55  ;;  %v1937_v37 = vsel %vm1930_vm2, %v1934_v55, %v1936_v18  ;;  %v6339_v42 = vsel %vm1930_vm2, %v1936_v18, %v1938_v60 }
 0x3fa   : >> { %v6354_v54 = vsel %vm1930_vm2, %v1938_v60, %v1940_v48  ;;  %v1946_v35 = vrot.slane %v6275_v49, 1  ;;  %v6569_v56 = vsel %vm1930_vm2, %v1960_v6, %v1962_v15 }
 0x3fc   : >> { %v6400_v20 = vsel %vm1930_vm2, %v1944_v57, %v1946_v35 }
 0x3ff   : >> { %4767 = vmatmul.msk.f32.gmra.mxu1 %vm7748_vm8, %v6289_v10  ;;  %4772 = vmatmul.msk.f32.gmra.mxu2 %vm7749_vm4, %v6292_v13  ;;  %vm7751_vm8 = vmmov %vm7734_vm1 }
 0x400   : >> { %4762 = vmatmul.msk.f32.gmra.mxu0 %vm7734_vm1, %v4742_v61  ;;  %4836 = vmatmul.msk.f32.gmra.mxu3 %vm7750_vm3, %v2143_v0  ;;  %vm7752_vm4 = vmmov %vm7734_vm1 }
 0x401   : >> { %vm7754_vm3 = vmmov %vm7734_vm1 }
 0x407   : >> { %4777 = vmatmul.msk.f32.vlgmr.msrb.gmra.mxu1 %vm7751_vm8, %v1782_v59  ;;  %4796 = vmatmul.msk.f32.vlgmr.msrb.gmra.mxu2 %vm7752_vm4, %v1933_v45  ;;  %vm7755_vm8 = vmmov %vm7734_vm1  ;;  %v1948_v45 = vrot.slane %v6289_v10, 1 }
 0x408   : >> { %4854 = vmatmul.msk.f32.vlgmr.msrb.gmra.mxu0 %vm7753_vm10, %v4741_v52  ;;  %4837 = vmatmul.msk.f32.gmra.mxu3 %vm7734_vm1, %v2145_v63  ;;  %vm7756_vm4 = vmmov %vm7734_vm1  ;;  %v1799_v52 = vrot.slane %v6289_v10, 7 }
 0x409   : >> { %vm7757_vm10 = vmmov %vm7734_vm1  ;;  %v6416_v50 = vsel %vm1930_vm2, %v1946_v35, %v1948_v45 }
 0x40a   : >> { %v6360_v25 = vsel %vm1779_vm7, %v1797_v24, %v1799_v52  ;;  %v1954_v24 = vrot.slane %v6259_v43, 1 }
 0x40f   : >> { %4778 = vmatmul.msk.f32.gmra.mxu1 %vm7754_vm3, %v1784_v9  ;;  %4797 = vmatmul.msk.f32.gmra.mxu2 %vm7755_vm8, %v1935_v12  ;;  %vm7758_vm3 = vmmov %vm7734_vm1  ;;  %v1809_v9 = vrot.slane %v6292_v13, 7  ;;  %v6432_v12 = vsel %vm1930_vm2, %v1948_v45, %v1950_v22 }
 0x410   : >> { %4855 = vmatmul.msk.f32.gmra.mxu0 %vm7756_vm4, %v4742_v61  ;;  %4838 = vmatmul.msk.f32.gmra.mxu3 %vm7757_vm10, %v6320_v27  ;;  %vm7759_vm8 = vmmov %vm7734_vm1 }
 0x411   : >> { %vm7760_vm4 = vmmov %vm7734_vm1 }
 0x412   : >> { %vm7761_vm10 = vmmov %vm7734_vm1 }
 0x417   : >> { %4779 = vmatmul.msk.f32.gmra.mxu1 %vm7734_vm1, %v1786_v31  ;;  %4798 = vmatmul.msk.f32.gmra.mxu2 %vm7758_vm3, %v1937_v37  ;;  %vm7762_vm3 = vmmov %vm7734_vm1  ;;  %v1811_v31 = vrot.slane %v6228_v19, 7  ;;  %v6448_v37 = vsel %vm1930_vm2, %v1950_v22, %v1952_v14 }
 0x418   : >> { %4856 = vmatmul.msk.f32.gmra.mxu0 %vm7759_vm8, %v6213_v30  ;;  %4839 = vmatmul.msk.f32.gmra.mxu3 %vm7760_vm4, %v6331_v34  ;;  %vm7763_vm8 = vmmov %vm7734_vm1  ;;  %v1942_v30 = vrot.slane %v6233_v36, 1 }
 0x419   : >> { %vm7764_vm4 = vmmov %vm7734_vm1  ;;  %v6455_v60 = vsel %vm1779_vm7, %v1809_v9, %v1811_v31 }
 0x41a   : >> { %v6369_v61 = vsel %vm1930_vm2, %v1940_v48, %v1942_v30  ;;  %v6384_v5 = vsel %vm1930_vm2, %v1942_v30, %v1944_v57  ;;  %v1813_v48 = vrot.slane %v6246_v40, 7  ;;  %v6466_v30 = vsel %vm1930_vm2, %v1952_v14, %v1954_v24 }
 0x41c   : >> { %v6475_v57 = vsel %vm1779_vm7, %v1811_v31, %v1813_v48  ;;  %v1958_v31 = vrot.slane %v6292_v13, 1 }
 0x41d   : >> { %7788 = vst [vmem:[#allocation31_spill] sm:$0xff] %v6475_v57 }
 0x41f   : >> { %4780 = vmatmul.msk.f32.gmra.mxu1 %vm7761_vm10, %v2141_v47  ;;  %4799 = vmatmul.msk.f32.gmra.mxu2 %vm7734_vm1, %v6339_v42  ;;  %vm7765_vm10 = vmmov %vm7734_vm1  ;;  %v1801_v47 = vrot.slane %v6216_v32, 7 }
 0x420   : >> { %4857 = vmatmul.msk.f32.gmra.mxu0 %vm7762_vm3, %v6233_v36  ;;  %4840 = vmatmul.msk.f32.gmra.mxu3 %vm7763_vm8, %v6345_v46  ;;  %vm7766_vm3 = vmmov %vm7734_vm1 }
 0x421   : >> { %vm7767_vm8 = vmmov %vm7734_vm1  ;;  %v6375_v44 = vsel %vm1779_vm7, %v1799_v52, %v1801_v47 }
 0x427   : >> { %4781 = vmatmul.msk.f32.gmra.mxu1 %vm7764_vm4, %v2143_v0  ;;  %4800 = vmatmul.msk.f32.gmra.mxu2 %vm7765_vm10, %v6354_v54  ;;  %vm7768_vm4 = vmmov %vm7734_vm1  ;;  %v1803_v0 = vrot.slane %v6236_v16, 7 }
 0x428   : >> { %4858 = vmatmul.msk.f32.gmra.mxu0 %vm7734_vm1, %v6256_v17  ;;  %4841 = vmatmul.msk.f32.gmra.mxu3 %vm7766_vm3, %v6360_v25  ;;  %vm7769_vm10 = vmmov %vm7734_vm1 }
 0x429   : >> { %vm7770_vm3 = vmmov %vm7734_vm1  ;;  %v6391_v39 = vsel %vm1779_vm7, %v1801_v47, %v1803_v0  ;;  %v6407_v59 = vsel %vm1779_vm7, %v1803_v0, %v1805_v58  ;;  %v1956_v0 = vrot.slane %v6278_v29, 1 }
 0x42f   : >> { %4782 = vmatmul.msk.f32.gmra.mxu1 %vm7767_vm8, %v2145_v63  ;;  %4801 = vmatmul.msk.f32.gmra.mxu2 %vm7768_vm4, %v6369_v61  ;;  %vm7771_vm8 = vmmov %vm7734_vm1  ;;  %v1807_v63 = vrot.slane %v6278_v29, 7 }
 0x430   : >> { %4859 = vmatmul.msk.f32.gmra.mxu0 %vm7769_vm10, %v6275_v49  ;;  %4842 = vmatmul.msk.f32.gmra.mxu3 %vm7734_vm1, %v6375_v44  ;;  %vm7772_vm4 = vmmov %vm7734_vm1 }
 0x431   : >> { %vm7773_vm10 = vmmov %vm7734_vm1  ;;  %v6423_v55 = vsel %vm1779_vm7, %v1805_v58, %v1807_v63  ;;  %v6439_v18 = vsel %vm1779_vm7, %v1807_v63, %v1809_v9  ;;  %v1815_v58 = vrot.slane %v6267_v21, 7  ;;  %v6488_v63 = vsel %vm1930_vm2, %v1954_v24, %v1956_v0  ;;  %v6505_v24 = vld [vmem:[%s6210_s15 + $0xa8] sm:$0xff] }
 0x432   : >> { %v2170_v23 = vrot.slane %v6505_v24, 7 }
 0x433   : >> { %v6499_v14 = vsel %vm1779_vm7, %v1813_v48, %v1815_v58  ;;  %v6515_v48 = vsel %vm1930_vm2, %v1956_v0, %v1958_v31  ;;  %v6532_v0 = vld [vmem:[%s6210_s15 + $0xb0] sm:$0xff] }
 0x434   : >> { %v6526_v7 = vsel %vm1779_vm7, %v1815_v58, %v2170_v23  ;;  %v2172_v53 = vrot.slane %v6532_v0, 7  ;;  %v6542_v58 = vsel %vm1930_vm2, %v1958_v31, %v1960_v6  ;;  %v6559_v31 = vld [vmem:[%s6210_s15 + $0xb8] sm:$0xff] }
 0x435   : >> { %7798 = vst [vmem:[#allocation35_spill] sm:$0xff] %v6526_v7  ;;  %v7606_v41 = vrot.slane %v6559_v31, 7 }
 0x436   : >> { %v6553_v33 = vsel %vm1779_vm7, %v2170_v23, %v2172_v53 }
 0x437   : >> { %4783 = vmatmul.msk.f32.gmra.mxu1 %vm7770_vm3, %v6320_v27  ;;  %4802 = vmatmul.msk.f32.gmra.mxu2 %vm7771_vm8, %v6384_v5  ;;  %vm7774_vm3 = vmmov %vm7734_vm1  ;;  %7805 = vst [vmem:[#allocation38_spill] sm:$0xff] %v6553_v33 }
 0x438   : >> { %4860 = vmatmul.msk.f32.gmra.mxu0 %vm7772_vm4, %v6289_v10  ;;  %4843 = vmatmul.msk.f32.gmra.mxu3 %vm7773_vm10, %v6391_v39  ;;  %vm7775_vm8 = vmmov %vm7734_vm1 }
 0x439   : >> { %vm7776_vm4 = vmmov %vm7734_vm1 }
 0x43a   : >> { %vm7777_vm10 = vmmov %vm7734_vm1 }
 0x43f   : >> { %4784 = vmatmul.msk.f32.gmra.mxu1 %vm7734_vm1, %v6331_v34  ;;  %4803 = vmatmul.msk.f32.gmra.mxu2 %vm7774_vm3, %v6400_v20  ;;  %vm7778_vm3 = vmmov %vm7734_vm1 }
 0x440   : >> { %4861 = vmatmul.msk.f32.gmra.mxu0 %vm7775_vm8, %v6216_v32  ;;  %4844 = vmatmul.msk.f32.gmra.mxu3 %vm7776_vm4, %v6407_v59  ;;  %vm7779_vm8 = vmmov %vm7734_vm1 }
 0x441   : >> { %vm7780_vm4 = vmmov %vm7734_vm1 }
 0x447   : >> { %4785 = vmatmul.msk.f32.gmra.mxu1 %vm7777_vm10, %v6345_v46  ;;  %4804 = vmatmul.msk.f32.gmra.mxu2 %vm7734_vm1, %v6416_v50  ;;  %vm7781_vm10 = vmmov %vm7734_vm1 }
 0x448   : >> { %4862 = vmatmul.msk.f32.gmra.mxu0 %vm7778_vm3, %v6236_v16  ;;  %4845 = vmatmul.msk.f32.gmra.mxu3 %vm7779_vm8, %v6423_v55  ;;  %vm7782_vm3 = vmmov %vm7734_vm1 }
 0x449   : >> { %vm7783_vm8 = vmmov %vm7734_vm1 }
 0x44f   : >> { %4786 = vmatmul.msk.f32.gmra.mxu1 %vm7780_vm4, %v6360_v25  ;;  %4805 = vmatmul.msk.f32.gmra.mxu2 %vm7781_vm10, %v6432_v12  ;;  %vm7784_vm4 = vmmov %vm7734_vm1 }
 0x450   : >> { %4863 = vmatmul.msk.f32.gmra.mxu0 %vm7734_vm1, %v6259_v43  ;;  %4846 = vmatmul.msk.f32.gmra.mxu3 %vm7782_vm3, %v6439_v18  ;;  %vm7785_vm10 = vmmov %vm7734_vm1 }
 0x451   : >> { %vm7786_vm3 = vmmov %vm7734_vm1 }
 0x457   : >> { %4787 = vmatmul.msk.f32.gmra.mxu1 %vm7783_vm8, %v6375_v44  ;;  %4806 = vmatmul.msk.f32.gmra.mxu2 %vm7784_vm4, %v6448_v37  ;;  %vm7787_vm8 = vmmov %vm7734_vm1 }
 0x458   : >> { %4864 = vmatmul.msk.f32.gmra.mxu0 %vm7785_vm10, %v6278_v29  ;;  %4847 = vmatmul.msk.f32.gmra.mxu3 %vm7734_vm1, %v6455_v60  ;;  %vm7789_vm4 = vmmov %vm7734_vm1 }
 0x459   : >> { %vm7790_vm10 = vmmov %vm7734_vm1 }
 0x45c   : >> { %v6463_v52 = vpop.f32.mrf.mxu1 }
 0x45d   : >> { %v6468_v47 = vpop.f32.mrf.mxu0 }
 0x45f   : >> { %4788 = vmatmul.msk.f32.gmra.mxu1 %vm7786_vm3, %v6391_v39  ;;  %4807 = vmatmul.msk.f32.gmra.mxu2 %vm7787_vm8, %v6466_v30  ;;  %vm7792_vm3 = vmmov %vm7734_vm1 }
 0x460   : >> { %4865 = vmatmul.msk.f32.gmra.mxu0 %vm7789_vm4, %v6292_v13  ;;  %4848 = vmatmul.msk.f32.gmra.mxu3 %vm7790_vm10, %v6475_v57  ;;  %vm7793_vm8 = vmmov %vm7734_vm1 }
 0x461   : >> { %vm7795_vm4 = vmmov %vm7734_vm1 }
 0x462   : >> { %v6480_v35 = vpop.f32.mrf.mxu2  ;;  %vm7797_vm10 = vmmov %vm7734_vm1 }
 0x463   : >> { %v6492_v9 = vpop.f32.mrf.mxu3 }
 0x464   : >> { %v6485_v45 = vpop.f32.mrf.mxu1  ;;  %7791 = vst [vmem:[#allocation32_spill] sm:$0xff] %v6492_v9 }
 0x465   : >> { %v6490_v22 = vpop.f32.mrf.mxu0 }
 0x467   : >> { %4789 = vmatmul.msk.f32.gmra.mxu1 %vm7734_vm1, %v6407_v59  ;;  %4808 = vmatmul.msk.f32.gmra.mxu2 %vm7792_vm3, %v6488_v63  ;;  %vm7799_vm3 = vmmov %vm7734_vm1 }
 0x468   : >> { %4866 = vmatmul.msk.f32.gmra.mxu0 %vm7793_vm8, %v6228_v19  ;;  %4849 = vmatmul.msk.f32.gmra.mxu3 %vm7795_vm4, %v6499_v14  ;;  %vm7801_vm8 = vmmov %vm7734_vm1 }
 0x469   : >> { %vm7803_vm4 = vmmov %vm7734_vm1 }
 0x46a   : >> { %v6507_v2 = vpop.f32.mrf.mxu2 }
 0x46b   : >> { %7794 = vst [vmem:[#allocation33_spill] sm:$0xff] %v6507_v2  ;;  %v6519_v62 = vpop.f32.mrf.mxu3 }
 0x46c   : >> { %v6512_v11 = vpop.f32.mrf.mxu1  ;;  %7796 = vst [vmem:[#allocation34_spill] sm:$0xff] %v6519_v62  ;;  %v1964_v62 = vrot.slane %v6267_v21, 1 }
 0x46d   : >> { %v6517_v8 = vpop.f32.mrf.mxu0 }
 0x46f   : >> { %4790 = vmatmul.msk.f32.gmra.mxu1 %vm7797_vm10, %v6423_v55  ;;  %4809 = vmatmul.msk.f32.gmra.mxu2 %vm7734_vm1, %v6515_v48  ;;  %vm7804_vm10 = vmmov %vm7734_vm1 }
 0x470   : >> { %4867 = vmatmul.msk.f32.gmra.mxu0 %vm7799_vm3, %v6246_v40  ;;  %4850 = vmatmul.msk.f32.gmra.mxu3 %vm7801_vm8, %v6526_v7  ;;  %vm7807_vm3 = vmmov %vm7734_vm1 }
 0x471   : >> { %vm7808_vm8 = vmmov %vm7734_vm1 }
 0x472   : >> { %v6534_v4 = vpop.f32.mrf.mxu2 }
 0x473   : >> { %7800 = vst [vmem:[#allocation36_spill] sm:$0xff] %v6534_v4  ;;  %v6546_v51 = vpop.f32.mrf.mxu3 }
 0x474   : >> { %v6539_v3 = vpop.f32.mrf.mxu1  ;;  %7802 = vst [vmem:[#allocation37_spill] sm:$0xff] %v6546_v51  ;;  %v6580_v51 = vsel %vm1779_vm7, %v2172_v53, %v7606_v41  ;;  %v1966_v53 = vrot.slane %v6505_v24, 1 }
 0x475   : >> { %v6544_v38 = vpop.f32.mrf.mxu0  ;;  %7810 = vst [vmem:[#allocation40_spill] sm:$0xff] %v6580_v51 }
 0x476   : >> { %v6605_v4 = vsel %vm1930_vm2, %v1964_v62, %v1966_v53 }
 0x477   : >> { %4791 = vmatmul.msk.f32.gmra.mxu1 %vm7803_vm4, %v6439_v18  ;;  %4810 = vmatmul.msk.f32.gmra.mxu2 %vm7804_vm10, %v6542_v58  ;;  %vm7809_vm4 = vmmov %vm7734_vm1 }
 0x478   : >> { %4868 = vmatmul.msk.f32.gmra.mxu0 %vm7734_vm1, %v6267_v21  ;;  %4851 = vmatmul.msk.f32.gmra.mxu3 %vm7807_vm3, %v6553_v33  ;;  %vm7811_vm10 = vmmov %vm7734_vm1  ;;  %v6590_v33 = vsel %vm1930_vm2, %v1962_v15, %v1964_v62 }
 0x479   : >> { %7813 = vst [vmem:[#allocation42_spill] sm:$0xff] %v6590_v33  ;;  %vm7814_vm3 = vmmov %vm7734_vm1 }
 0x47a   : >> { %v6561_v28 = vpop.f32.mrf.mxu2 }
 0x47b   : >> { %7806 = vst [vmem:[#allocation39_spill] sm:$0xff] %v6561_v28  ;;  %v2232_v1 = vpop.f32.mrf.mxu3 }
 0x47c   : >> { %v6566_v26 = vpop.f32.mrf.mxu1 }
 0x47d   : >> { %v6571_v23 = vpop.f32.mrf.mxu0 }
 0x47f   : >> { %4792 = vmatmul.msk.f32.gmra.mxu1 %vm7808_vm8, %v6455_v60  ;;  %4811 = vmatmul.msk.f32.gmra.mxu2 %vm7809_vm4, %v6569_v56  ;;  %vm7815_vm8 = vmmov %vm7734_vm1 }
 0x480   : >> { %4869 = vmatmul.msk.f32.gmra.mxu0 %vm7811_vm10, %v6505_v24  ;;  %4852 = vmatmul.msk.f32.gmra.mxu3 %vm7734_vm1, %v6580_v51  ;;  %vm7816_vm4 = vmmov %vm7734_vm1 }
 0x481   : >> { %vm7817_vm10 = vmmov %vm7734_vm1 }
 0x482   : >> { %v6585_v6 = vpop.f32.mrf.mxu2 }
 0x483   : >> { %7812 = vst [vmem:[#allocation41_spill] sm:$0xff] %v6585_v6  ;;  %v2235_v28 = vpop.f32.mrf.mxu3 }
 0x484   : >> { %v1873_v9 = vpop.f32.mrf.mxu1 }
 0x485   : >> { %v2362_v7 = vpop.f32.mrf.mxu0  ;;  %v1874_v41 = vadd.f32 %v1873_v9, %v6468_v47 }
 0x487   : >> { %4793 = vmatmul.msk.f32.gmra.mxu1 %vm7814_vm3, %v6475_v57  ;;  %4812 = vmatmul.msk.f32.gmra.mxu2 %vm7815_vm8, %v6590_v33  ;;  %vm7818_vm3 = vmmov %vm7734_vm1 }
 0x488   : >> { %4870 = vmatmul.msk.f32.gmra.mxu0 %vm7816_vm4, %v6532_v0  ;;  %4931 = vmatmul.msk.f32.vlgmr.msra.gmra.mxu3 %vm7817_vm10, %v6233_v36  ;;  %vm7819_vm8 = vmmov %vm7734_vm1 }
 0x489   : >> { %vm7820_vm4 = vmmov %vm7734_vm1 }
 0x48a   : >> { %v2024_v51 = vpop.f32.mrf.mxu2  ;;  %vm7821_vm10 = vmmov %vm7734_vm1 }
 0x48b   : >> { %v2078_v15 = vadd.f32 %v2024_v51, %v1874_v41  ;;  %v2238_v21 = vpop.f32.mrf.mxu3 }
 0x48c   : >> { %v1876_v6 = vpop.f32.mrf.mxu1 }
 0x48d   : >> { %v2286_v57 = vadd.f32 %v2232_v1, %v2078_v15  ;;  %v2365_v33 = vpop.f32.mrf.mxu0  ;;  %v1877_v41 = vadd.f32 %v1876_v6, %v6490_v22 }
 0x48f   : >> { %v6607_v2 = vadd.f32 %v2362_v7, %v2286_v57  ;;  %4794 = vmatmul.msk.f32.gmra.mxu1 %vm7734_vm1, %v6499_v14  ;;  %4813 = vmatmul.msk.f32.gmra.mxu2 %vm7818_vm3, %v6605_v4  ;;  %vm7822_vm3 = vmmov %vm7734_vm1 }
 0x490   : >> { %4871 = vmatmul.msk.f32.gmra.mxu0 %vm7819_vm8, %v6559_v31  ;;  %4932 = vmatmul.msk.f32.gmra.mxu3 %vm7820_vm4, %v6256_v17  ;;  %vm7823_vm8 = vmmov %vm7734_vm1 }
 0x491   : >> { %vm7824_vm4 = vmmov %vm7734_vm1 }
 0x492   : >> { %v2027_v51 = vpop.f32.mrf.mxu2 }
 0x493   : >> { %v2079_v1 = vadd.f32 %v2027_v51, %v1877_v41  ;;  %v2241_v47 = vpop.f32.mrf.mxu3 }
 0x494   : >> { %v1879_v62 = vpop.f32.mrf.mxu1 }
 0x495   : >> { %v2287_v36 = vadd.f32 %v2235_v28, %v2079_v1  ;;  %v2368_v7 = vpop.f32.mrf.mxu0  ;;  %v1880_v22 = vadd.f32 %v1879_v62, %v6517_v8 }
 0x497   : >> { %v6618_v57 = vadd.f32 %v2365_v33, %v2287_v36  ;;  %4873 = vmatmul.msk.f32.vlgmr.msra.gmra.mxu1 %vm7821_vm10, %v6339_v42  ;;  %4912 = vmatmul.msk.f32.vlgmr.msra.gmra.mxu2 %vm7734_vm1, %v6320_v27  ;;  %vm7825_vm10 = vmmov %vm7734_vm1 }
 0x498   : >> { %4950 = vmatmul.msk.f32.vlgmr.msra.gmra.mxu0 %vm7822_vm3, %v6384_v5  ;;  %4933 = vmatmul.msk.f32.gmra.mxu3 %vm7823_vm8, %v6275_v49  ;;  %vm7826_vm3 = vmmov %vm7734_vm1 }
 0x499   : >> { %vm7827_vm8 = vmmov %vm7734_vm1 }
 0x49a   : >> { %v2030_v9 = vpop.f32.mrf.mxu2 }
 0x49b   : >> { %v2080_v28 = vadd.f32 %v2030_v9, %v1880_v22  ;;  %v2244_v15 = vpop.f32.mrf.mxu3 }
 0x49c   : >> { %v1882_v17 = vpop.f32.mrf.mxu1 }
 0x49d   : >> { %v2288_v6 = vadd.f32 %v2238_v21, %v2080_v28  ;;  %v2371_v33 = vpop.f32.mrf.mxu0  ;;  %v1883_v8 = vadd.f32 %v1882_v17, %v6544_v38 }
 0x49f   : >> { %v6629_v41 = vadd.f32 %v2368_v7, %v2288_v6  ;;  %4874 = vmatmul.msk.f32.gmra.mxu1 %vm7824_vm4, %v6354_v54  ;;  %4913 = vmatmul.msk.f32.gmra.mxu2 %vm7825_vm10, %v6331_v34  ;;  %vm7828_vm4 = vmmov %vm7734_vm1 }
 0x4a0   : >> { %4951 = vmatmul.msk.f32.gmra.mxu0 %vm7734_vm1, %v6400_v20  ;;  %4934 = vmatmul.msk.f32.gmra.mxu3 %vm7826_vm3, %v6289_v10  ;;  %vm7829_vm10 = vmmov %vm7734_vm1 }
 0x4a1   : >> { %vm7830_vm3 = vmmov %vm7734_vm1 }
 0x4a2   : >> { %v2033_v27 = vpop.f32.mrf.mxu2 }
 0x4a3   : >> { %v2081_v21 = vadd.f32 %v2033_v27, %v1883_v8  ;;  %v2247_v1 = vpop.f32.mrf.mxu3 }
 0x4a4   : >> { %v1885_v49 = vpop.f32.mrf.mxu1 }
 0x4a5   : >> { %v2289_v42 = vadd.f32 %v2241_v47, %v2081_v21  ;;  %v2374_v51 = vpop.f32.mrf.mxu0  ;;  %v1886_v38 = vadd.f32 %v1885_v49, %v6571_v23 }
 0x4a7   : >> { %v6640_v62 = vadd.f32 %v2371_v33, %v2289_v42  ;;  %4875 = vmatmul.msk.f32.gmra.mxu1 %vm7827_vm8, %v6369_v61  ;;  %4914 = vmatmul.msk.f32.gmra.mxu2 %vm7828_vm4, %v6345_v46  ;;  %vm7831_vm8 = vmmov %vm7734_vm1 }
 0x4a8   : >> { %4952 = vmatmul.msk.f32.gmra.mxu0 %vm7829_vm10, %v6416_v50  ;;  %4935 = vmatmul.msk.f32.gmra.mxu3 %vm7734_vm1, %v6216_v32  ;;  %vm7832_vm4 = vmmov %vm7734_vm1 }
 0x4a9   : >> { %vm7833_vm10 = vmmov %vm7734_vm1 }
 0x4aa   : >> { %v2036_v34 = vpop.f32.mrf.mxu2 }
 0x4ab   : >> { %v2082_v10 = vadd.f32 %v2036_v34, %v1886_v38  ;;  %v2250_v47 = vpop.f32.mrf.mxu3 }
 0x4ac   : >> { %v1888_v54 = vpop.f32.mrf.mxu1 }
 0x4ad   : >> { %v2290_v36 = vadd.f32 %v2244_v15, %v2082_v10  ;;  %v2377_v7 = vpop.f32.mrf.mxu0  ;;  %v1889_v46 = vadd.f32 %v1888_v54, %v6463_v52 }
 0x4af   : >> { %v6651_v22 = vadd.f32 %v2374_v51, %v2290_v36  ;;  %4876 = vmatmul.msk.f32.gmra.mxu1 %vm7830_vm3, %v6384_v5  ;;  %4915 = vmatmul.msk.f32.gmra.mxu2 %vm7831_vm8, %v6360_v25  ;;  %vm7834_vm3 = vmmov %vm7734_vm1 }
 0x4b0   : >> { %4953 = vmatmul.msk.f32.gmra.mxu0 %vm7832_vm4, %v6432_v12  ;;  %4936 = vmatmul.msk.f32.gmra.mxu3 %vm7833_vm10, %v6236_v16  ;;  %vm7835_vm8 = vmmov %vm7734_vm1 }
 0x4b1   : >> { %vm7836_vm4 = vmmov %vm7734_vm1 }
 0x4b2   : >> { %v2039_v61 = vpop.f32.mrf.mxu2  ;;  %vm7837_vm10 = vmmov %vm7734_vm1 }
 0x4b3   : >> { %v2083_v32 = vadd.f32 %v2039_v61, %v1889_v46  ;;  %v2253_v17 = vpop.f32.mrf.mxu3 }
 0x4b4   : >> { %v1891_v23 = vpop.f32.mrf.mxu1 }
 0x4b5   : >> { %v2291_v9 = vadd.f32 %v2247_v1, %v2083_v32  ;;  %v2380_v28 = vpop.f32.mrf.mxu0  ;;  %v1892_v25 = vadd.f32 %v1891_v23, %v6485_v45 }
 0x4b7   : >> { %v6662_v6 = vadd.f32 %v2377_v7, %v2291_v9  ;;  %4877 = vmatmul.msk.f32.gmra.mxu1 %vm7734_vm1, %v6400_v20  ;;  %4916 = vmatmul.msk.f32.gmra.mxu2 %vm7834_vm3, %v6375_v44  ;;  %vm7838_vm3 = vmmov %vm7734_vm1 }
 0x4b8   : >> { %4954 = vmatmul.msk.f32.gmra.mxu0 %vm7835_vm8, %v6448_v37  ;;  %4937 = vmatmul.msk.f32.gmra.mxu3 %vm7836_vm4, %v6259_v43  ;;  %vm7839_vm8 = vmmov %vm7734_vm1 }
 0x4b9   : >> { %vm7840_vm4 = vmmov %vm7734_vm1 }
 0x4ba   : >> { %v2042_v5 = vpop.f32.mrf.mxu2 }
 0x4bb   : >> { %v2084_v16 = vadd.f32 %v2042_v5, %v1892_v25  ;;  %v2256_v8 = vpop.f32.mrf.mxu3 }
 0x4bc   : >> { %v1894_v52 = vpop.f32.mrf.mxu1 }
 0x4bd   : >> { %v2292_v33 = vadd.f32 %v2250_v47, %v2084_v16  ;;  %v2383_v15 = vpop.f32.mrf.mxu0  ;;  %v1895_v44 = vadd.f32 %v1894_v52, %v6512_v11  ;;  %v7859_v52 = vld [vmem:[#allocation36_spill] sm:$0xff] }
 0x4bf   : >> { %v6673_v27 = vadd.f32 %v2380_v28, %v2292_v33  ;;  %4878 = vmatmul.msk.f32.gmra.mxu1 %vm7837_vm10, %v6416_v50  ;;  %4917 = vmatmul.msk.f32.gmra.mxu2 %vm7734_vm1, %v6391_v39  ;;  %vm7841_vm10 = vmmov %vm7734_vm1 }
 0x4c0   : >> { %4955 = vmatmul.msk.f32.gmra.mxu0 %vm7838_vm3, %v6466_v30  ;;  %4938 = vmatmul.msk.f32.gmra.mxu3 %vm7839_vm8, %v6278_v29  ;;  %vm7842_vm3 = vmmov %vm7734_vm1 }
 0x4c1   : >> { %vm7843_vm8 = vmmov %vm7734_vm1 }
 0x4c2   : >> { %v2045_v20 = vpop.f32.mrf.mxu2 }
 0x4c3   : >> { %v2085_v43 = vadd.f32 %v2045_v20, %v1895_v44  ;;  %v2259_v42 = vpop.f32.mrf.mxu3 }
 0x4c4   : >> { %v1897_v45 = vpop.f32.mrf.mxu1 }
 0x4c5   : >> { %v2293_v21 = vadd.f32 %v2253_v17, %v2085_v43  ;;  %v2386_v49 = vpop.f32.mrf.mxu0  ;;  %v1898_v11 = vadd.f32 %v1897_v45, %v6539_v3 }
 0x4c7   : >> { %v6684_v51 = vadd.f32 %v2383_v15, %v2293_v21  ;;  %4879 = vmatmul.msk.f32.gmra.mxu1 %vm7840_vm4, %v6432_v12  ;;  %4918 = vmatmul.msk.f32.gmra.mxu2 %vm7841_vm10, %v6407_v59  ;;  %vm7844_vm4 = vmmov %vm7734_vm1 }
 0x4c8   : >> { %4956 = vmatmul.msk.f32.gmra.mxu0 %vm7734_vm1, %v6488_v63  ;;  %4939 = vmatmul.msk.f32.gmra.mxu3 %vm7842_vm3, %v6292_v13  ;;  %vm7845_vm10 = vmmov %vm7734_vm1 }
 0x4c9   : >> { %vm7846_vm3 = vmmov %vm7734_vm1 }
 0x4ca   : >> { %v2048_v39 = vpop.f32.mrf.mxu2 }
 0x4cb   : >> { %v2086_v29 = vadd.f32 %v2048_v39, %v1898_v11  ;;  %v2262_v34 = vpop.f32.mrf.mxu3 }
 0x4cc   : >> { %v1900_v50 = vpop.f32.mrf.mxu1 }
 0x4cd   : >> { %v2294_v1 = vadd.f32 %v2256_v8, %v2086_v29  ;;  %v2389_v38 = vpop.f32.mrf.mxu0  ;;  %v1901_v3 = vadd.f32 %v1900_v50, %v6566_v26 }
 0x4cf   : >> { %v6695_v10 = vadd.f32 %v2386_v49, %v2294_v1  ;;  %4880 = vmatmul.msk.f32.gmra.mxu1 %vm7843_vm8, %v6448_v37  ;;  %4919 = vmatmul.msk.f32.gmra.mxu2 %vm7844_vm4, %v6423_v55  ;;  %vm7847_vm8 = vmmov %vm7734_vm1 }
 0x4d0   : >> { %4957 = vmatmul.msk.f32.gmra.mxu0 %vm7845_vm10, %v6515_v48  ;;  %4940 = vmatmul.msk.f32.gmra.mxu3 %vm7734_vm1, %v6228_v19  ;;  %vm7848_vm4 = vmmov %vm7734_vm1 }
 0x4d1   : >> { %vm7849_vm10 = vmmov %vm7734_vm1 }
 0x4d2   : >> { %v2051_v59 = vpop.f32.mrf.mxu2 }
 0x4d3   : >> { %v2087_v13 = vadd.f32 %v2051_v59, %v1901_v3  ;;  %v2265_v7 = vpop.f32.mrf.mxu3  ;;  %v2970_v59 = vrot.slane %v6559_v31, 1 }
 0x4d4   : >> { %v1903_v12 = vpop.f32.mrf.mxu1 }
 0x4d5   : >> { %v2295_v54 = vadd.f32 %v2259_v42, %v2087_v13  ;;  %v2392_v36 = vpop.f32.mrf.mxu0  ;;  %v1904_v26 = vadd.f32 %v1903_v12, %v6480_v35  ;;  %v2968_v42 = vrot.slane %v6532_v0, 1 }
 0x4d7   : >> { %v6706_v47 = vadd.f32 %v2389_v38, %v2295_v54  ;;  %4881 = vmatmul.msk.f32.gmra.mxu1 %vm7846_vm3, %v6466_v30  ;;  %4920 = vmatmul.msk.f32.gmra.mxu2 %vm7847_vm8, %v6439_v18  ;;  %vm7850_vm3 = vmmov %vm7734_vm1  ;;  %v7852_v18 = vld [vmem:[#allocation33_spill] sm:$0xff] }
 0x4d8   : >> { %4958 = vmatmul.msk.f32.gmra.mxu0 %vm7848_vm4, %v6542_v58  ;;  %4941 = vmatmul.msk.f32.gmra.mxu3 %vm7849_vm10, %v6246_v40  ;;  %vm7851_vm8 = vmmov %vm7734_vm1  ;;  %v7853_v40 = vld [vmem:[#allocation30_spill] sm:$0xff] }
 0x4d9   : >> { %vm7854_vm4 = vmmov %vm7734_vm1 }
 0x4da   : >> { %v2054_v55 = vpop.f32.mrf.mxu2  ;;  %vm7855_vm10 = vmmov %vm7734_vm1 }
 0x4db   : >> { %v2088_v19 = vadd.f32 %v2054_v55, %v1904_v26  ;;  %v2268_v32 = vpop.f32.mrf.mxu3  ;;  %v7871_v26 = vld [vmem:[#allocation38_spill] sm:$0xff] }
 0x4dc   : >> { %v1906_v37 = vpop.f32.mrf.mxu1  ;;  %v4907_v55 = vld [vmem:[%s6210_s15 + $0xc0] sm:$0xff] }
 0x4dd   : >> { %v2296_v46 = vadd.f32 %v2262_v34, %v2088_v19  ;;  %v2395_v61 = vpop.f32.mrf.mxu0  ;;  %v1907_v30 = vadd.f32 %v1906_v37, %v7852_v18  ;;  %v7866_v34 = vld [vmem:[#allocation35_spill] sm:$0xff]  ;;  %v7874_v19 = vld [vmem:[#allocation32_spill] sm:$0xff] }
 0x4df   : >> { %v6717_v23 = vadd.f32 %v2392_v36, %v2296_v46  ;;  %4882 = vmatmul.msk.f32.gmra.mxu1 %vm7734_vm1, %v6488_v63  ;;  %4921 = vmatmul.msk.f32.gmra.mxu2 %vm7850_vm3, %v6455_v60  ;;  %v7856_v60 = vld [vmem:[#allocation31_spill] sm:$0xff]  ;;  %v7857_v63 = vld [vmem:[#allocation42_spill] sm:$0xff]  ;;  %vm7858_vm3 = vmmov %vm7734_vm1  ;;  %v2972_v46 = vrot.slane %v4907_v55, 1 }
 0x4e0   : >> { %4959 = vmatmul.msk.f32.gmra.mxu0 %vm7851_vm8, %v6569_v56  ;;  %4942 = vmatmul.msk.f32.gmra.mxu3 %vm7854_vm4, %v7853_v40  ;;  %vm7860_vm8 = vmmov %vm7734_vm1 }
 0x4e1   : >> { %vm7861_vm4 = vmmov %vm7734_vm1  ;;  %v2973_v40 = vsel %vm1930_vm2, %v2970_v59, %v2972_v46 }
 0x4e2   : >> { %v2057_v35 = vpop.f32.mrf.mxu2 }
 0x4e3   : >> { %v2089_v9 = vadd.f32 %v2057_v35, %v1907_v30  ;;  %v2271_v5 = vpop.f32.mrf.mxu3 }
 0x4e4   : >> { %v1909_v28 = vpop.f32.mrf.mxu1 }
 0x4e5   : >> { %v2297_v17 = vadd.f32 %v2265_v7, %v2089_v9  ;;  %v2398_v25 = vpop.f32.mrf.mxu0  ;;  %v1910_v33 = vadd.f32 %v1909_v28, %v7859_v52 }
 0x4e7   : >> { %v6728_v16 = vadd.f32 %v2395_v61, %v2297_v17  ;;  %4883 = vmatmul.msk.f32.gmra.mxu1 %vm7855_vm10, %v6515_v48  ;;  %4922 = vmatmul.msk.f32.gmra.mxu2 %vm7734_vm1, %v7856_v60  ;;  %vm7862_vm10 = vmmov %vm7734_vm1  ;;  %v7863_v48 = vld [vmem:[#allocation39_spill] sm:$0xff]  ;;  %v7876_v17 = vld [vmem:[#allocation40_spill] sm:$0xff] }
 0x4e8   : >> { %4960 = vmatmul.msk.f32.gmra.mxu0 %vm7858_vm3, %v7857_v63  ;;  %4943 = vmatmul.msk.f32.gmra.mxu3 %vm7860_vm8, %v6505_v24  ;;  %vm7864_vm3 = vmmov %vm7734_vm1  ;;  %v7879_v60 = vld [vmem:[#allocation34_spill] sm:$0xff] }
 0x4e9   : >> { %vm7865_vm8 = vmmov %vm7734_vm1 }
 0x4ea   : >> { %v2060_v15 = vpop.f32.mrf.mxu2 }
 0x4eb   : >> { %v2090_v8 = vadd.f32 %v2060_v15, %v1910_v33  ;;  %v2274_v45 = vpop.f32.mrf.mxu3 }
 0x4ec   : >> { %v1912_v44 = vpop.f32.mrf.mxu1 }
 0x4ed   : >> { %v2298_v20 = vadd.f32 %v2268_v32, %v2090_v8  ;;  %v2401_v43 = vpop.f32.mrf.mxu0  ;;  %v1913_v49 = vadd.f32 %v1912_v44, %v7863_v48  ;;  %v7881_v44 = vrot.slane %v6559_v31, 7 }
 0x4ef   : >> { %v6739_v21 = vadd.f32 %v2398_v25, %v2298_v20  ;;  %4884 = vmatmul.msk.f32.gmra.mxu1 %vm7861_vm4, %v6542_v58  ;;  %4923 = vmatmul.msk.f32.gmra.mxu2 %vm7862_vm10, %v6499_v14  ;;  %v2969_v58 = vsel %vm1930_vm2, %v1966_v53, %v2968_v42  ;;  %vm7867_vm4 = vmmov %vm7734_vm1  ;;  %v2676_v25 = vrot.slane %v4907_v55, 7 }
 0x4f0   : >> { %4961 = vmatmul.msk.f32.gmra.mxu0 %vm7734_vm1, %v6605_v4  ;;  %4944 = vmatmul.msk.f32.gmra.mxu3 %vm7864_vm3, %v6532_v0  ;;  %vm7868_vm10 = vmmov %vm7734_vm1  ;;  %v7869_v0 = vld [vmem:[#allocation41_spill] sm:$0xff] }
 0x4f1   : >> { %vm7870_vm3 = vmmov %vm7734_vm1 }
 0x4f2   : >> { %v2063_v11 = vpop.f32.mrf.mxu2 }
 0x4f3   : >> { %v2091_v39 = vadd.f32 %v2063_v11, %v1913_v49  ;;  %v2277_v14 = vpop.f32.mrf.mxu3  ;;  %v4909_v11 = vld [vmem:[%s6210_s15 + $0xd0] sm:$0xff] }
 0x4f4   : >> { %v1915_v29 = vpop.f32.mrf.mxu1 }
 0x4f5   : >> { %v2299_v50 = vadd.f32 %v2271_v5, %v2091_v39  ;;  %v2404_v1 = vpop.f32.mrf.mxu0  ;;  %v1916_v3 = vadd.f32 %v1915_v29, %v7869_v0  ;;  %v4908_v5 = vld [vmem:[%s6210_s15 + $0xc8] sm:$0xff]  ;;  %v7884_v39 = vld [vmem:[#allocation37_spill] sm:$0xff]  ;;  %v2976_v29 = vrot.slane %v4909_v11, 1 }
 0x4f6   : >> { %v2974_v52 = vrot.slane %v4908_v5, 1 }
 0x4f7   : >> { %v6754_v38 = vadd.f32 %v2401_v43, %v2299_v50  ;;  %4885 = vmatmul.msk.f32.gmra.mxu1 %vm7865_vm8, %v6569_v56  ;;  %4924 = vmatmul.msk.f32.gmra.mxu2 %vm7867_vm4, %v7866_v34  ;;  %v2971_v56 = vsel %vm1930_vm2, %v2968_v42, %v2970_v59  ;;  %vm7872_vm8 = vmmov %vm7734_vm1  ;;  %v2678_v42 = vrot.slane %v4908_v5, 7 }
 0x4f8   : >> { %4962 = vmatmul.msk.f32.gmra.mxu0 %vm7868_vm10, %v2969_v58  ;;  %4945 = vmatmul.msk.f32.gmra.mxu3 %vm7734_vm1, %v6559_v31  ;;  %vm7873_vm4 = vmmov %vm7734_vm1 }
 0x4f9   : >> { %vm7875_vm10 = vmmov %vm7734_vm1  ;;  %v2679_v34 = vsel %vm1779_vm7, %v2676_v25, %v2678_v42 }
 0x4fa   : >> { %v2066_v13 = vpop.f32.mrf.mxu2 }
 0x4fb   : >> { %v2092_v24 = vadd.f32 %v2066_v13, %v1916_v3  ;;  %v2280_v36 = vpop.f32.mrf.mxu3  ;;  %v4910_v13 = vld [vmem:[%s6210_s15 + $0xd8] sm:$0xff] }
 0x4fc   : >> { %v1918_v53 = vpop.f32.mrf.mxu1 }
 0x4fd   : >> { %v2300_v12 = vadd.f32 %v2274_v45, %v2092_v24  ;;  %v2407_v54 = vpop.f32.mrf.mxu0  ;;  %v1919_v37 = vadd.f32 %v1918_v53, %v7874_v19  ;;  %v2975_v45 = vsel %vm1930_vm2, %v2972_v46, %v2974_v52  ;;  %v2680_v53 = vrot.slane %v4909_v11, 7  ;;  %v7888_v46 = vld [vmem:[#allocation11_spill] sm:$0xff] }
 0x4ff   : >> { %v6766_v7 = vadd.f32 %v2404_v1, %v2300_v12  ;;  %4886 = vmatmul.msk.f32.gmra.mxu1 %vm7870_vm3, %v7857_v63  ;;  %4925 = vmatmul.msk.f32.gmra.mxu2 %vm7872_vm8, %v7871_v26  ;;  %vm7877_vm3 = vmmov %vm7734_vm1  ;;  %v2681_v19 = vsel %vm1779_vm7, %v2678_v42, %v2680_v53 }
 0x500   : >> { %4963 = vmatmul.msk.f32.gmra.mxu0 %vm7873_vm4, %v2971_v56  ;;  %4946 = vmatmul.msk.f32.gmra.mxu3 %vm7875_vm10, %v4907_v55  ;;  %vm7878_vm8 = vmmov %vm7734_vm1 }
 0x501   : >> { %vm7880_vm4 = vmmov %vm7734_vm1 }
 0x502   : >> { %v2069_v61 = vpop.f32.mrf.mxu2  ;;  %vm7882_vm10 = vmmov %vm7734_vm1 }
 0x503   : >> { %v2093_v32 = vadd.f32 %v2069_v61, %v1919_v37  ;;  %v2283_v9 = vpop.f32.mrf.mxu3  ;;  %v6810_v61 = vperm.slane %v7888_v46, 0 }
 0x504   : >> { %v1921_v18 = vpop.f32.mrf.mxu1 }
 0x505   : >> { %v2301_v30 = vadd.f32 %v2277_v14, %v2093_v32  ;;  %v2410_v35 = vpop.f32.mrf.mxu0  ;;  %v1922_v63 = vadd.f32 %v1921_v18, %v7879_v60 }
 0x507   : >> { %v6777_v28 = vadd.f32 %v2407_v54, %v2301_v30  ;;  %4887 = vmatmul.msk.f32.gmra.mxu1 %vm7734_vm1, %v6605_v4  ;;  %4926 = vmatmul.msk.f32.gmra.mxu2 %vm7877_vm3, %v7876_v17  ;;  %v2677_v4 = vsel %vm1779_vm7, %v7881_v44, %v2676_v25  ;;  %vm7883_vm3 = vmmov %vm7734_vm1  ;;  %v2978_v54 = vrot.slane %v4910_v13, 1 }
 0x508   : >> { %4964 = vmatmul.msk.f32.gmra.mxu0 %vm7878_vm8, %v2973_v40  ;;  %4947 = vmatmul.msk.f32.gmra.mxu3 %vm7880_vm4, %v4908_v5  ;;  %vm7885_vm8 = vmmov %vm7734_vm1 }
 0x509   : >> { %vm7886_vm4 = vmmov %vm7734_vm1 }
 0x50a   : >> { %v2072_v33 = vpop.f32.mrf.mxu2 }
 0x50b   : >> { %v2094_v15 = vadd.f32 %v2072_v33, %v1922_v63  ;;  %v2868_v48 = vpop.f32.mrf.mxu3 }
 0x50c   : >> { %v1924_v8 = vpop.f32.mrf.mxu1 }
 0x50d   : >> { %v2302_v20 = vadd.f32 %v2280_v36, %v2094_v15  ;;  %v2413_v43 = vpop.f32.mrf.mxu0  ;;  %v1925_v31 = vadd.f32 %v1924_v8, %v7884_v39 }
 0x50f   : >> { %v6791_v49 = vadd.f32 %v2410_v35, %v2302_v20  ;;  %4888 = vmatmul.msk.f32.gmra.mxu1 %vm7882_vm10, %v2969_v58  ;;  %4927 = vmatmul.msk.f32.gmra.mxu2 %vm7734_vm1, %v2677_v4  ;;  %v2977_v58 = vsel %vm1930_vm2, %v2974_v52, %v2976_v29  ;;  %vm7887_vm10 = vmmov %vm7734_vm1 }
 0x510   : >> { %4965 = vmatmul.msk.f32.gmra.mxu0 %vm7883_vm3, %v2975_v45  ;;  %4948 = vmatmul.msk.f32.gmra.mxu3 %vm7885_vm8, %v4909_v11  ;;  %vm7889_vm3 = vmmov %vm7734_vm1 }
 0x511   : >> { %vm7890_vm8 = vmmov %vm7734_vm1 }
 0x512   : >> { %v2075_v50 = vpop.f32.mrf.mxu2 }
 0x513   : >> { %v2095_v1 = vadd.f32 %v2075_v50, %v1925_v31  ;;  %v2871_v59 = vpop.f32.mrf.mxu3 }
 0x514   : >> { %v2530_v14 = vpop.f32.mrf.mxu1 }
 0x515   : >> { %v2303_v0 = vadd.f32 %v2283_v9, %v2095_v1  ;;  %v3036_v3 = vpop.f32.mrf.mxu0  ;;  %v2584_v12 = vadd.f32 %v2530_v14, %v6607_v2 }
 0x517   : >> { %v6802_v24 = vadd.f32 %v2413_v43, %v2303_v0  ;;  %4889 = vmatmul.msk.f32.gmra.mxu1 %vm7886_vm4, %v2971_v56  ;;  %4928 = vmatmul.msk.f32.gmra.mxu2 %vm7887_vm10, %v2679_v34  ;;  %v2979_v56 = vsel %vm1930_vm2, %v2976_v29, %v2978_v54  ;;  %vm7891_vm4 = vmmov %vm7734_vm1  ;;  %vm7893_vm10 = vcmask 64512  }
 0x518   : >> { %4966 = vmatmul.msk.f32.gmra.mxu0 %vm7734_vm1, %v2977_v58  ;;  %vm7895_vm1 = vmmov %vm7893_vm10 }
 0x51a   : >> { %v2738_v36 = vpop.f32.mrf.mxu2 }
 0x51b   : >> { %v2792_v26 = vadd.f32 %v2738_v36, %v2584_v12  ;;  %v2874_v18 = vpop.f32.mrf.mxu3 }
 0x51c   : >> { %v2533_v55 = vpop.f32.mrf.mxu1 }
 0x51d   : >> { %v2922_v37 = vadd.f32 %v2868_v48, %v2792_v26  ;;  %v3039_v32 = vpop.f32.mrf.mxu0  ;;  %v2585_v2 = vadd.f32 %v2533_v55, %v6618_v57 }
 0x51f   : >> { %v3090_v30 = vadd.f32 %v3036_v3, %v2922_v37  ;;  %4890 = vmatmul.msk.f32.gmra.mxu1 %vm7889_vm3, %v2973_v40  ;;  %4929 = vmatmul.msk.f32.gmra.mxu2 %vm7890_vm8, %v2681_v19  ;;  %vm7897_vm3 = vmmov %vm7895_vm1 }
 0x520   : >> { %4967 = vmatmul.msk.f32.gmra.mxu0 %vm7891_vm4, %v2979_v56  ;;  %vm7899_vm8 = vmmov %vm7895_vm1 }
 0x521   : >> { %v3111_v35 = vadd.f32 %v6810_v61, %v3090_v30  ;;  %vm7901_vm4 = vmmov %vm7895_vm1 }
 0x522   : >> { %v2741_v9 = vpop.f32.mrf.mxu2 }
 0x523   : >> { %v3165_v25 = vsel %vm6087_vm11, %v3111_v35, 0.0  ;;  %v2793_v5 = vadd.f32 %v2741_v9, %v2585_v2  ;;  %v2877_v52 = vpop.f32.mrf.mxu3 }
 0x524   : >> { %4968 = vst.msk [vmem:[%s6822_s22 + $0x30] sm:$0xff] %vm7893_vm10, %v3165_v25  ;;  %v2536_v40 = vpop.f32.mrf.mxu1  ;;  %vm7903_vm10 = vmmov %vm7895_vm1 }
 0x525   : >> { %v2923_v60 = vadd.f32 %v2871_v59, %v2793_v5  ;;  %v3042_v63 = vpop.f32.mrf.mxu0  ;;  %v2586_v57 = vadd.f32 %v2536_v40, %v6629_v41 }
 0x527   : >> { %v3091_v33 = vadd.f32 %v3039_v32, %v2923_v60 }
 0x529   : >> { %v3112_v15 = vadd.f32 %v6810_v61, %v3091_v33 }
 0x52a   : >> { %v2744_v8 = vpop.f32.mrf.mxu2 }
 0x52b   : >> { %v3166_v4 = vsel %vm6091_vm13, %v3112_v15, 0.0  ;;  %v2794_v20 = vadd.f32 %v2744_v8, %v2586_v57  ;;  %v2880_v42 = vpop.f32.mrf.mxu3 }
 0x52c   : >> { %4969 = vst.msk [vmem:[%s6822_s22 + $0x38] sm:$0xff] %vm7895_vm1, %v3166_v4  ;;  %v2539_v43 = vpop.f32.mrf.mxu1 }
 0x52d   : >> { %v2924_v45 = vadd.f32 %v2874_v18, %v2794_v20  ;;  %v3045_v48 = vpop.f32.mrf.mxu0  ;;  %v2587_v39 = vadd.f32 %v2539_v43, %v6640_v62  ;;  %v7904_v43 = vld [vmem:[#allocation18_spill] sm:$0xff] }
 0x52e   : >> { %vm7905_vm1 = vnez %v7904_v43 }
 0x52f   : >> { %v3092_v11 = vadd.f32 %v3042_v63, %v2924_v45 }
 0x531   : >> { %v3113_v41 = vadd.f32 %v6810_v61, %v3092_v11 }
 0x532   : >> { %v2747_v31 = vpop.f32.mrf.mxu2 }
 0x533   : >> { %v3167_v50 = vsel %vm6095_vm12, %v3113_v41, 0.0  ;;  %v2795_v1 = vadd.f32 %v2747_v31, %v2587_v39  ;;  %v2883_v3 = vpop.f32.mrf.mxu3 }
 0x534   : >> { %4970 = vst.msk [vmem:[%s6822_s22 + $0x40] sm:$0xff] %vm7897_vm3, %v3167_v50  ;;  %v2542_v14 = vpop.f32.mrf.mxu1 }
 0x535   : >> { %v2925_v34 = vadd.f32 %v2877_v52, %v2795_v1  ;;  %v3048_v0 = vpop.f32.mrf.mxu0  ;;  %v2588_v59 = vadd.f32 %v2542_v14, %v6651_v22  ;;  %v7906_v1 = vld [vmem:[#allocation19_spill] sm:$0xff] }
 0x537   : >> { %v3093_v58 = vadd.f32 %v3045_v48, %v2925_v34 }
 0x539   : >> { %v3114_v62 = vadd.f32 %v6810_v61, %v3093_v58 }
 0x53a   : >> { %v2750_v13 = vpop.f32.mrf.mxu2 }
 0x53b   : >> { %v3168_v12 = vsel %vm6110_vm14, %v3114_v62, 0.0  ;;  %v2796_v54 = vadd.f32 %v2750_v13, %v2588_v59  ;;  %v2886_v19 = vpop.f32.mrf.mxu3 }
 0x53c   : >> { %4971 = vst.msk [vmem:[%s6822_s22 + $0x48] sm:$0xff] %vm7899_vm8, %v3168_v12  ;;  %v2545_v36 = vpop.f32.mrf.mxu1  ;;  %vm7907_vm8 = vnez %v7906_v1  ;;  %v7909_v12 = vld [vmem:[#allocation20_spill] sm:$0xff] }
 0x53d   : >> { %v2926_v26 = vadd.f32 %v2880_v42, %v2796_v54  ;;  %v3051_v55 = vpop.f32.mrf.mxu0  ;;  %v2589_v46 = vadd.f32 %v2545_v36, %v6662_v6 }
 0x53f   : >> { %v3094_v37 = vadd.f32 %v3048_v0, %v2926_v26 }
 0x541   : >> { %v3115_v22 = vadd.f32 %v6810_v61, %v3094_v37 }
 0x542   : >> { %v2753_v32 = vpop.f32.mrf.mxu2 }
 0x543   : >> { %v3169_v18 = vsel %vm6114_vm0, %v3115_v22, 0.0  ;;  %v2797_v30 = vadd.f32 %v2753_v32, %v2589_v46  ;;  %v2889_v17 = vpop.f32.mrf.mxu3 }
 0x544   : >> { %4972 = vst.msk [vmem:[%s6822_s22 + $0x50] sm:$0xff] %vm7901_vm4, %v3169_v18  ;;  %v2548_v2 = vpop.f32.mrf.mxu1  ;;  %vm7908_vm4 = vmmov %vm7897_vm3 }
 0x545   : >> { %v2927_v35 = vadd.f32 %v2883_v3, %v2797_v30  ;;  %v3054_v9 = vpop.f32.mrf.mxu0  ;;  %v2590_v5 = vadd.f32 %v2548_v2, %v6673_v27 }
 0x547   : >> { %v3095_v25 = vadd.f32 %v3051_v55, %v2927_v35 }
 0x549   : >> { %v3116_v6 = vadd.f32 %v6810_v61, %v3095_v25 }
 0x54a   : >> { %v2756_v40 = vpop.f32.mrf.mxu2 }
 0x54b   : >> { %v3170_v63 = vsel %vm6118_vm15, %v3116_v6, 0.0  ;;  %v2798_v52 = vadd.f32 %v2756_v40, %v2590_v5  ;;  %v2892_v8 = vpop.f32.mrf.mxu3  ;;  %v7914_v40 = vld [vmem:[#allocation22_spill] sm:$0xff] }
 0x54c   : >> { %4973 = vst.msk [vmem:[%s6822_s22 + $0x58] sm:$0xff] %vm7903_vm10, %v3170_v63  ;;  %v2551_v33 = vpop.f32.mrf.mxu1  ;;  %vm7910_vm10 = vnez %v7909_v12 }
 0x54d   : >> { %v2928_v57 = vadd.f32 %v2886_v19, %v2798_v52  ;;  %v3057_v15 = vpop.f32.mrf.mxu0  ;;  %v2591_v4 = vadd.f32 %v2551_v33, %v6684_v51 }
 0x54f   : >> { %v3096_v44 = vadd.f32 %v3054_v9, %v2928_v57 }
 0x551   : >> { %v3117_v27 = vadd.f32 %v6810_v61, %v3096_v44 }
 0x552   : >> { %v2759_v20 = vpop.f32.mrf.mxu2 }
 0x553   : >> { %v3171_v45 = vsel %vm7905_vm1, %v3117_v27, 0.0  ;;  %v2799_v48 = vadd.f32 %v2759_v20, %v2591_v4  ;;  %v2895_v41 = vpop.f32.mrf.mxu3  ;;  %vm7911_vm1 = vmmov %vm7897_vm3 }
 0x554   : >> { %4974 = vst.msk [vmem:[%s6822_s22 + $0x60] sm:$0xff] %vm7897_vm3, %v3171_v45  ;;  %v2554_v42 = vpop.f32.mrf.mxu1  ;;  %vm7913_vm3 = vmmov %vm7911_vm1 }
 0x555   : >> { %v2929_v11 = vadd.f32 %v2889_v17, %v2799_v48  ;;  %v3060_v39 = vpop.f32.mrf.mxu0  ;;  %v2592_v29 = vadd.f32 %v2554_v42, %v6695_v10 }
 0x557   : >> { %v3097_v31 = vadd.f32 %v3057_v15, %v2929_v11 }
 0x559   : >> { %v3118_v51 = vadd.f32 %v6810_v61, %v3097_v31 }
 0x55a   : >> { %v2762_v50 = vpop.f32.mrf.mxu2 }
 0x55b   : >> { %v3172_v14 = vsel %vm7907_vm8, %v3118_v51, 0.0  ;;  %v2800_v34 = vadd.f32 %v2762_v50, %v2592_v29  ;;  %v2898_v59 = vpop.f32.mrf.mxu3  ;;  %vm7915_vm8 = vnez %v7914_v40 }
 0x55c   : >> { %4975 = vst.msk [vmem:[%s6822_s22 + $0x68] sm:$0xff] %vm7908_vm4, %v3172_v14  ;;  %v2557_v0 = vpop.f32.mrf.mxu1  ;;  %vm7916_vm4 = vmmov %vm7911_vm1 }
 0x55d   : >> { %v2930_v3 = vadd.f32 %v2892_v8, %v2800_v34  ;;  %v3063_v58 = vpop.f32.mrf.mxu0  ;;  %v2593_v13 = vadd.f32 %v2557_v0, %v6706_v47 }
 0x55f   : >> { %v3098_v62 = vadd.f32 %v3060_v39, %v2930_v3 }
 0x561   : >> { %v3119_v10 = vadd.f32 %v6810_v61, %v3098_v62 }
 0x562   : >> { %v2765_v53 = vpop.f32.mrf.mxu2 }
 0x563   : >> { %v3173_v54 = vsel %vm7910_vm10, %v3119_v10, 0.0  ;;  %v2801_v36 = vadd.f32 %v2765_v53, %v2593_v13  ;;  %v2901_v37 = vpop.f32.mrf.mxu3  ;;  %vm7918_vm10 = vmmov %vm7911_vm1 }
 0x564   : >> { %4976 = vst.msk [vmem:[%s6822_s22 + $0x70] sm:$0xff] %vm7911_vm1, %v3173_v54  ;;  %v2560_v26 = vpop.f32.mrf.mxu1 }
 0x565   : >> { %v2931_v55 = vadd.f32 %v2895_v41, %v2801_v36  ;;  %v3066_v19 = vpop.f32.mrf.mxu0  ;;  %v2594_v22 = vadd.f32 %v2560_v26, %v6717_v23 }
 0x567   : >> { %v3099_v46 = vadd.f32 %v3063_v58, %v2931_v55 }
 0x569   : >> { %v3120_v47 = vadd.f32 %v6810_v61, %v3099_v46 }
 0x56a   : >> { %v2768_v32 = vpop.f32.mrf.mxu2 }
 0x56b   : >> { %v3174_v18 = vsel %vm6152_vm9, %v3120_v47, 0.0  ;;  %v2802_v30 = vadd.f32 %v2768_v32, %v2594_v22  ;;  %v2904_v25 = vpop.f32.mrf.mxu3 }
 0x56c   : >> { %4977 = vst.msk [vmem:[%s6822_s22 + $0x78] sm:$0xff] %vm7913_vm3, %v3174_v18  ;;  %v2563_v2 = vpop.f32.mrf.mxu1 }
 0x56d   : >> { %v2932_v35 = vadd.f32 %v2898_v59, %v2802_v30  ;;  %v3069_v9 = vpop.f32.mrf.mxu0  ;;  %v2595_v5 = vadd.f32 %v2563_v2, %v6728_v16  ;;  %v7920_v59 = vld [vmem:[#allocation25_spill] sm:$0xff] }
 0x56e   : >> { %vm7921_vm3 = vnez %v7920_v59 }
 0x56f   : >> { %v3100_v17 = vadd.f32 %v3066_v19, %v2932_v35  ;;  %v7923_v19 = vld [vmem:[#allocation26_spill] sm:$0xff]  ;;  %v7926_v35 = vld [vmem:[#allocation27_spill] sm:$0xff] }
 0x571   : >> { %v3121_v23 = vadd.f32 %v6810_v61, %v3100_v17 }
 0x572   : >> { %v2771_v6 = vpop.f32.mrf.mxu2 }
 0x573   : >> { %v3175_v60 = vsel %vm7915_vm8, %v3121_v23, 0.0  ;;  %v2803_v63 = vadd.f32 %v2771_v6, %v2595_v5  ;;  %v2907_v4 = vpop.f32.mrf.mxu3  ;;  %vm7922_vm8 = vmmov %vm7911_vm1 }
 0x574   : >> { %4978 = vst.msk [vmem:[%s6822_s22 + $0x80] sm:$0xff] %vm7916_vm4, %v3175_v60  ;;  %v2566_v52 = vpop.f32.mrf.mxu1  ;;  %vm7924_vm4 = vnez %v7923_v19 }
 0x575   : >> { %v2933_v33 = vadd.f32 %v2901_v37, %v2803_v63  ;;  %v3072_v57 = vpop.f32.mrf.mxu0  ;;  %v2596_v8 = vadd.f32 %v2566_v52, %v6739_v21  ;;  %v7929_v63 = vld [vmem:[#allocation28_spill] sm:$0xff] }
 0x577   : >> { %v3101_v15 = vadd.f32 %v3069_v9, %v2933_v33 }
 0x579   : >> { %v3122_v44 = vadd.f32 %v6810_v61, %v3101_v15 }
 0x57a   : >> { %v2774_v16 = vpop.f32.mrf.mxu2 }
 0x57b   : >> { %v3176_v20 = vsel %vm6160_vm6, %v3122_v44, 0.0  ;;  %v2804_v43 = vadd.f32 %v2774_v16, %v2596_v8  ;;  %v2910_v1 = vpop.f32.mrf.mxu3  ;;  %v7932_v16 = vld [vmem:[#allocation29_spill] sm:$0xff] }
 0x57c   : >> { %4979 = vst.msk [vmem:[%s6822_s22 + $0x88] sm:$0xff] %vm7918_vm10, %v3176_v20  ;;  %v2569_v45 = vpop.f32.mrf.mxu1  ;;  %vm7925_vm10 = vmmov %vm7911_vm1 }
 0x57d   : >> { %v2934_v48 = vadd.f32 %v2904_v25, %v2804_v43  ;;  %v3075_v42 = vpop.f32.mrf.mxu0  ;;  %v2597_v39 = vadd.f32 %v2569_v45, %v6754_v38 }
 0x57f   : >> { %v3102_v11 = vadd.f32 %v3072_v57, %v2934_v48 }
 0x581   : >> { %v3123_v21 = vadd.f32 %v6810_v61, %v3102_v11 }
 0x582   : >> { %v2777_v41 = vpop.f32.mrf.mxu2 }
 0x583   : >> { %v3177_v29 = vsel %vm6167_vm5, %v3123_v21, 0.0  ;;  %v2805_v51 = vadd.f32 %v2777_v41, %v2597_v39  ;;  %v2913_v12 = vpop.f32.mrf.mxu3 }
 0x584   : >> { %4980 = vst.msk [vmem:[%s6822_s22 + $0x90] sm:$0xff] %vm7911_vm1, %v3177_v29  ;;  %v2572_v50 = vpop.f32.mrf.mxu1  ;;  %vm7927_vm1 = vnez %v7926_v35 }
 0x585   : >> { %v2935_v14 = vadd.f32 %v2907_v4, %v2805_v51  ;;  %v3078_v34 = vpop.f32.mrf.mxu0  ;;  %v2598_v3 = vadd.f32 %v2572_v50, %v6766_v7 }
 0x587   : >> { %v3103_v0 = vadd.f32 %v3075_v42, %v2935_v14 }
 0x589   : >> { %v3124_v38 = vadd.f32 %v6810_v61, %v3103_v0 }
 0x58a   : >> { %v2780_v58 = vpop.f32.mrf.mxu2 }
 0x58b   : >> { %v3178_v62 = vsel %vm7921_vm3, %v3124_v38, 0.0  ;;  %v2806_v13 = vadd.f32 %v2780_v58, %v2598_v3  ;;  %v2916_v56 = vpop.f32.mrf.mxu3  ;;  %vm7928_vm3 = vmmov %vm7922_vm8 }
 0x58c   : >> { %4981 = vst.msk [vmem:[%s6822_s22 + $0x98] sm:$0xff] %vm7922_vm8, %v3178_v62  ;;  %v2575_v10 = vpop.f32.mrf.mxu1  ;;  %vm7930_vm8 = vnez %v7929_v63 }
 0x58d   : >> { %v2936_v53 = vadd.f32 %v2910_v1, %v2806_v13  ;;  %v3081_v36 = vpop.f32.mrf.mxu0  ;;  %v2599_v26 = vadd.f32 %v2575_v10, %v6777_v28 }
 0x58f   : >> { %v3104_v54 = vadd.f32 %v3078_v34, %v2936_v53 }
 0x591   : >> { %v3125_v7 = vadd.f32 %v6810_v61, %v3104_v54 }
 0x592   : >> { %v2783_v55 = vpop.f32.mrf.mxu2 }
 0x593   : >> { %v3179_v37 = vsel %vm7924_vm4, %v3125_v7, 0.0  ;;  %v2807_v46 = vadd.f32 %v2783_v55, %v2599_v26  ;;  %v2919_v60 = vpop.f32.mrf.mxu3  ;;  %vm7931_vm4 = vmmov %vm7928_vm3 }
 0x594   : >> { %4982 = vst.msk [vmem:[%s6822_s22 + $0xa0] sm:$0xff] %vm7925_vm10, %v3179_v37  ;;  %v2578_v22 = vpop.f32.mrf.mxu1  ;;  %vm7933_vm10 = vnez %v7932_v16 }
 0x595   : >> { %v2937_v47 = vadd.f32 %v2913_v12, %v2807_v46  ;;  %v2600_v18 = vadd.f32 %v2578_v22, %v6791_v49  ;;  %v3084_v2 = vpop.f32.mrf.mxu0 }
 0x597   : >> { %v3105_v32 = vadd.f32 %v3081_v36, %v2937_v47 }
 0x599   : >> { %v3126_v30 = vadd.f32 %v6810_v61, %v3105_v32 }
 0x59a   : >> { %v2786_v28 = vpop.f32.mrf.mxu2 }
 0x59b   : >> { %v3180_v9 = vsel %vm7927_vm1, %v3126_v30, 0.0  ;;  %v2808_v17 = vadd.f32 %v2786_v28, %v2600_v18  ;;  %vm7934_vm1 = vmmov %vm7928_vm3 }
 0x59c   : >> { %4983 = vst.msk [vmem:[%s6822_s22 + $0xa8] sm:$0xff] %vm7928_vm3, %v3180_v9  ;;  %v2581_v5 = vpop.f32.mrf.mxu1 }
 0x59d   : >> { %v2938_v25 = vadd.f32 %v2916_v56, %v2808_v17  ;;  %v2601_v6 = vadd.f32 %v2581_v5, %v6802_v24  ;;  %v3087_v57 = vpop.f32.mrf.mxu0  ;;  %v6933_v24 = vld [vmem:[%s7581_s4] sm:$0x1] (%p1616_p10) }
 0x59e   : > { %7935 = vst [vmem:[#allocation43_spill] sm:$0xff] (%p1616_p10), %v6933_v24 }
 0x59f   : >> { %v3106_v23 = vadd.f32 %v3084_v2, %v2938_v25 }
 0x5a1   : >> { %v3127_v40 = vadd.f32 %v6810_v61, %v3106_v23 }
 0x5a2   : >> { %v2789_v49 = vpop.f32.mrf.mxu2 }
 0x5a3   : >> { %v3181_v52 = vsel %vm7930_vm8, %v3127_v40, 0.0  ;;  %v2809_v33 = vadd.f32 %v2789_v49, %v2601_v6 }
 0x5a4   : >> { %4984 = vst.msk [vmem:[%s6822_s22 + $0xb0] sm:$0xff] %vm7931_vm4, %v3181_v52 }
 0x5a5   : >> { %v2939_v15 = vadd.f32 %v2919_v60, %v2809_v33 }
 0x5a7   : >> { %v3107_v8 = vadd.f32 %v3087_v57, %v2939_v15 }
 0x5a8   : > { %1618 = sbr.rel (!%p1616_p10) target bundleno = 982 (0x3d6), region = 126 }
 0x5a9   : >> { %v3128_v44 = vadd.f32 %v6810_v61, %v3107_v8 }
 0x5ab   : >> { %v3182_v4 = vsel %vm7933_vm10, %v3128_v44, 0.0 }
 0x5ac   : >> { %4985 = vst.msk [vmem:[%s6822_s22 + $0xb8] sm:$0xff] %vm7934_vm1, %v3182_v4 }
 0x5ad LB: >> { %v3238_v61 = vld [vmem:[#allocation8 + $0x8] sm:$0xff]  ;;  %v3499_v27 = vld [vmem:[#allocation8 + $0x10] sm:$0xff]  ;;  %v3236_v20 = vld [vmem:[#allocation8] sm:$0xff]  ;;  %s3210_s26 = smul.u32 6, %s5452_s27  ;;  %vm7936_vm6 = vcmask 64512   ;;  %s3209_s27 = sadd.s32 1, %s5452_s27   ;;  %s5452_s27 = sphi %s6935_s27, %s3209_s27  }
 0x5ae   : >> { %5216 = vmatpush.msra.mxu1 %v3238_v61  ;;  %5217 = vmatpush.msra.mxu2 %v3238_v61  ;;  %v3846_v43 = vld [vmem:[#allocation8 + $0x20] sm:$0xff]  ;;  %v3675_v45 = vld [vmem:[#allocation8 + $0x18] sm:$0xff]  ;;  %vm7937_vm11 = vmmov %vm7936_vm6  ;;  %p3206_p12 = scmp.ge.s32.totalorder %s3209_s27, 3  }
 0x5af   : >> { %3308 = vmatpush.msra.mxu0 %v3238_v61  ;;  %5218 = vmatpush.msra.mxu3 %v3238_v61  ;;  %p3211_p11 = scmp.lt.s32.totalorder %s3210_s26, 10  ;;  %vm7938_vm13 = vmmov %vm7936_vm6  ;;  %v4136_v51 = vld [vmem:[#allocation8 + $0x30] sm:$0xff]  ;;  %v4307_v50 = vld [vmem:[#allocation8 + $0x38] sm:$0xff] }
 0x5b0   : >> { %3590 = vmatpush.msrb.mxu2 %v3499_v27  ;;  %3448 = vmatpush.msrb.mxu1 %v3236_v20  ;;  %vm7939_vm12 = vmmov %vm7936_vm6  ;;  %v3961_v1 = vld [vmem:[#allocation8 + $0x28] sm:$0xff]  ;;  %v4422_v14 = vld [vmem:[#allocation8 + $0x40] sm:$0xff] }
 0x5b1   : >> { %3898 = vmatpush.msrb.mxu0 %v3846_v43  ;;  %3783 = vmatpush.msrb.mxu3 %v3675_v45  ;;  %s8112_s26 = smov (!%p3211_p11, %s3210_s26), 10  ;;  %vm7940_vm14 = vmmov %vm7936_vm6 }
 0x5b2   : >> { %s4656_s17 = smul.u32 24, %s8112_s26  ;;  %vm7941_vm0 = vmmov %vm7936_vm6  ;;  %s5208_s29 = sshll.u32 %s8112_s26, 4 }
 0x5b3   : >> { %vm7942_vm15 = vmmov %vm7941_vm0  ;;  %s7511_s30 = scalar_lea.vmem %s5700_s11, %s5208_s29 }
 0x5b4   : >> { %s6944_s28 = scalar_lea.vmem [#allocation3], %s4656_s17  ;;  %vm7943_vm9 = vmmov %vm7941_vm0 }
 0x5b5   : >> { %v6947_v48 = vld [vmem:[%s6944_s28 + $0x40] sm:$0xff]  ;;  %v6950_v42 = vld [vmem:[%s6944_s28 + $0x68] sm:$0xff]  ;;  %v6953_v11 = vld [vmem:[%s6944_s28 + $0x18] sm:$0xff] }
 0x5b6   : >> { %5011 = vmatmul.msk.f32.vlgmr.msra.gmra.mxu1 %vm7936_vm6, %v6947_v48  ;;  %5016 = vmatmul.msk.f32.vlgmr.msra.gmra.mxu2 %vm7937_vm11, %v6950_v42  ;;  %v6962_v39 = vld [vmem:[%s6944_s28 + $0x90] sm:$0xff]  ;;  %v6967_v21 = vld [vmem:[%s6944_s28 + $0x48] sm:$0xff]  ;;  %v6973_v31 = vld [vmem:[%s6944_s28 + $0x20] sm:$0xff]  ;;  %v3361_v37 = vrot.slane %v6953_v11, 7  ;;  %v3502_v46 = vrot.slane %v6953_v11, 1  ;;  %v3700_v47 = vrot.slane %v6947_v48, 7 }
 0x5b7   : >> { %5006 = vmatmul.msk.f32.vlgmr.msra.gmra.mxu0 %vm7938_vm13, %v6953_v11  ;;  %5021 = vmatmul.msk.f32.vlgmr.msra.gmra.mxu3 %vm7939_vm12, %v6962_v39  ;;  %v6970_v41 = vld [vmem:[%s6944_s28 + $0x70] sm:$0xff]  ;;  %v6976_v29 = vld [vmem:[%s6944_s28 + $0x98] sm:$0xff]  ;;  %v4989_v3 = vld [vmem:[%s6944_s28 + $0x28] sm:$0xff]  ;;  %v3503_v22 = vrot.slane %v6973_v31, 1  ;;  %v3363_v30 = vrot.slane %v6973_v31, 7  ;;  %v3702_v2 = vrot.slane %v6967_v21, 7 }
 0x5b8   : >> { %4244 = vmatpush.msra.mxu2 %v4136_v51  ;;  %4051 = vmatpush.msra.mxu1 %v3961_v1  ;;  %v6987_v34 = vld [vmem:[%s6944_s28 + $0x50] sm:$0xff]  ;;  %v6990_v0 = vld [vmem:[%s6944_s28 + $0x78] sm:$0xff]  ;;  %v6994_v38 = vld [vmem:[%s6944_s28 + $0xa0] sm:$0xff]  ;;  %v3695_v59 = vrot.slane %v4989_v3, 7  ;;  %v3505_v28 = vrot.slane %v4989_v3, 1  ;;  %v3511_v33 = vrot.slane %v6947_v48, 1 }
 0x5b9   : >> { %4359 = vmatpush.msra.mxu3 %v4307_v50  ;;  %4512 = vmatpush.msra.mxu0 %v4422_v14  ;;  %vm7944_vm5 = vmmov %vm7941_vm0  ;;  %v4990_v58 = vld [vmem:[%s6944_s28 + $0x30] sm:$0xff]  ;;  %v7005_v13 = vld [vmem:[%s6944_s28 + $0x58] sm:$0xff]  ;;  %v3504_v56 = vsel %vm1930_vm2, %v3502_v46, %v3503_v22  ;;  %v3364_v35 = vsel %vm1779_vm7, %v3361_v37, %v3363_v30  ;;  %v7048_v17 = vsel %vm1779_vm7, %v3700_v47, %v3702_v2  ;;  %v3704_v5 = vrot.slane %v6987_v34, 7 }
 0x5ba   : >> { %vm7945_vm3 = vmmov %vm7941_vm0  ;;  %v3696_v62 = vrot.slane %v4990_v58, 7  ;;  %v7008_v10 = vld [vmem:[%s6944_s28 + $0x80] sm:$0xff]  ;;  %v4991_v12 = vld [vmem:[%s6944_s28 + $0x38] sm:$0xff]  ;;  %v3506_v9 = vsel %vm1930_vm2, %v3503_v22, %v3505_v28  ;;  %v3507_v25 = vrot.slane %v4990_v58, 1  ;;  %v3366_v23 = vsel %vm1779_vm7, %v3363_v30, %v3695_v59 }
 0x5bb   : >> { %vm7946_vm8 = vmmov %vm7941_vm0  ;;  %v3698_v54 = vrot.slane %v4991_v12, 7  ;;  %v7019_v36 = vld [vmem:[%s6944_s28 + $0x60] sm:$0xff]  ;;  %v7022_v26 = vld [vmem:[%s6944_s28 + $0x88] sm:$0xff]  ;;  %v7059_v40 = vsel %vm1779_vm7, %v3702_v2, %v3704_v5  ;;  %v3509_v49 = vrot.slane %v4991_v12, 1  ;;  %v3706_v60 = vrot.slane %v7005_v13, 7 }
 0x5bc   : >> { %vm7947_vm4 = vmmov %vm7941_vm0  ;;  %v3697_v53 = vsel %vm1779_vm7, %v3695_v59, %v3696_v62  ;;  %v4986_v7 = vld [vmem:[%s6944_s28 + $0x10] sm:$0xff]  ;;  %v3508_v6 = vsel %vm1930_vm2, %v3505_v28, %v3507_v25  ;;  %v3708_v57 = vrot.slane %v7019_v36, 7  ;;  %v3513_v44 = vrot.slane %v6967_v21, 1 }
 0x5bd   : >> { %vm7948_vm10 = vmmov %vm7941_vm0  ;;  %v3699_v55 = vsel %vm1779_vm7, %v3696_v62, %v3698_v54  ;;  %v3360_v19 = vrot.slane %v4986_v7, 7  ;;  %v3701_v18 = vsel %vm1779_vm7, %v3698_v54, %v3700_v47  ;;  %v7069_v63 = vsel %vm1930_vm2, %v3507_v25, %v3509_v49 }
 0x5be   : >> { %5012 = vmatmul.msk.f32.gmra.mxu1 %vm7940_vm14, %v6967_v21  ;;  %5017 = vmatmul.msk.f32.gmra.mxu2 %vm7941_vm0, %v6970_v41  ;;  %vm7949_vm1 = vmmov %vm7941_vm0  ;;  %v7072_v52 = vsel %vm1779_vm7, %v3704_v5, %v3706_v60  ;;  %v7084_v15 = vsel %vm1930_vm2, %v3509_v49, %v3511_v33  ;;  %v7087_v8 = vsel %vm1779_vm7, %v3706_v60, %v3708_v57  ;;  %v3710_v16 = vrot.slane %v6950_v42, 7  ;;  %v7230_v5 = vld [vmem:[%s6944_s28 + $0xa8] sm:$0xff] }
 0x5bf   : >> { %5007 = vmatmul.msk.f32.gmra.mxu0 %vm7942_vm15, %v6973_v31  ;;  %5022 = vmatmul.msk.f32.gmra.mxu3 %vm7943_vm9, %v6976_v29  ;;  %vm7950_vm6 = vmmov %vm7941_vm0  ;;  %v3362_v32 = vsel %vm1779_vm7, %v3360_v19, %v3361_v37  ;;  %v7099_v4 = vsel %vm1930_vm2, %v3511_v33, %v3513_v44  ;;  %v3515_v27 = vrot.slane %v6987_v34, 1  ;;  %v3712_v20 = vrot.slane %v6970_v41, 7 }
 0x5c0   : >> { %vm7951_vm11 = vmmov %vm7941_vm0  ;;  %v7102_v61 = vsel %vm1779_vm7, %v3708_v57, %v3710_v16  ;;  %v3714_v11 = vrot.slane %v6990_v0, 7  ;;  %v3519_v50 = vrot.slane %v7019_v36, 1  ;;  %v3716_v1 = vrot.slane %v7008_v10, 7 }
 0x5c1   : >> { %vm7952_vm13 = vmmov %vm7941_vm0  ;;  %v7114_v43 = vsel %vm1930_vm2, %v3513_v44, %v3515_v27  ;;  %v7117_v45 = vsel %vm1779_vm7, %v3710_v16, %v3712_v20  ;;  %v3718_v59 = vrot.slane %v7022_v26, 7  ;;  %v3720_v54 = vrot.slane %v6962_v39, 7 }
 0x5c2   : >> { %vm7953_vm12 = vmmov %vm7941_vm0  ;;  %v7133_v51 = vsel %vm1779_vm7, %v3712_v20, %v3714_v11  ;;  %v3525_v19 = vrot.slane %v6990_v0, 1  ;;  %v3722_v37 = vrot.slane %v6976_v29, 7  ;;  %v3724_v30 = vrot.slane %v6994_v38, 7 }
 0x5c3   : >> { %vm7954_vm14 = vmmov %vm7941_vm0  ;;  %v3726_v49 = vrot.slane %v7230_v5, 7  ;;  %v3531_v20 = vrot.slane %v6962_v39, 1  ;;  %v3537_v24 = vrot.slane %v7230_v5, 1 }
 0x5c4   : >> { %vm7955_vm15 = vmmov %vm7941_vm0  ;;  %v7223_v25 = vsel %vm1779_vm7, %v3722_v37, %v3724_v30 }
 0x5c5   : >> { %vm7956_vm9 = vmmov %vm7941_vm0  ;;  %v7246_v16 = vsel %vm1779_vm7, %v3724_v30, %v3726_v49 }
 0x5c6   : >> { %5013 = vmatmul.msk.f32.gmra.mxu1 %vm7944_vm5, %v6987_v34  ;;  %5018 = vmatmul.msk.f32.gmra.mxu2 %vm7945_vm3, %v6990_v0  ;;  %vm7957_vm5 = vmmov %vm7941_vm0  ;;  %8006 = vst [vmem:[#allocation46_spill] sm:$0xff] %v7246_v16 }
 0x5c7   : >> { %5008 = vmatmul.msk.f32.gmra.mxu0 %vm7946_vm8, %v4989_v3  ;;  %5023 = vmatmul.msk.f32.gmra.mxu3 %vm7947_vm4, %v6994_v38  ;;  %vm7958_vm3 = vmmov %vm7941_vm0  ;;  %v7149_v3 = vsel %vm1779_vm7, %v3714_v11, %v3716_v1 }
 0x5c8   : >> { %vm7959_vm8 = vmmov %vm7941_vm0 }
 0x5c9   : >> { %vm7960_vm4 = vmmov %vm7941_vm0 }
 0x5ce   : >> { %5014 = vmatmul.msk.f32.gmra.mxu1 %vm7948_vm10, %v7005_v13  ;;  %5019 = vmatmul.msk.f32.gmra.mxu2 %vm7949_vm1, %v7008_v10  ;;  %vm7961_vm10 = vmmov %vm7941_vm0 }
 0x5cf   : >> { %5009 = vmatmul.msk.f32.gmra.mxu0 %vm7950_vm6, %v4990_v58  ;;  %5080 = vmatmul.msk.f32.vlgmr.msrb.gmra.mxu3 %vm7951_vm11, %v3697_v53  ;;  %vm7962_vm1 = vmmov %vm7941_vm0 }
 0x5d0   : >> { %vm7963_vm6 = vmmov %vm7941_vm0 }
 0x5d1   : >> { %vm7964_vm11 = vmmov %vm7941_vm0 }
 0x5d6   : >> { %5015 = vmatmul.msk.f32.gmra.mxu1 %vm7952_vm13, %v7019_v36  ;;  %5020 = vmatmul.msk.f32.gmra.mxu2 %vm7953_vm12, %v7022_v26  ;;  %vm7965_vm13 = vmmov %vm7941_vm0 }
 0x5d7   : >> { %5010 = vmatmul.msk.f32.gmra.mxu0 %vm7954_vm14, %v4991_v12  ;;  %5081 = vmatmul.msk.f32.gmra.mxu3 %vm7941_vm0, %v3699_v55  ;;  %vm7966_vm12 = vmmov %vm7941_vm0 }
 0x5d8   : >> { %vm7967_vm14 = vmmov %vm7941_vm0 }
 0x5de   : >> { %5024 = vmatmul.msk.f32.vlgmr.msrb.gmra.mxu1 %vm7955_vm15, %v3362_v32  ;;  %5042 = vmatmul.msk.f32.vlgmr.msrb.gmra.mxu2 %vm7956_vm9, %v3504_v56  ;;  %vm7968_vm15 = vmmov %vm7941_vm0  ;;  %v7199_v32 = vsel %vm1779_vm7, %v3720_v54, %v3722_v37  ;;  %v3527_v56 = vrot.slane %v7008_v10, 1 }
 0x5df   : >> { %5098 = vmatmul.msk.f32.vlgmr.msrb.gmra.mxu0 %vm7957_vm5, %v4990_v58  ;;  %5082 = vmatmul.msk.f32.gmra.mxu3 %vm7958_vm3, %v3701_v18  ;;  %vm7969_vm9 = vmmov %vm7941_vm0  ;;  %v3521_v58 = vrot.slane %v6950_v42, 1 }
 0x5e0   : >> { %vm7970_vm5 = vmmov %vm7941_vm0  ;;  %v7216_v2 = vsel %vm1930_vm2, %v3525_v19, %v3527_v56 }
 0x5e1   : >> { %vm7971_vm3 = vmmov %vm7941_vm0  ;;  %v7162_v62 = vsel %vm1930_vm2, %v3519_v50, %v3521_v58 }
 0x5e6   : >> { %5025 = vmatmul.msk.f32.gmra.mxu1 %vm7959_vm8, %v3364_v35  ;;  %5043 = vmatmul.msk.f32.gmra.mxu2 %vm7960_vm4, %v3506_v9  ;;  %vm7972_vm8 = vmmov %vm7941_vm0 }
 0x5e7   : >> { %5099 = vmatmul.msk.f32.gmra.mxu0 %vm7961_vm10, %v4991_v12  ;;  %5083 = vmatmul.msk.f32.gmra.mxu3 %vm7962_vm1, %v7048_v17  ;;  %vm7973_vm4 = vmmov %vm7941_vm0  ;;  %v3523_v12 = vrot.slane %v6970_v41, 1 }
 0x5e8   : >> { %vm7974_vm10 = vmmov %vm7941_vm0 }
 0x5e9   : >> { %vm7975_vm1 = vmmov %vm7941_vm0  ;;  %v7178_v7 = vsel %vm1930_vm2, %v3521_v58, %v3523_v12  ;;  %v7194_v22 = vsel %vm1930_vm2, %v3523_v12, %v3525_v19  ;;  %v3533_v19 = vrot.slane %v6976_v29, 1 }
 0x5eb   : >> { %v7287_v30 = vsel %vm1930_vm2, %v3531_v20, %v3533_v19 }
 0x5ee   : >> { %5026 = vmatmul.msk.f32.gmra.mxu1 %vm7963_vm6, %v3366_v23  ;;  %5044 = vmatmul.msk.f32.gmra.mxu2 %vm7964_vm11, %v3508_v6  ;;  %vm7976_vm6 = vmmov %vm7941_vm0  ;;  %v3529_v23 = vrot.slane %v7022_v26, 1 }
 0x5ef   : >> { %5100 = vmatmul.msk.f32.gmra.mxu0 %vm7965_vm13, %v6947_v48  ;;  %5084 = vmatmul.msk.f32.gmra.mxu3 %vm7966_vm12, %v7059_v40  ;;  %vm7977_vm11 = vmmov %vm7941_vm0  ;;  %v3517_v48 = vrot.slane %v7005_v13, 1 }
 0x5f0   : >> { %vm7978_vm13 = vmmov %vm7941_vm0  ;;  %v7241_v33 = vsel %vm1930_vm2, %v3527_v56, %v3529_v23 }
 0x5f1   : >> { %vm7979_vm12 = vmmov %vm7941_vm0  ;;  %v7130_v31 = vsel %vm1930_vm2, %v3515_v27, %v3517_v48  ;;  %v7146_v14 = vsel %vm1930_vm2, %v3517_v48, %v3519_v50  ;;  %v7253_v27 = vld [vmem:[%s6944_s28 + $0xb0] sm:$0xff] }
 0x5f2   : >> { %v3728_v11 = vrot.slane %v7253_v27, 7 }
 0x5f4   : >> { %v7267_v12 = vsel %vm1779_vm7, %v3726_v49, %v3728_v11 }
 0x5f5   : >> { %8011 = vst [vmem:[#allocation48_spill] sm:$0xff] %v7267_v12 }
 0x5f6   : >> { %5027 = vmatmul.msk.f32.gmra.mxu1 %vm7967_vm14, %v3697_v53  ;;  %5045 = vmatmul.msk.f32.gmra.mxu2 %vm7941_vm0, %v7069_v63  ;;  %vm7980_vm14 = vmmov %vm7941_vm0  ;;  %v7165_v53 = vsel %vm1779_vm7, %v3716_v1, %v3718_v59  ;;  %v7264_v1 = vsel %vm1930_vm2, %v3529_v23, %v3531_v20 }
 0x5f7   : >> { %5101 = vmatmul.msk.f32.gmra.mxu0 %vm7968_vm15, %v6967_v21  ;;  %5085 = vmatmul.msk.f32.gmra.mxu3 %vm7969_vm9, %v7072_v52  ;;  %vm7981_vm15 = vmmov %vm7941_vm0 }
 0x5f8   : >> { %vm7982_vm9 = vmmov %vm7941_vm0 }
 0x5fe   : >> { %5028 = vmatmul.msk.f32.gmra.mxu1 %vm7970_vm5, %v3699_v55  ;;  %5046 = vmatmul.msk.f32.gmra.mxu2 %vm7971_vm3, %v7084_v15  ;;  %vm7983_vm5 = vmmov %vm7941_vm0  ;;  %v7181_v55 = vsel %vm1779_vm7, %v3718_v59, %v3720_v54  ;;  %v7274_v54 = vld [vmem:[%s6944_s28 + $0xb8] sm:$0xff] }
 0x5ff   : >> { %5102 = vmatmul.msk.f32.gmra.mxu0 %vm7972_vm8, %v6987_v34  ;;  %5086 = vmatmul.msk.f32.gmra.mxu3 %vm7973_vm4, %v7087_v8  ;;  %vm7984_vm3 = vmmov %vm7941_vm0 }
 0x600   : >> { %vm7985_vm8 = vmmov %vm7941_vm0 }
 0x601   : >> { %vm7986_vm4 = vmmov %vm7941_vm0 }
 0x606   : >> { %5029 = vmatmul.msk.f32.gmra.mxu1 %vm7974_vm10, %v3701_v18  ;;  %5047 = vmatmul.msk.f32.gmra.mxu2 %vm7975_vm1, %v7099_v4  ;;  %vm7987_vm10 = vmmov %vm7941_vm0 }
 0x607   : >> { %5103 = vmatmul.msk.f32.gmra.mxu0 %vm7976_vm6, %v7005_v13  ;;  %5087 = vmatmul.msk.f32.gmra.mxu3 %vm7977_vm11, %v7102_v61  ;;  %vm7988_vm1 = vmmov %vm7941_vm0 }
 0x608   : >> { %vm7989_vm6 = vmmov %vm7941_vm0 }
 0x609   : >> { %vm7990_vm11 = vmmov %vm7941_vm0 }
 0x60e   : >> { %5030 = vmatmul.msk.f32.gmra.mxu1 %vm7978_vm13, %v7048_v17  ;;  %5048 = vmatmul.msk.f32.gmra.mxu2 %vm7979_vm12, %v7114_v43  ;;  %vm7991_vm13 = vmmov %vm7941_vm0 }
 0x60f   : >> { %5104 = vmatmul.msk.f32.gmra.mxu0 %vm7980_vm14, %v7019_v36  ;;  %5088 = vmatmul.msk.f32.gmra.mxu3 %vm7941_vm0, %v7117_v45  ;;  %vm7992_vm12 = vmmov %vm7941_vm0 }
 0x610   : >> { %vm7993_vm14 = vmmov %vm7941_vm0 }
 0x616   : >> { %5031 = vmatmul.msk.f32.gmra.mxu1 %vm7981_vm15, %v7059_v40  ;;  %5049 = vmatmul.msk.f32.gmra.mxu2 %vm7982_vm9, %v7130_v31  ;;  %vm7994_vm15 = vmmov %vm7941_vm0 }
 0x617   : >> { %5105 = vmatmul.msk.f32.gmra.mxu0 %vm7983_vm5, %v6950_v42  ;;  %5089 = vmatmul.msk.f32.gmra.mxu3 %vm7984_vm3, %v7133_v51  ;;  %vm7995_vm9 = vmmov %vm7941_vm0 }
 0x618   : >> { %vm7996_vm5 = vmmov %vm7941_vm0 }
 0x619   : >> { %vm7997_vm3 = vmmov %vm7941_vm0 }
 0x61e   : >> { %5032 = vmatmul.msk.f32.gmra.mxu1 %vm7985_vm8, %v7072_v52  ;;  %5050 = vmatmul.msk.f32.gmra.mxu2 %vm7986_vm4, %v7146_v14  ;;  %vm7998_vm8 = vmmov %vm7941_vm0 }
 0x61f   : >> { %5106 = vmatmul.msk.f32.gmra.mxu0 %vm7987_vm10, %v6970_v41  ;;  %5090 = vmatmul.msk.f32.gmra.mxu3 %vm7988_vm1, %v7149_v3  ;;  %vm7999_vm4 = vmmov %vm7941_vm0 }
 0x620   : >> { %vm8001_vm10 = vmmov %vm7941_vm0 }
 0x621   : >> { %vm8002_vm1 = vmmov %vm7941_vm0 }
 0x626   : >> { %5033 = vmatmul.msk.f32.gmra.mxu1 %vm7989_vm6, %v7087_v8  ;;  %5051 = vmatmul.msk.f32.gmra.mxu2 %vm7990_vm11, %v7162_v62  ;;  %vm8003_vm6 = vmmov %vm7941_vm0 }
 0x627   : >> { %5107 = vmatmul.msk.f32.gmra.mxu0 %vm7991_vm13, %v6990_v0  ;;  %5091 = vmatmul.msk.f32.gmra.mxu3 %vm7992_vm12, %v7165_v53  ;;  %vm8004_vm11 = vmmov %vm7941_vm0 }
 0x628   : >> { %vm8007_vm13 = vmmov %vm7941_vm0 }
 0x629   : >> { %vm8008_vm12 = vmmov %vm7941_vm0 }
 0x62e   : >> { %5034 = vmatmul.msk.f32.gmra.mxu1 %vm7993_vm14, %v7102_v61  ;;  %5052 = vmatmul.msk.f32.gmra.mxu2 %vm7941_vm0, %v7178_v7  ;;  %vm8009_vm14 = vmmov %vm7941_vm0 }
 0x62f   : >> { %5108 = vmatmul.msk.f32.gmra.mxu0 %vm7994_vm15, %v7008_v10  ;;  %5092 = vmatmul.msk.f32.gmra.mxu3 %vm7995_vm9, %v7181_v55  ;;  %vm8012_vm15 = vmmov %vm7941_vm0 }
 0x630   : >> { %vm8013_vm9 = vmmov %vm7941_vm0 }
 0x633   : >> { %v3324_v46 = vpop.f32.mrf.mxu1 }
 0x634   : >> { %v7196_v47 = vpop.f32.mrf.mxu0  ;;  %v7612_v46 = vrot.slane %v7274_v54, 7 }
 0x636   : >> { %5035 = vmatmul.msk.f32.gmra.mxu1 %vm7996_vm5, %v7117_v45  ;;  %5053 = vmatmul.msk.f32.gmra.mxu2 %vm7997_vm3, %v7194_v22  ;;  %vm8014_vm5 = vmmov %vm7941_vm0  ;;  %v7292_v49 = vsel %vm1779_vm7, %v3728_v11, %v7612_v46 }
 0x637   : >> { %5109 = vmatmul.msk.f32.gmra.mxu0 %vm7998_vm8, %v7022_v26  ;;  %5093 = vmatmul.msk.f32.gmra.mxu3 %vm7999_vm4, %v7199_v32  ;;  %vm8015_vm3 = vmmov %vm7941_vm0  ;;  %8017 = vst [vmem:[#allocation50_spill] sm:$0xff] %v7292_v49 }
 0x638   : >> { %vm8018_vm8 = vmmov %vm7941_vm0 }
 0x639   : >> { %v7210_v18 = vpop.f32.mrf.mxu2  ;;  %vm8019_vm4 = vmmov %vm7941_vm0 }
 0x63a   : >> { %v7218_v35 = vpop.f32.mrf.mxu3 }
 0x63b   : >> { %v7213_v28 = vpop.f32.mrf.mxu1  ;;  %8000 = vst [vmem:[#allocation44_spill] sm:$0xff] %v7218_v35 }
 0x63c   : >> { %v7220_v9 = vpop.f32.mrf.mxu0 }
 0x63e   : >> { %5036 = vmatmul.msk.f32.gmra.mxu1 %vm8001_vm10, %v7133_v51  ;;  %5054 = vmatmul.msk.f32.gmra.mxu2 %vm8002_vm1, %v7216_v2  ;;  %vm8020_vm10 = vmmov %vm7941_vm0 }
 0x63f   : >> { %5110 = vmatmul.msk.f32.gmra.mxu0 %vm8003_vm6, %v6962_v39  ;;  %5094 = vmatmul.msk.f32.gmra.mxu3 %vm8004_vm11, %v7223_v25  ;;  %vm8021_vm1 = vmmov %vm7941_vm0 }
 0x640   : >> { %vm8022_vm6 = vmmov %vm7941_vm0 }
 0x641   : >> { %v3340_v6 = vpop.f32.mrf.mxu2  ;;  %vm8023_vm11 = vmmov %vm7941_vm0 }
 0x642   : >> { %v7243_v57 = vpop.f32.mrf.mxu3 }
 0x643   : >> { %v7238_v60 = vpop.f32.mrf.mxu1  ;;  %8005 = vst [vmem:[#allocation45_spill] sm:$0xff] %v7243_v57 }
 0x644   : >> { %v3316_v44 = vpop.f32.mrf.mxu0 }
 0x645   : >> { %v3535_v44 = vrot.slane %v6994_v38, 1 }
 0x646   : >> { %5037 = vmatmul.msk.f32.gmra.mxu1 %vm8007_vm13, %v7149_v3  ;;  %5055 = vmatmul.msk.f32.gmra.mxu2 %vm8008_vm12, %v7241_v33  ;;  %vm8024_vm13 = vmmov %vm7941_vm0 }
 0x647   : >> { %5111 = vmatmul.msk.f32.gmra.mxu0 %vm8009_vm14, %v6976_v29  ;;  %5095 = vmatmul.msk.f32.gmra.mxu3 %vm7941_vm0, %v7246_v16  ;;  %vm8025_vm12 = vmmov %vm7941_vm0  ;;  %v7319_v35 = vsel %vm1930_vm2, %v3535_v44, %v3537_v24 }
 0x648   : >> { %vm8026_vm14 = vmmov %vm7941_vm0 }
 0x649   : >> { %v7260_v48 = vpop.f32.mrf.mxu2 }
 0x64a   : >> { %8010 = vst [vmem:[#allocation47_spill] sm:$0xff] %v7260_v48  ;;  %v3356_v58 = vpop.f32.mrf.mxu3 }
 0x64b   : >> { %v3332_v50 = vpop.f32.mrf.mxu1  ;;  %v7304_v58 = vsel %vm1930_vm2, %v3533_v19, %v3535_v44 }
 0x64c   : >> { %v3318_v59 = vpop.f32.mrf.mxu0 }
 0x64e   : >> { %5038 = vmatmul.msk.f32.gmra.mxu1 %vm8012_vm15, %v7165_v53  ;;  %5056 = vmatmul.msk.f32.gmra.mxu2 %vm8013_vm9, %v7264_v1  ;;  %vm8027_vm15 = vmmov %vm7941_vm0 }
 0x64f   : >> { %5112 = vmatmul.msk.f32.gmra.mxu0 %vm8014_vm5, %v6994_v38  ;;  %5096 = vmatmul.msk.f32.gmra.mxu3 %vm8015_vm3, %v7267_v12  ;;  %vm8028_vm9 = vmmov %vm7941_vm0 }
 0x650   : >> { %vm8029_vm5 = vmmov %vm7941_vm0 }
 0x651   : >> { %v7281_v37 = vpop.f32.mrf.mxu2  ;;  %vm8030_vm3 = vmmov %vm7941_vm0 }
 0x652   : >> { %8016 = vst [vmem:[#allocation49_spill] sm:$0xff] %v7281_v37  ;;  %v3785_v23 = vpop.f32.mrf.mxu3 }
 0x653   : >> { %v7284_v56 = vpop.f32.mrf.mxu1 }
 0x654   : >> { %v3321_v6 = vpop.f32.mrf.mxu0 }
 0x656   : >> { %5039 = vmatmul.msk.f32.gmra.mxu1 %vm8018_vm8, %v7181_v55  ;;  %5057 = vmatmul.msk.f32.gmra.mxu2 %vm8019_vm4, %v7287_v30  ;;  %vm8031_vm8 = vmmov %vm7941_vm0 }
 0x657   : >> { %5113 = vmatmul.msk.f32.gmra.mxu0 %vm8020_vm10, %v7230_v5  ;;  %5097 = vmatmul.msk.f32.gmra.mxu3 %vm8021_vm1, %v7292_v49  ;;  %vm8032_vm4 = vmmov %vm7941_vm0 }
 0x658   : >> { %vm8033_vm10 = vmmov %vm7941_vm0 }
 0x659   : >> { %v3348_v20 = vpop.f32.mrf.mxu2  ;;  %vm8034_vm1 = vmmov %vm7941_vm0 }
 0x65a   : >> { %v3788_v11 = vpop.f32.mrf.mxu3 }
 0x65b   : >> { %v3450_v50 = vpop.f32.mrf.mxu1 }
 0x65c   : >> { %v3900_v46 = vpop.f32.mrf.mxu0  ;;  %v3451_v57 = vadd.f32 %v3450_v50, %v7196_v47 }
 0x65e   : >> { %5040 = vmatmul.msk.f32.gmra.mxu1 %vm8022_vm6, %v7199_v32  ;;  %5058 = vmatmul.msk.f32.gmra.mxu2 %vm8023_vm11, %v7304_v58  ;;  %vm8035_vm6 = vmmov %vm7941_vm0 }
 0x65f   : >> { %5114 = vmatmul.msk.f32.gmra.mxu0 %vm8024_vm13, %v7253_v27  ;;  %5172 = vmatmul.msk.f32.vlgmr.msra.gmra.mxu3 %vm8025_vm12, %v6967_v21  ;;  %vm8036_vm11 = vmmov %vm7941_vm0 }
 0x660   : >> { %vm8037_vm13 = vmmov %vm7941_vm0 }
 0x661   : >> { %v3592_v19 = vpop.f32.mrf.mxu2  ;;  %vm8038_vm12 = vmmov %vm7941_vm0 }
 0x662   : >> { %v3640_v20 = vadd.f32 %v3592_v19, %v3451_v57  ;;  %v3791_v12 = vpop.f32.mrf.mxu3 }
 0x663   : >> { %v3453_v49 = vpop.f32.mrf.mxu1 }
 0x664   : >> { %v3833_v16 = vadd.f32 %v3785_v23, %v3640_v20  ;;  %v3903_v37 = vpop.f32.mrf.mxu0  ;;  %v3454_v21 = vadd.f32 %v3453_v49, %v7220_v9 }
 0x666   : >> { %v7321_v48 = vadd.f32 %v3900_v46, %v3833_v16  ;;  %5041 = vmatmul.msk.f32.gmra.mxu1 %vm8026_vm14, %v7223_v25  ;;  %5059 = vmatmul.msk.f32.gmra.mxu2 %vm7941_vm0, %v7319_v35  ;;  %vm8039_vm14 = vmmov %vm7941_vm0 }
 0x667   : >> { %5115 = vmatmul.msk.f32.gmra.mxu0 %vm8027_vm15, %v7274_v54  ;;  %5173 = vmatmul.msk.f32.gmra.mxu3 %vm8028_vm9, %v6987_v34  ;;  %vm8040_vm15 = vmmov %vm7941_vm0 }
 0x668   : >> { %vm8041_vm9 = vmmov %vm7941_vm0 }
 0x669   : >> { %v3595_v47 = vpop.f32.mrf.mxu2 }
 0x66a   : >> { %v3641_v57 = vadd.f32 %v3595_v47, %v3454_v21  ;;  %v3793_v23 = vpop.f32.mrf.mxu3 }
 0x66b   : >> { %v3456_v12 = vpop.f32.mrf.mxu1 }
 0x66c   : >> { %v3834_v16 = vadd.f32 %v3788_v11, %v3641_v57  ;;  %v3906_v46 = vpop.f32.mrf.mxu0 }
 0x66e   : >> { %v7332_v44 = vadd.f32 %v3903_v37, %v3834_v16  ;;  %5116 = vmatmul.msk.f32.vlgmr.msra.gmra.mxu1 %vm8029_vm5, %v7069_v63  ;;  %5154 = vmatmul.msk.f32.vlgmr.msra.gmra.mxu2 %vm8030_vm3, %v7048_v17  ;;  %vm8042_vm5 = vmmov %vm7941_vm0 }
 0x66f   : >> { %5190 = vmatmul.msk.f32.vlgmr.msra.gmra.mxu0 %vm8031_vm8, %v7114_v43  ;;  %5174 = vmatmul.msk.f32.gmra.mxu3 %vm8032_vm4, %v7005_v13  ;;  %vm8043_vm3 = vmmov %vm7941_vm0 }
 0x670   : >> { %vm8044_vm8 = vmmov %vm7941_vm0 }
 0x671   : >> { %v3598_v34 = vpop.f32.mrf.mxu2  ;;  %vm8045_vm4 = vmmov %vm7941_vm0 }
 0x672   : >> { %v3796_v49 = vpop.f32.mrf.mxu3 }
 0x673   : >> { %v3458_v9 = vpop.f32.mrf.mxu1 }
 0x674   : >> { %v3908_v50 = vpop.f32.mrf.mxu0  ;;  %v3459_v17 = vadd.f32 %v3458_v9, %v3318_v59 }
 0x676   : >> { %5117 = vmatmul.msk.f32.gmra.mxu1 %vm8033_vm10, %v7084_v15  ;;  %5155 = vmatmul.msk.f32.gmra.mxu2 %vm8034_vm1, %v7059_v40  ;;  %vm8046_vm10 = vmmov %vm7941_vm0 }
 0x677   : >> { %5191 = vmatmul.msk.f32.gmra.mxu0 %vm8035_vm6, %v7130_v31  ;;  %5175 = vmatmul.msk.f32.gmra.mxu3 %vm8036_vm11, %v7019_v36  ;;  %vm8047_vm1 = vmmov %vm7941_vm0 }
 0x678   : >> { %vm8048_vm6 = vmmov %vm7941_vm0 }
 0x679   : >> { %v3600_v63 = vpop.f32.mrf.mxu2  ;;  %vm8049_vm11 = vmmov %vm7941_vm0 }
 0x67a   : >> { %v3642_v37 = vadd.f32 %v3600_v63, %v3459_v17  ;;  %v3799_v11 = vpop.f32.mrf.mxu3 }
 0x67b   : >> { %v3461_v13 = vpop.f32.mrf.mxu1 }
 0x67c   : >> { %v3835_v19 = vadd.f32 %v3793_v23, %v3642_v37  ;;  %v3911_v20 = vpop.f32.mrf.mxu0  ;;  %v3462_v40 = vadd.f32 %v3461_v13, %v3321_v6 }
 0x67e   : >> { %v7350_v21 = vadd.f32 %v3908_v50, %v3835_v19  ;;  %5118 = vmatmul.msk.f32.gmra.mxu1 %vm8037_vm13, %v7099_v4  ;;  %5156 = vmatmul.msk.f32.gmra.mxu2 %vm8038_vm12, %v7072_v52  ;;  %vm8050_vm13 = vmmov %vm7941_vm0 }
 0x67f   : >> { %5192 = vmatmul.msk.f32.gmra.mxu0 %vm8039_vm14, %v7146_v14  ;;  %5176 = vmatmul.msk.f32.gmra.mxu3 %vm7941_vm0, %v6950_v42  ;;  %vm8051_vm12 = vmmov %vm7941_vm0 }
 0x680   : >> { %vm8052_vm14 = vmmov %vm7941_vm0 }
 0x681   : >> { %v3603_v36 = vpop.f32.mrf.mxu2 }
 0x682   : >> { %v3643_v15 = vadd.f32 %v3603_v36, %v3462_v40  ;;  %v3801_v47 = vpop.f32.mrf.mxu3 }
 0x683   : >> { %v3464_v59 = vpop.f32.mrf.mxu1 }
 0x684   : >> { %v3836_v57 = vadd.f32 %v3796_v49, %v3643_v15  ;;  %v3914_v12 = vpop.f32.mrf.mxu0 }
 0x686   : >> { %v7360_v23 = vadd.f32 %v3911_v20, %v3836_v57  ;;  %5119 = vmatmul.msk.f32.gmra.mxu1 %vm8040_vm15, %v7114_v43  ;;  %5157 = vmatmul.msk.f32.gmra.mxu2 %vm8041_vm9, %v7087_v8  ;;  %vm8053_vm15 = vmmov %vm7941_vm0 }
 0x687   : >> { %5193 = vmatmul.msk.f32.gmra.mxu0 %vm8042_vm5, %v7162_v62  ;;  %5177 = vmatmul.msk.f32.gmra.mxu3 %vm8043_vm3, %v6970_v41  ;;  %vm8054_vm9 = vmmov %vm7941_vm0 }
 0x688   : >> { %vm8055_vm5 = vmmov %vm7941_vm0 }
 0x689   : >> { %v3606_v42 = vpop.f32.mrf.mxu2  ;;  %vm8056_vm3 = vmmov %vm7941_vm0 }
 0x68a   : >> { %v3804_v4 = vpop.f32.mrf.mxu3 }
 0x68b   : >> { %v3466_v52 = vpop.f32.mrf.mxu1 }
 0x68c   : >> { %v3916_v6 = vpop.f32.mrf.mxu0  ;;  %v3467_v8 = vadd.f32 %v3466_v52, %v7213_v28 }
 0x68e   : >> { %5120 = vmatmul.msk.f32.gmra.mxu1 %vm8044_vm8, %v7130_v31  ;;  %5158 = vmatmul.msk.f32.gmra.mxu2 %vm8045_vm4, %v7102_v61  ;;  %vm8057_vm8 = vmmov %vm7941_vm0 }
 0x68f   : >> { %5194 = vmatmul.msk.f32.gmra.mxu0 %vm8046_vm10, %v7178_v7  ;;  %5178 = vmatmul.msk.f32.gmra.mxu3 %vm8047_vm1, %v6990_v0  ;;  %vm8058_vm4 = vmmov %vm7941_vm0 }
 0x690   : >> { %vm8059_vm10 = vmmov %vm7941_vm0 }
 0x691   : >> { %v3608_v43 = vpop.f32.mrf.mxu2  ;;  %vm8060_vm1 = vmmov %vm7941_vm0 }
 0x692   : >> { %v3644_v41 = vadd.f32 %v3608_v43, %v3467_v8  ;;  %v3807_v46 = vpop.f32.mrf.mxu3  ;;  %v4449_v8 = vrot.slane %v7253_v27, 1 }
 0x693   : >> { %v3469_v16 = vpop.f32.mrf.mxu1 }
 0x694   : >> { %v3837_v34 = vadd.f32 %v3801_v47, %v3644_v41  ;;  %v3919_v9 = vpop.f32.mrf.mxu0  ;;  %v3470_v61 = vadd.f32 %v3469_v16, %v7238_v60 }
 0x696   : >> { %v7379_v49 = vadd.f32 %v3916_v6, %v3837_v34  ;;  %5121 = vmatmul.msk.f32.gmra.mxu1 %vm8048_vm6, %v7146_v14  ;;  %5159 = vmatmul.msk.f32.gmra.mxu2 %vm8049_vm11, %v7117_v45  ;;  %vm8061_vm6 = vmmov %vm7941_vm0 }
 0x697   : >> { %5195 = vmatmul.msk.f32.gmra.mxu0 %vm8050_vm13, %v7194_v22  ;;  %5179 = vmatmul.msk.f32.gmra.mxu3 %vm8051_vm12, %v7008_v10  ;;  %vm8062_vm11 = vmmov %vm7941_vm0 }
 0x698   : >> { %vm8063_vm13 = vmmov %vm7941_vm0 }
 0x699   : >> { %v3611_v0 = vpop.f32.mrf.mxu2  ;;  %vm8064_vm12 = vmmov %vm7941_vm0 }
 0x69a   : >> { %v3645_v31 = vadd.f32 %v3611_v0, %v3470_v61  ;;  %v3809_v50 = vpop.f32.mrf.mxu3  ;;  %v8077_v61 = vld [vmem:[#allocation46_spill] sm:$0xff] }
 0x69b   : >> { %v3472_v28 = vpop.f32.mrf.mxu1 }
 0x69c   : >> { %v3838_v17 = vadd.f32 %v3804_v4, %v3645_v31  ;;  %v3922_v63 = vpop.f32.mrf.mxu0 }
 0x69e   : >> { %v7390_v37 = vadd.f32 %v3919_v9, %v3838_v17  ;;  %5122 = vmatmul.msk.f32.gmra.mxu1 %vm8052_vm14, %v7162_v62  ;;  %5160 = vmatmul.msk.f32.gmra.mxu2 %vm7941_vm0, %v7133_v51  ;;  %vm8065_vm14 = vmmov %vm7941_vm0  ;;  %v8084_v17 = vld [vmem:[#allocation44_spill] sm:$0xff] }
 0x69f   : >> { %5196 = vmatmul.msk.f32.gmra.mxu0 %vm8053_vm15, %v7216_v2  ;;  %5180 = vmatmul.msk.f32.gmra.mxu3 %vm8054_vm9, %v7022_v26  ;;  %vm8066_vm15 = vmmov %vm7941_vm0 }
 0x6a0   : >> { %vm8067_vm9 = vmmov %vm7941_vm0 }
 0x6a1   : >> { %v3614_v10 = vpop.f32.mrf.mxu2 }
 0x6a2   : >> { %v3812_v14 = vpop.f32.mrf.mxu3 }
 0x6a3   : >> { %v3474_v45 = vpop.f32.mrf.mxu1 }
 0x6a4   : >> { %v3924_v60 = vpop.f32.mrf.mxu0  ;;  %v3475_v51 = vadd.f32 %v3474_v45, %v7284_v56 }
 0x6a6   : >> { %5123 = vmatmul.msk.f32.gmra.mxu1 %vm8055_vm5, %v7178_v7  ;;  %5161 = vmatmul.msk.f32.gmra.mxu2 %vm8056_vm3, %v7149_v3  ;;  %vm8068_vm5 = vmmov %vm7941_vm0 }
 0x6a7   : >> { %5197 = vmatmul.msk.f32.gmra.mxu0 %vm8057_vm8, %v7241_v33  ;;  %5181 = vmatmul.msk.f32.gmra.mxu3 %vm8058_vm4, %v6962_v39  ;;  %vm8070_vm3 = vmmov %vm7941_vm0 }
 0x6a8   : >> { %vm8071_vm8 = vmmov %vm7941_vm0 }
 0x6a9   : >> { %v3616_v62 = vpop.f32.mrf.mxu2  ;;  %vm8072_vm4 = vmmov %vm7941_vm0 }
 0x6aa   : >> { %v3646_v26 = vadd.f32 %v3616_v62, %v3475_v51  ;;  %v3815_v11 = vpop.f32.mrf.mxu3 }
 0x6ab   : >> { %v3477_v13 = vpop.f32.mrf.mxu1  ;;  %v5151_v11 = vld [vmem:[%s6944_s28 + $0xc8] sm:$0xff] }
 0x6ac   : >> { %v3839_v19 = vadd.f32 %v3809_v50, %v3646_v26  ;;  %v3927_v20 = vpop.f32.mrf.mxu0  ;;  %v3478_v3 = vadd.f32 %v3477_v13, %v7210_v18  ;;  %v5150_v50 = vld [vmem:[%s6944_s28 + $0xc0] sm:$0xff] }
 0x6ad   : >> { %v4453_v10 = vrot.slane %v5150_v50, 1 }
 0x6ae   : >> { %v7409_v40 = vadd.f32 %v3924_v60, %v3839_v19  ;;  %5124 = vmatmul.msk.f32.gmra.mxu1 %vm8059_vm10, %v7194_v22  ;;  %5162 = vmatmul.msk.f32.gmra.mxu2 %vm8060_vm1, %v7165_v53  ;;  %vm8073_vm10 = vmmov %vm7941_vm0  ;;  %v8087_v19 = vld [vmem:[#allocation50_spill] sm:$0xff] }
 0x6af   : >> { %5198 = vmatmul.msk.f32.gmra.mxu0 %vm8061_vm6, %v7264_v1  ;;  %5182 = vmatmul.msk.f32.gmra.mxu3 %vm8062_vm11, %v6976_v29  ;;  %vm8075_vm1 = vmmov %vm7941_vm0 }
 0x6b0   : >> { %vm8076_vm6 = vmmov %vm7941_vm0 }
 0x6b1   : >> { %v3619_v39 = vpop.f32.mrf.mxu2  ;;  %vm8078_vm11 = vmmov %vm7941_vm0 }
 0x6b2   : >> { %v3647_v7 = vadd.f32 %v3619_v39, %v3478_v3  ;;  %v3817_v36 = vpop.f32.mrf.mxu3  ;;  %v8090_v3 = vld [vmem:[#allocation45_spill] sm:$0xff] }
 0x6b3   : >> { %v3480_v56 = vpop.f32.mrf.mxu1 }
 0x6b4   : >> { %v3840_v15 = vadd.f32 %v3812_v14, %v3647_v7  ;;  %v3930_v59 = vpop.f32.mrf.mxu0  ;;  %v4455_v7 = vrot.slane %v5151_v11, 1 }
 0x6b5   : >> { %v8092_v59 = vrot.slane %v7274_v54, 7 }
 0x6b6   : >> { %v7420_v47 = vadd.f32 %v3927_v20, %v3840_v15  ;;  %5125 = vmatmul.msk.f32.gmra.mxu1 %vm8063_vm13, %v7216_v2  ;;  %5163 = vmatmul.msk.f32.gmra.mxu2 %vm8064_vm12, %v7181_v55  ;;  %v8069_v55 = vld [vmem:[#allocation47_spill] sm:$0xff]  ;;  %vm8079_vm13 = vmmov %vm7941_vm0  ;;  %v4187_v20 = vrot.slane %v5150_v50, 7 }
 0x6b7   : >> { %5199 = vmatmul.msk.f32.gmra.mxu0 %vm8065_vm14, %v7287_v30  ;;  %5183 = vmatmul.msk.f32.gmra.mxu3 %vm7941_vm0, %v6994_v38  ;;  %vm8080_vm12 = vmmov %vm7941_vm0 }
 0x6b8   : >> { %vm8081_vm14 = vmmov %vm7941_vm0 }
 0x6b9   : >> { %v3622_v29 = vpop.f32.mrf.mxu2 }
 0x6ba   : >> { %v3820_v22 = vpop.f32.mrf.mxu3  ;;  %v4188_v29 = vsel %vm1779_vm7, %v8092_v59, %v4187_v20 }
 0x6bb   : >> { %v3482_v53 = vpop.f32.mrf.mxu1 }
 0x6bc   : >> { %v3932_v18 = vpop.f32.mrf.mxu0  ;;  %v3483_v2 = vadd.f32 %v3482_v53, %v8069_v55  ;;  %v5152_v55 = vld [vmem:[%s6944_s28 + $0xd0] sm:$0xff] }
 0x6be   : >> { %5126 = vmatmul.msk.f32.gmra.mxu1 %vm8066_vm15, %v7241_v33  ;;  %5164 = vmatmul.msk.f32.gmra.mxu2 %vm8067_vm9, %v7199_v32  ;;  %v8074_v32 = vld [vmem:[#allocation49_spill] sm:$0xff]  ;;  %vm8083_vm15 = vmmov %vm7941_vm0 }
 0x6bf   : >> { %5200 = vmatmul.msk.f32.gmra.mxu0 %vm8068_vm5, %v7304_v58  ;;  %5184 = vmatmul.msk.f32.gmra.mxu3 %vm8070_vm3, %v7230_v5  ;;  %vm8085_vm9 = vmmov %vm7941_vm0 }
 0x6c0   : >> { %vm8086_vm5 = vmmov %vm7941_vm0 }
 0x6c1   : >> { %v3624_v57 = vpop.f32.mrf.mxu2  ;;  %vm8088_vm3 = vmmov %vm7941_vm0 }
 0x6c2   : >> { %v3648_v38 = vadd.f32 %v3624_v57, %v3483_v2  ;;  %v3823_v42 = vpop.f32.mrf.mxu3  ;;  %v4189_v57 = vrot.slane %v5151_v11, 7 }
 0x6c3   : >> { %v3485_v12 = vpop.f32.mrf.mxu1 }
 0x6c4   : >> { %v3841_v52 = vadd.f32 %v3817_v36, %v3648_v38  ;;  %v3935_v4 = vpop.f32.mrf.mxu0  ;;  %v3486_v33 = vadd.f32 %v3485_v12, %v8074_v32  ;;  %v4457_v38 = vrot.slane %v5152_v55, 1  ;;  %v4190_v42 = vsel %vm1779_vm7, %v4187_v20, %v4189_v57 }
 0x6c6   : >> { %v7439_v6 = vadd.f32 %v3932_v18, %v3841_v52  ;;  %5127 = vmatmul.msk.f32.gmra.mxu1 %vm8071_vm8, %v7264_v1  ;;  %5165 = vmatmul.msk.f32.gmra.mxu2 %vm8072_vm4, %v7223_v25  ;;  %v4450_v25 = vsel %vm1930_vm2, %v3537_v24, %v4449_v8  ;;  %vm8089_vm8 = vmmov %vm7941_vm0  ;;  %v4456_v18 = vsel %vm1930_vm2, %v4453_v10, %v4455_v7 }
 0x6c7   : >> { %5201 = vmatmul.msk.f32.gmra.mxu0 %vm8073_vm10, %v7319_v35  ;;  %5185 = vmatmul.msk.f32.gmra.mxu3 %vm8075_vm1, %v7253_v27  ;;  %v4451_v27 = vrot.slane %v7274_v54, 1  ;;  %vm8091_vm4 = vmmov %vm7941_vm0  ;;  %v4458_v32 = vsel %vm1930_vm2, %v4455_v7, %v4457_v38 }
 0x6c8   : >> { %vm8093_vm10 = vmmov %vm7941_vm0 }
 0x6c9   : >> { %v3627_v43 = vpop.f32.mrf.mxu2  ;;  %v4452_v24 = vsel %vm1930_vm2, %v4449_v8, %v4451_v27  ;;  %v4454_v13 = vsel %vm1930_vm2, %v4451_v27, %v4453_v10  ;;  %vm8094_vm1 = vmmov %vm7941_vm0  ;;  %v4191_v8 = vrot.slane %v5152_v55, 7  ;;  %v8100_v27 = vld [vmem:[#allocation43_spill] sm:$0xff] }
 0x6ca   : >> { %v3649_v41 = vadd.f32 %v3627_v43, %v3486_v33  ;;  %v3825_v46 = vpop.f32.mrf.mxu3  ;;  %v5153_v33 = vld [vmem:[%s6944_s28 + $0xd8] sm:$0xff] }
 0x6cb   : >> { %v3488_v16 = vpop.f32.mrf.mxu1 }
 0x6cc   : >> { %v3842_v34 = vadd.f32 %v3820_v22, %v3649_v41  ;;  %v3938_v1 = vpop.f32.mrf.mxu0  ;;  %v4459_v41 = vrot.slane %v5153_v33, 1 }
 0x6cd   : >> { %v4192_v1 = vsel %vm1779_vm7, %v4189_v57, %v4191_v8 }
 0x6ce   : >> { %v7454_v9 = vadd.f32 %v3935_v4, %v3842_v34  ;;  %5128 = vmatmul.msk.f32.gmra.mxu1 %vm8076_vm6, %v7287_v30  ;;  %5166 = vmatmul.msk.f32.gmra.mxu2 %vm8078_vm11, %v8077_v61  ;;  %v8082_v30 = vld [vmem:[#allocation48_spill] sm:$0xff]  ;;  %vm8095_vm6 = vmmov %vm7941_vm0 }
 0x6cf   : >> { %5202 = vmatmul.msk.f32.gmra.mxu0 %vm8079_vm13, %v4450_v25  ;;  %5186 = vmatmul.msk.f32.gmra.mxu3 %vm8080_vm12, %v7274_v54  ;;  %vm8096_vm11 = vmmov %vm7941_vm0 }
 0x6d0   : >> { %vm8097_vm13 = vmmov %vm7941_vm0 }
 0x6d1   : >> { %v3630_v0 = vpop.f32.mrf.mxu2  ;;  %vm8098_vm12 = vmmov %vm7941_vm0 }
 0x6d2   : >> { %v3828_v5 = vpop.f32.mrf.mxu3  ;;  %v7504_v0 = vperm.slane %v8100_v27, 0 }
 0x6d3   : >> { %v3490_v31 = vpop.f32.mrf.mxu1 }
 0x6d4   : >> { %v3940_v28 = vpop.f32.mrf.mxu0  ;;  %v3491_v63 = vadd.f32 %v3490_v31, %v8084_v17 }
 0x6d6   : >> { %5129 = vmatmul.msk.f32.gmra.mxu1 %vm8081_vm14, %v7304_v58  ;;  %5167 = vmatmul.msk.f32.gmra.mxu2 %vm7941_vm0, %v8082_v30  ;;  %vm8099_vm14 = vmmov %vm7941_vm0 }
 0x6d7   : >> { %5203 = vmatmul.msk.f32.gmra.mxu0 %vm8083_vm15, %v4452_v24  ;;  %5187 = vmatmul.msk.f32.gmra.mxu3 %vm8085_vm9, %v5150_v50  ;;  %vm8101_vm15 = vmmov %vm7941_vm0  ;;  %vm4591_vm9 = vcmask 48128  }
 0x6d9   : >> { %v3632_v45 = vpop.f32.mrf.mxu2 }
 0x6da   : >> { %v3650_v14 = vadd.f32 %v3632_v45, %v3491_v63  ;;  %v3831_v51 = vpop.f32.mrf.mxu3 }
 0x6db   : >> { %v3493_v60 = vpop.f32.mrf.mxu1 }
 0x6dc   : >> { %v3843_v62 = vadd.f32 %v3825_v46, %v3650_v14  ;;  %v3943_v26 = vpop.f32.mrf.mxu0  ;;  %v3494_v39 = vadd.f32 %v3493_v60, %v8090_v3 }
 0x6de   : >> { %v7475_v58 = vadd.f32 %v3940_v28, %v3843_v62  ;;  %5130 = vmatmul.msk.f32.gmra.mxu1 %vm8086_vm5, %v7319_v35  ;;  %5168 = vmatmul.msk.f32.gmra.mxu2 %vm8088_vm3, %v8087_v19  ;;  %vm8102_vm5 = vmmov %vm7941_vm0 }
 0x6df   : >> { %5204 = vmatmul.msk.f32.gmra.mxu0 %vm8089_vm8, %v4454_v13  ;;  %5188 = vmatmul.msk.f32.gmra.mxu3 %vm8091_vm4, %v5151_v11 }
 0x6e1   : >> { %v3635_v56 = vpop.f32.mrf.mxu2 }
 0x6e2   : >> { %v3651_v36 = vadd.f32 %v3635_v56, %v3494_v39  ;;  %v4361_v53 = vpop.f32.mrf.mxu3 }
 0x6e3   : >> { %v3496_v15 = vpop.f32.mrf.mxu1 }
 0x6e4   : >> { %v3844_v35 = vadd.f32 %v3828_v5, %v3651_v36  ;;  %v3946_v22 = vpop.f32.mrf.mxu0  ;;  %v4460_v5 = vsel %vm1930_vm2, %v4457_v38, %v4459_v41 }
 0x6e6   : >> { %v7489_v2 = vadd.f32 %v3943_v26, %v3844_v35  ;;  %5131 = vmatmul.msk.f32.gmra.mxu1 %vm8093_vm10, %v4450_v25  ;;  %5169 = vmatmul.msk.f32.gmra.mxu2 %vm8094_vm1, %v4188_v29 }
 0x6e7   : >> { %5205 = vmatmul.msk.f32.gmra.mxu0 %vm8095_vm6, %v4456_v18  ;;  %5189 = vmatmul.msk.f32.gmra.mxu3 %vm8096_vm11, %v5152_v55 }
 0x6e9   : >> { %v3638_v54 = vpop.f32.mrf.mxu2 }
 0x6ea   : >> { %v4364_v52 = vpop.f32.mrf.mxu3 }
 0x6eb   : >> { %v4053_v12 = vpop.f32.mrf.mxu1 }
 0x6ec   : >> { %v4514_v4 = vpop.f32.mrf.mxu0  ;;  %v4101_v43 = vadd.f32 %v4053_v12, %v7321_v48 }
 0x6ee   : >> { %5132 = vmatmul.msk.f32.gmra.mxu1 %vm8097_vm13, %v4452_v24  ;;  %5170 = vmatmul.msk.f32.gmra.mxu2 %vm8098_vm12, %v4190_v42 }
 0x6ef   : >> { %5206 = vmatmul.msk.f32.gmra.mxu0 %vm8099_vm14, %v4458_v32 }
 0x6f1   : >> { %v4246_v16 = vpop.f32.mrf.mxu2 }
 0x6f2   : >> { %v4294_v46 = vadd.f32 %v4246_v16, %v4101_v43  ;;  %v4367_v25 = vpop.f32.mrf.mxu3 }
 0x6f3   : >> { %v4056_v34 = vpop.f32.mrf.mxu1 }
 0x6f4   : >> { %v4409_v61 = vadd.f32 %v4361_v53, %v4294_v46  ;;  %v4517_v31 = vpop.f32.mrf.mxu0  ;;  %v4102_v24 = vadd.f32 %v4056_v34, %v7332_v44 }
 0x6f6   : >> { %v4562_v28 = vadd.f32 %v4514_v4, %v4409_v61  ;;  %5171 = vmatmul.msk.f32.gmra.mxu2 %vm7941_vm0, %v4192_v1  ;;  %5133 = vmatmul.msk.f32.gmra.mxu1 %vm8101_vm15, %v4454_v13 }
 0x6f7   : >> { %5207 = vmatmul.msk.f32.gmra.mxu0 %vm8102_vm5, %v4460_v5 }
 0x6f8   : >> { %v4577_v48 = vadd.f32 %v7504_v0, %v4562_v28 }
 0x6f9   : >> { %v4249_v50 = vpop.f32.mrf.mxu2 }
 0x6fa   : >> { %4592 = vst.msk [vmem:[%s7511_s30] sm:$0xff] %vm4591_vm9, %v4577_v48  ;;  %v4295_v30 = vadd.f32 %v4249_v50, %v4102_v24  ;;  %v4369_v63 = vpop.f32.mrf.mxu3 }
 0x6fb   : >> { %v4059_v17 = vpop.f32.mrf.mxu1 }
 0x6fc   : >> { %v4410_v10 = vadd.f32 %v4364_v52, %v4295_v30  ;;  %v4520_v45 = vpop.f32.mrf.mxu0 }
 0x6fe   : >> { %v4563_v14 = vadd.f32 %v4517_v31, %v4410_v10 }
 0x700   : >> { %v4578_v60 = vadd.f32 %v7504_v0, %v4563_v14 }
 0x701   : >> { %v4252_v51 = vpop.f32.mrf.mxu2 }
 0x702   : >> { %4593 = vst.msk [vmem:[%s7511_s30 + $0x8] sm:$0xff] %vm4591_vm9, %v4578_v60  ;;  %v4372_v26 = vpop.f32.mrf.mxu3 }
 0x703   : >> { %v4061_v62 = vpop.f32.mrf.mxu1 }
 0x704   : >> { %v4522_v13 = vpop.f32.mrf.mxu0  ;;  %v4103_v44 = vadd.f32 %v4061_v62, %v7350_v21 }
 0x709   : >> { %v4254_v11 = vpop.f32.mrf.mxu2 }
 0x70a   : >> { %v4296_v19 = vadd.f32 %v4254_v11, %v4103_v44  ;;  %v4375_v3 = vpop.f32.mrf.mxu3 }
 0x70b   : >> { %v4064_v20 = vpop.f32.mrf.mxu1 }
 0x70c   : >> { %v4411_v39 = vadd.f32 %v4369_v63, %v4296_v19  ;;  %v4525_v7 = vpop.f32.mrf.mxu0  ;;  %v4104_v15 = vadd.f32 %v4064_v20, %v7360_v23 }
 0x70e   : >> { %v4564_v56 = vadd.f32 %v4522_v13, %v4411_v39 }
 0x710   : >> { %v4579_v36 = vadd.f32 %v7504_v0, %v4564_v56 }
 0x711   : >> { %v4257_v59 = vpop.f32.mrf.mxu2 }
 0x712   : >> { %4594 = vst.msk [vmem:[%s7511_s30 + $0x10] sm:$0xff] %vm4591_vm9, %v4579_v36  ;;  %v4297_v29 = vadd.f32 %v4257_v59, %v4104_v15  ;;  %v4377_v35 = vpop.f32.mrf.mxu3 }
 0x713   : >> { %v4067_v53 = vpop.f32.mrf.mxu1 }
 0x714   : >> { %v4412_v22 = vadd.f32 %v4372_v26, %v4297_v29  ;;  %v4528_v21 = vpop.f32.mrf.mxu0 }
 0x716   : >> { %v4565_v18 = vadd.f32 %v4525_v7, %v4412_v22 }
 0x718   : >> { %v4580_v55 = vadd.f32 %v7504_v0, %v4565_v18 }
 0x719   : >> { %v4260_v57 = vpop.f32.mrf.mxu2 }
 0x71a   : >> { %4595 = vst.msk [vmem:[%s7511_s30 + $0x18] sm:$0xff] %vm4591_vm9, %v4580_v55  ;;  %v4380_v54 = vpop.f32.mrf.mxu3 }
 0x71b   : >> { %v4069_v38 = vpop.f32.mrf.mxu1 }
 0x71c   : >> { %v4530_v12 = vpop.f32.mrf.mxu0  ;;  %v4105_v23 = vadd.f32 %v4069_v38, %v7379_v49 }
 0x721   : >> { %v4262_v42 = vpop.f32.mrf.mxu2 }
 0x722   : >> { %v4298_v52 = vadd.f32 %v4262_v42, %v4105_v23  ;;  %v4383_v32 = vpop.f32.mrf.mxu3 }
 0x723   : >> { %v4072_v4 = vpop.f32.mrf.mxu1 }
 0x724   : >> { %v4413_v33 = vadd.f32 %v4377_v35, %v4298_v52  ;;  %v4533_v8 = vpop.f32.mrf.mxu0  ;;  %v4106_v16 = vadd.f32 %v4072_v4, %v7390_v37 }
 0x726   : >> { %v4566_v43 = vadd.f32 %v4530_v12, %v4413_v33 }
 0x728   : >> { %v4581_v41 = vadd.f32 %v7504_v0, %v4566_v43 }
 0x729   : >> { %v4265_v46 = vpop.f32.mrf.mxu2 }
 0x72a   : >> { %4596 = vst.msk [vmem:[%s7511_s30 + $0x20] sm:$0xff] %vm4591_vm9, %v4581_v41  ;;  %v4299_v34 = vadd.f32 %v4265_v46, %v4106_v16  ;;  %v4385_v25 = vpop.f32.mrf.mxu3 }
 0x72b   : >> { %v4075_v1 = vpop.f32.mrf.mxu1 }
 0x72c   : >> { %v4414_v61 = vadd.f32 %v4380_v54, %v4299_v34  ;;  %v4536_v49 = vpop.f32.mrf.mxu0 }
 0x72e   : >> { %v4567_v27 = vadd.f32 %v4533_v8, %v4414_v61 }
 0x730   : >> { %v4582_v31 = vadd.f32 %v7504_v0, %v4567_v27 }
 0x731   : >> { %v4268_v5 = vpop.f32.mrf.mxu2 }
 0x732   : >> { %4597 = vst.msk [vmem:[%s7511_s30 + $0x28] sm:$0xff] %vm4591_vm9, %v4582_v31  ;;  %v4388_v48 = vpop.f32.mrf.mxu3 }
 0x733   : >> { %v4077_v28 = vpop.f32.mrf.mxu1 }
 0x734   : >> { %v4538_v24 = vpop.f32.mrf.mxu0  ;;  %v4107_v37 = vadd.f32 %v4077_v28, %v7409_v40 }
 0x739   : >> { %v4270_v50 = vpop.f32.mrf.mxu2 }
 0x73a   : >> { %v4300_v30 = vadd.f32 %v4270_v50, %v4107_v37  ;;  %v4391_v63 = vpop.f32.mrf.mxu3 }
 0x73b   : >> { %v4080_v17 = vpop.f32.mrf.mxu1 }
 0x73c   : >> { %v4415_v10 = vadd.f32 %v4385_v25, %v4300_v30  ;;  %v4541_v45 = vpop.f32.mrf.mxu0  ;;  %v4108_v51 = vadd.f32 %v4080_v17, %v7420_v47 }
 0x73e   : >> { %v4568_v14 = vadd.f32 %v4538_v24, %v4415_v10 }
 0x740   : >> { %v4583_v60 = vadd.f32 %v7504_v0, %v4568_v14 }
 0x741   : >> { %v4273_v62 = vpop.f32.mrf.mxu2 }
 0x742   : >> { %4598 = vst.msk [vmem:[%s7511_s30 + $0x30] sm:$0xff] %vm4591_vm9, %v4583_v60  ;;  %v4301_v26 = vadd.f32 %v4273_v62, %v4108_v51  ;;  %v4393_v44 = vpop.f32.mrf.mxu3 }
 0x743   : >> { %v4083_v13 = vpop.f32.mrf.mxu1 }
 0x744   : >> { %v4416_v11 = vadd.f32 %v4388_v48, %v4301_v26  ;;  %v4544_v40 = vpop.f32.mrf.mxu0 }
 0x746   : >> { %v4569_v19 = vadd.f32 %v4541_v45, %v4416_v11 }
 0x748   : >> { %v4584_v20 = vadd.f32 %v7504_v0, %v4569_v19 }
 0x749   : >> { %v4276_v3 = vpop.f32.mrf.mxu2 }
 0x74a   : >> { %4599 = vst.msk [vmem:[%s7511_s30 + $0x38] sm:$0xff] %vm4591_vm9, %v4584_v20  ;;  %v4396_v7 = vpop.f32.mrf.mxu3 }
 0x74b   : >> { %v4085_v39 = vpop.f32.mrf.mxu1 }
 0x74c   : >> { %v4546_v56 = vpop.f32.mrf.mxu0  ;;  %v4109_v47 = vadd.f32 %v4085_v39, %v7439_v6 }
 0x751   : >> { %v4278_v36 = vpop.f32.mrf.mxu2 }
 0x752   : >> { %v4302_v15 = vadd.f32 %v4278_v36, %v4109_v47  ;;  %v4399_v29 = vpop.f32.mrf.mxu3 }
 0x753   : >> { %v4088_v59 = vpop.f32.mrf.mxu1 }
 0x754   : >> { %v4417_v53 = vadd.f32 %v4393_v44, %v4302_v15  ;;  %v4549_v35 = vpop.f32.mrf.mxu0  ;;  %v4110_v18 = vadd.f32 %v4088_v59, %v7454_v9 }
 0x756   : >> { %v4570_v22 = vadd.f32 %v4546_v56, %v4417_v53 }
 0x758   : >> { %v4585_v21 = vadd.f32 %v7504_v0, %v4570_v22 }
 0x759   : >> { %v4281_v55 = vpop.f32.mrf.mxu2 }
 0x75a   : >> { %4600 = vst.msk [vmem:[%s7511_s30 + $0x40] sm:$0xff] %vm4591_vm9, %v4585_v21  ;;  %v4303_v57 = vadd.f32 %v4281_v55, %v4110_v18  ;;  %v4401_v54 = vpop.f32.mrf.mxu3 }
 0x75b   : >> { %v4091_v38 = vpop.f32.mrf.mxu1 }
 0x75c   : >> { %v4418_v12 = vadd.f32 %v4396_v7, %v4303_v57  ;;  %v4552_v6 = vpop.f32.mrf.mxu0 }
 0x75e   : >> { %v4571_v23 = vadd.f32 %v4549_v35, %v4418_v12 }
 0x760   : >> { %v4586_v42 = vadd.f32 %v7504_v0, %v4571_v23 }
 0x761   : >> { %v4284_v52 = vpop.f32.mrf.mxu2 }
 0x762   : >> { %4601 = vst.msk [vmem:[%s7511_s30 + $0x48] sm:$0xff] %vm4591_vm9, %v4586_v42  ;;  %v4404_v32 = vpop.f32.mrf.mxu3 }
 0x763   : >> { %v4093_v4 = vpop.f32.mrf.mxu1 }
 0x764   : >> { %v4554_v33 = vpop.f32.mrf.mxu0  ;;  %v4111_v9 = vadd.f32 %v4093_v4, %v7475_v58 }
 0x769   : >> { %v4286_v8 = vpop.f32.mrf.mxu2 }
 0x76a   : >> { %v4304_v43 = vadd.f32 %v4286_v8, %v4111_v9  ;;  %v4407_v16 = vpop.f32.mrf.mxu3 }
 0x76b   : >> { %v4096_v41 = vpop.f32.mrf.mxu1 }
 0x76c   : >> { %v4419_v46 = vadd.f32 %v4401_v54, %v4304_v43  ;;  %v4557_v34 = vpop.f32.mrf.mxu0  ;;  %v4112_v61 = vadd.f32 %v4096_v41, %v7489_v2 }
 0x76e   : >> { %v4572_v1 = vadd.f32 %v4554_v33, %v4419_v46 }
 0x770   : >> { %v4587_v25 = vadd.f32 %v7504_v0, %v4572_v1 }
 0x771   : >> { %v4289_v49 = vpop.f32.mrf.mxu2 }
 0x772   : >> { %4602 = vst.msk [vmem:[%s7511_s30 + $0x50] sm:$0xff] %vm4591_vm9, %v4587_v25  ;;  %v4305_v27 = vadd.f32 %v4289_v49, %v4112_v61 }
 0x773   : >> { %v4099_v31 = vpop.f32.mrf.mxu1 }
 0x774   : >> { %v4420_v5 = vadd.f32 %v4404_v32, %v4305_v27  ;;  %v4560_v28 = vpop.f32.mrf.mxu0 }
 0x776   : >> { %v4573_v58 = vadd.f32 %v4557_v34, %v4420_v5  ;;  %3208 = sbr.rel (!%p3206_p12) target bundleno = 1453 (0x5ad), region = 137 }
 0x778   : >> { %v4588_v48 = vadd.f32 %v7504_v0, %v4573_v58 }
 0x779   : >> { %v4292_v24 = vpop.f32.mrf.mxu2 }
 0x77a   : >> { %4603 = vst.msk [vmem:[%s7511_s30 + $0x58] sm:$0xff] %vm4591_vm9, %v4588_v48 }
 0x77b PF: > { %p16_p13 = scmp.ge.s32.totalorder %s5540_s13, 4   ;;  %s8103_s18 = smov %s5436_s19 }
 0x77c   : > { %s8104_s19 = smov %s5440_s20  ;;  %s8105_s20 = smov %s5551_s16 }
 0x77d   : > { %s8106_s21 = smov %s5540_s13  ;;  %18 = sbr.rel (!%p16_p13) target bundleno = 4 (0x4), region = 148 }
 0x782   :  { %4625 = vsyncpa [#allocation5], 1 }
 0x783   :  { %4627 = vsyncpa [#allocation5 + $0x1], 1 }
 0x784   :  { %4628 = vsyncpa [#allocation7], 1 }

</bundles_post_ra>
